<compile_context>
chip_gen: v5e
topology: v5e:2x2
jax: 0.10.0
libtpu: 0.0.40
codegen_flags: <defaults>
</compile_context>

<pallas_src>
import jax
import jax.numpy as jnp
from jax import lax
from jax.experimental import pallas as pl
from jax.experimental.pallas import tpu as pltpu

EPS = 1e-5
LANE = 128


def _round_up(x, m):
    return (x + m - 1) // m * m


def _vmem_limit_bytes():
    """Generation-aware scoped-VMEM limit (~40 MiB on v7x, <=96 MiB on v5e/v6e)."""
    try:
        cap = int(pltpu.get_tpu_info().vmem_capacity_bytes)
    except Exception:
        cap = 64 * 1024 * 1024                 # conservative (v7x per-TensorCore)
    return int(min(max(cap - 24 * 1024 * 1024, 32 * 1024 * 1024),
                   96 * 1024 * 1024))


def _maybe_single_buffered(block_shape, index_map):
    """BlockSpec for grid-resident constants (weights / per-channel vectors):
    request single buffering when pipeline_mode is available (v7x VMEM relief)."""
    if hasattr(pl, "Buffered"):
        try:
            return pl.BlockSpec(block_shape, index_map,
                                pipeline_mode=pl.Buffered(1))
        except Exception:
            pass
    return pl.BlockSpec(block_shape, index_map)


# ---------------------------------------------------------------------------
# Kernel 0: per-channel sum / sum-of-squares (bn0 batch statistics)
# ---------------------------------------------------------------------------
def _bn_stats_kernel(x_ref, sum_ref, sq_ref):
    @pl.when(pl.program_id(0) == 0)
    def _():
        sum_ref[...] = jnp.zeros_like(sum_ref)
        sq_ref[...] = jnp.zeros_like(sq_ref)

    x = x_ref[...]                                    # (ROW_TILE, Cp)
    sum_ref[...] += jnp.sum(x, axis=0, keepdims=True)
    sq_ref[...] += jnp.sum(x * x, axis=0, keepdims=True)


def _bn_stats(x2d, n_valid_rows, vmem_limit):
    """x2d: (R, Cp) f32, zero rows beyond the real data are harmless.
    Returns per-channel (mean, 1/sqrt(var+eps))."""
    r, cp = x2d.shape
    # Large lane-dense tiles (<= ~4 MiB per block) amortise the per-step cost.
    row_tile = int(min(4096,
                       max(8, ((4 * 1024 * 1024) // (4 * cp)) // 8 * 8),
                       _round_up(r, 8)))
    rp = _round_up(r, row_tile)
    if rp != r:
        x2d = jnp.pad(x2d, ((0, rp - r), (0, 0)))
    s, q = pl.pallas_call(
        _bn_stats_kernel,
        grid=(rp // row_tile,),
        in_specs=[pl.BlockSpec((row_tile, cp), lambda i: (i, 0))],
        out_specs=[pl.BlockSpec((1, cp), lambda i: (0, 0)),
                   pl.BlockSpec((1, cp), lambda i: (0, 0))],
        out_shape=[jax.ShapeDtypeStruct((1, cp), jnp.float32),
                   jax.ShapeDtypeStruct((1, cp), jnp.float32)],
        compiler_params=pltpu.CompilerParams(
            dimension_semantics=("arbitrary",),
            vmem_limit_bytes=vmem_limit),
    )(x2d)
    mean = s[0] / n_valid_rows
    var = jnp.maximum(q[0] / n_valid_rows - mean * mean, 0.0)
    return mean, lax.rsqrt(var + EPS)


# ---------------------------------------------------------------------------
# Kernel 1: bn0 + relu + conv0 (stride 2) + avg-pool shortcut + bn1 partials
# ---------------------------------------------------------------------------
def _make_conv0_kernel(H, W):
    def kernel(ph00_ref, ph01_ref, ph10_ref, ph11_ref,
               mean0_ref, inv0_ref, w0_ref,
               h_ref, pool_ref, st_ref, a_scr):
        B, Ho, Wo, C1p = h_ref.shape
        _, Hp, Wp, C0p = a_scr.shape
        mean0 = mean0_ref[...].reshape(1, 1, 1, C0p)
        inv0 = inv0_ref[...].reshape(1, 1, 1, C0p)
        phases = (ph00_ref, ph01_ref, ph10_ref, ph11_ref)

        acc = jnp.zeros((B * Ho * Wo, C1p), jnp.float32)
        psum = jnp.zeros((B, Ho, Wo, C0p), jnp.float32)

        for py in range(2):
            for px in range(2):
                ph_ref = phases[2 * py + px]
                # Hoisted bn0-scale + relu + bf16 cast: once per phase block.
                xf = ph_ref[...].astype(jnp.float32)
                a_scr[...] = jnp.maximum((xf - mean0) * inv0,
                                         0.0).astype(jnp.bfloat16)
                # conv input is zero-padded *after* bn+relu -> zero the halo
                # rows/cols of this phase (static per phase / spatial parity).
                for r in range(Hp):
                    if not 0 <= 2 * r + py - 1 < H:
                        a_scr[:, r:r + 1, :, :] = jnp.zeros(
                            (B, 1, Wp, C0p), jnp.bfloat16)
                for c in range(Wp):
                    if not 0 <= 2 * c + px - 1 < W:
                        a_scr[:, :, c:c + 1, :] = jnp.zeros(
                            (B, Hp, 1, C0p), jnp.bfloat16)
                # Taps owned by this phase: bf16 matmuls from the scratch, and
                # raw (zero-padded) tap adds for the avg-pool shortcut.
                for ky in range(py, 3, 2):
                    for kx in range(px, 3, 2):
                        sy, sx = ky // 2, kx // 2
                        psum = psum + ph_ref[:, sy:sy + Ho, sx:sx + Wo, :
                                             ].astype(jnp.float32)
                        a = a_scr[:, sy:sy + Ho, sx:sx + Wo, :]
                        acc = acc + jnp.dot(
                            a.reshape(B * Ho * Wo, C0p),
                            w0_ref[3 * ky + kx],
                            preferred_element_type=jnp.float32)

        h_ref[...] = acc.reshape(B, Ho, Wo, C1p).astype(h_ref.dtype)
        # count_include_pad avg-pool of the raw input (padding taps are 0).
        pool_ref[...] = (psum * (1.0 / 9.0)).astype(pool_ref.dtype)
        # per-tile partial sums for bn1 batch statistics (written once).
        st_ref[...] = jnp.concatenate(
            [jnp.sum(acc, axis=0, keepdims=True),
             jnp.sum(acc * acc, axis=0, keepdims=True)], axis=0)

    return kernel


# ---------------------------------------------------------------------------
# Kernel 2: bn1 + relu + conv1 (stride 1) + shortcut add
# ---------------------------------------------------------------------------
def _conv1_kernel(h_ref, mean1_ref, inv1_ref, w1_ref, pool_ref, o_ref, a_scr):
    B, Ho, Wo, C1p = o_ref.shape
    C0p = pool_ref.shape[-1]
    mean1 = mean1_ref[...].reshape(1, 1, 1, C1p)
    inv1 = inv1_ref[...].reshape(1, 1, 1, C1p)

    # bn1 + relu + bf16 cast hoisted out of the tap loop; 1-pixel zero halo is
    # built in VMEM scratch (no wrapper-side HBM round-trip of a padded h).
    a_scr[...] = jnp.zeros_like(a_scr)
    hn = (h_ref[...].astype(jnp.float32) - mean1) * inv1
    a_scr[:, 1:Ho + 1, 1:Wo + 1, :] = jnp.maximum(hn, 0.0).astype(jnp.bfloat16)

    acc = jnp.zeros((B * Ho * Wo, C1p), jnp.float32)
    for ky in range(3):
        for kx in range(3):
            a = a_scr[:, ky:ky + Ho, kx:kx + Wo, :]
            acc = acc + jnp.dot(a.reshape(B * Ho * Wo, C1p),
                                w1_ref[3 * ky + kx],
                                preferred_element_type=jnp.float32)

    out = acc.reshape(B, Ho, Wo, C1p)
    pool = pool_ref[...].astype(jnp.float32)
    # shortcut torch.cat([avg_pool(x), zeros]): lane-aligned slab stores.
    if C0p < C1p:
        o_ref[:, :, :, :C0p] = (out[:, :, :, :C0p] + pool).astype(o_ref.dtype)
        o_ref[:, :, :, C0p:] = out[:, :, :, C0p:].astype(o_ref.dtype)
    else:
        o_ref[...] = (out + pool).astype(o_ref.dtype)


# ---------------------------------------------------------------------------
# Wrapper
# ---------------------------------------------------------------------------
def _pick_batch_tile(n, ho, wo, hp, wp, c0p, c1p, vmem_limit):
    """Images per grid step: aim for matmul M >= ~512 rows, keep >= 2 grid
    steps (megacore / dual-TC) and stay well inside the VMEM budget."""
    if n <= 1:
        return 1
    per_img = (4 * hp * wp * c0p * 2 * 2                  # 4 bf16 phase blocks (2 bufs)
               + hp * wp * c0p * 2                        # conv0 bf16 scratch
               + ho * wo * c1p * (2 * 2 + 4 + 4 * 2 + 2)  # h out / acc / out / h in
               + ho * wo * c0p * (2 * 2 + 4)              # pool out + psum acc
               + (ho + 2) * (wo + 2) * c1p * 2)           # conv1 bf16 scratch
    budget = max(vmem_limit // 3, 4 * 1024 * 1024)
    target = (512 + ho * wo - 1) // (ho * wo)
    bt = int(max(1, min(budget // per_img, n // 2, target)))
    while n % bt:
        bt -= 1
    return max(bt, 1)


def downsample_block_forward(x_nchw, conv0_w, conv1_w):
    """x: (N, width//2, H, W); conv0: (width, width//2, 3, 3);
    conv1: (width, width, 3, 3).  Returns (N, width, ceil(H/2), ceil(W/2))."""
    N, C0, H, W = x_nchw.shape
    C1 = conv0_w.shape[0]
    Ho = (H - 1) // 2 + 1
    Wo = (W - 1) // 2 + 1
    C0p = _round_up(C0, LANE)
    C1p = _round_up(C1, LANE)
    vmem_limit = _vmem_limit_bytes()

    # NHWC, lane-dense channel padding (done once at the module boundary).
    x = jnp.transpose(x_nchw, (0, 2, 3, 1)).astype(jnp.float32)
    x_c = jnp.pad(x, ((0, 0), (0, 0), (0, 0), (0, C0p - C0)))    # (N,H,W,C0p)

    # ---- bn0 batch stats -----------------------------------------------
    R0 = N * H * W
    mean0, inv0 = _bn_stats(x_c.reshape(R0, C0p), R0, vmem_limit)

    # ---- stride-2 phase split of the RAW zero-padded input (bf16) -------
    pb, pr = 1 + (H % 2), 1 + (W % 2)
    xsp = jnp.pad(x_c, ((0, 0), (1, pb), (1, pr), (0, 0))).astype(jnp.bfloat16)
    phases = [xsp[:, py::2, px::2, :] for py in (0, 1) for px in (0, 1)]
    Hp, Wp = phases[0].shape[1], phases[0].shape[2]

    # weights -> (9, Cin_p, Cout_p) bf16
    w0 = jnp.transpose(conv0_w, (2, 3, 1, 0)).astype(jnp.float32)
    w0 = jnp.pad(w0, ((0, 0), (0, 0), (0, C0p - C0), (0, C1p - C1)))
    w0 = w0.reshape(9, C0p, C1p).astype(jnp.bfloat16)
    w1 = jnp.transpose(conv1_w, (2, 3, 1, 0)).astype(jnp.float32)
    w1 = jnp.pad(w1, ((0, 0), (0, 0), (0, C1p - C1), (0, C1p - C1)))
    w1 = w1.reshape(9, C1p, C1p).astype(jnp.bfloat16)

    BT = _pick_batch_tile(N, Ho, Wo, Hp, Wp, C0p, C1p, vmem_limit)
    NB = N // BT

    phase_spec = pl.BlockSpec((BT, Hp, Wp, C0p), lambda n: (n, 0, 0, 0))
    cvec0_spec = _maybe_single_buffered((1, 1, C0p), lambda n: (0, 0, 0))
    w0_spec = _maybe_single_buffered((9, C0p, C1p), lambda n: (0, 0, 0))

    h, pool, st1 = pl.pallas_call(
        _make_conv0_kernel(H, W),
        grid=(NB,),
        in_specs=[phase_spec, phase_spec, phase_spec, phase_spec,
                  cvec0_spec, cvec0_spec, w0_spec],
        out_specs=[pl.BlockSpec((BT, Ho, Wo, C1p), lambda n: (n, 0, 0, 0)),
                   pl.BlockSpec((BT, Ho, Wo, C0p), lambda n: (n, 0, 0, 0)),
                   pl.BlockSpec((None, 2, C1p), lambda n: (n, 0, 0))],
        out_shape=[jax.ShapeDtypeStruct((N, Ho, Wo, C1p), jnp.bfloat16),
                   jax.ShapeDtypeStruct((N, Ho, Wo, C0p), jnp.bfloat16),
                   jax.ShapeDtypeStruct((NB, 2, C1p), jnp.float32)],
        scratch_shapes=[pltpu.VMEM((BT, Hp, Wp, C0p), jnp.bfloat16)],
        compiler_params=pltpu.CompilerParams(
            dimension_semantics=("parallel",),
            vmem_limit_bytes=vmem_limit),
    )(*phases, mean0.reshape(1, 1, C0p), inv0.reshape(1, 1, C0p), w0)

    # ---- bn1 batch stats from the fused per-tile partial sums ------------
    # (stats taken from the f32 accumulator; h is quantised to bf16 -> tiny,
    #  tolerance-level mismatch vs. the exact batch statistics)
    R1 = N * Ho * Wo
    tot = jnp.sum(st1, axis=0)                    # (2, C1p)
    mean1 = tot[0] / R1
    var1 = jnp.maximum(tot[1] / R1 - mean1 * mean1, 0.0)
    inv1 = lax.rsqrt(var1 + EPS)

    cvec1_spec = _maybe_single_buffered((1, 1, C1p), lambda n: (0, 0, 0))
    w1_spec = _maybe_single_buffered((9, C1p, C1p), lambda n: (0, 0, 0))

    out = pl.pallas_call(
        _conv1_kernel,
        grid=(NB,),
        in_specs=[pl.BlockSpec((BT, Ho, Wo, C1p), lambda n: (n, 0, 0, 0)),
                  cvec1_spec, cvec1_spec, w1_spec,
                  pl.BlockSpec((BT, Ho, Wo, C0p), lambda n: (n, 0, 0, 0))],
        out_specs=pl.BlockSpec((BT, Ho, Wo, C1p), lambda n: (n, 0, 0, 0)),
        out_shape=jax.ShapeDtypeStruct((N, Ho, Wo, C1p), jnp.float32),
        scratch_shapes=[pltpu.VMEM((BT, Ho + 2, Wo + 2, C1p), jnp.bfloat16)],
        compiler_params=pltpu.CompilerParams(
            dimension_semantics=("parallel",),
            vmem_limit_bytes=vmem_limit),
    )(h, mean1.reshape(1, 1, C1p), inv1.reshape(1, 1, C1p), w1, pool)

    out = out[:, :, :, :C1]                       # drop lane padding
    return jnp.transpose(out, (0, 3, 1, 2))       # NHWC -> NCHW


# ---------------------------------------------------------------------------
# Deterministic parameter init (kaiming_normal_, mode='fan_out', relu)
# ---------------------------------------------------------------------------
def kaiming_normal_fan_out(key, shape):
    out_c, _, kh, kw = shape
    std = (2.0 / (out_c * kh * kw)) ** 0.5
    return std * jax.random.normal(key, shape, dtype=jnp.float32)


# ---------------------------------------------------------------------------
# Pure-JAX reference (f32, highest precision) for the sanity check
# ---------------------------------------------------------------------------
def _reference(x, w0, w1):
    def bn(t):
        m = t.mean(axis=(0, 2, 3), keepdims=True)
        v = ((t - m) ** 2).mean(axis=(0, 2, 3), keepdims=True)
        return (t - m) / jnp.sqrt(v + EPS)

    dn = ("NCHW", "OIHW", "NCHW")
    a0 = jax.nn.relu(bn(x))
    h = lax.conv_general_dilated(a0, w0, (2, 2), ((1, 1), (1, 1)),
                                 dimension_numbers=dn, precision="highest")
    a1 = jax.nn.relu(bn(h))
    h = lax.conv_general_dilated(a1, w1, (1, 1), ((1, 1), (1, 1)),
                                 dimension_numbers=dn, precision="highest")
    xd = lax.reduce_window(x, 0.0, lax.add, (1, 1, 3, 3), (1, 1, 2, 2),
                           ((0, 0), (0, 0), (1, 1), (1, 1))) / 9.0
    xd = jnp.concatenate([xd, jnp.zeros_like(xd)], axis=1)
    return xd + h


if __name__ == "__main__":
    fwd = jax.jit(downsample_block_forward)

    configs = [
        (8, 2, 16, 16),     # even spatial size, C0p == C1p
        (144, 2, 15, 15),   # odd spatial size, C0p < C1p (slab-store branch)
    ]
    key = jax.random.PRNGKey(0)
    for width, N, H, W in configs:
        key, kx_, k0, k1 = jax.random.split(key, 4)
        x = jax.random.normal(kx_, (N, width // 2, H, W), dtype=jnp.float32)
        conv0 = kaiming_normal_fan_out(k0, (width, width // 2, 3, 3))
        conv1 = kaiming_normal_fan_out(k1, (width, width, 3, 3))

        out = jax.block_until_ready(fwd(x, conv0, conv1))
        ref = _reference(x, conv0, conv1)
        assert out.shape == ref.shape, (out.shape, ref.shape)
        # bf16 MXU operands / bf16 intermediates + f32 accumulation
        err = float(jnp.max(jnp.abs(out - ref)))
        assert jnp.allclose(out, ref, atol=5e-2, rtol=5e-2), err

    print("KERNEL_OK")
</pallas_src>

<mosaic_0001>
module attributes {stable_mosaic.version = 11 : i64} {
  func.func @_bn_stats_kernel(%arg0: i32, %arg1: memref<512x128xf32, #tpu.memory_space<vmem>>, %arg2: memref<1x128xf32, #tpu.memory_space<vmem>>, %arg3: memref<1x128xf32, #tpu.memory_space<vmem>>) attributes {dimension_semantics = [#tpu.dimension_semantics<arbitrary>], iteration_bounds = array<i64: 1>, scalar_prefetch = 0 : i64, scratch_operands = 0 : i64, tpu.core_type = #tpu.core_type<tc>, window_params = [{transform_indices = @transform_0, window_bounds = array<i64: 512, 128>}, {pipeline_mode = #tpu.pipeline_mode<synchronous>, transform_indices = @transform_1, window_bounds = array<i64: 1, 128>}, {pipeline_mode = #tpu.pipeline_mode<synchronous>, transform_indices = @transform_2, window_bounds = array<i64: 1, 128>}]} {
    %c0_i32 = arith.constant 0 : i32
    %0 = arith.cmpi eq, %arg0, %c0_i32 : i32
    %1 = arith.extui %0 : i1 to i32
    %c0_i32_0 = arith.constant 0 : i32
    %2 = arith.cmpi ne, %1, %c0_i32_0 : i32
    scf.if %2 {
      %cst_11 = arith.constant 0.000000e+00 : f32
      %15 = vector.broadcast %cst_11 : f32 to vector<1x128xf32>
      %c0_12 = arith.constant 0 : index
      %c0_13 = arith.constant 0 : index
      %16 = vector.load %arg2[%c0_12, %c0_13] : memref<1x128xf32, #tpu.memory_space<vmem>>, vector<1x128xf32>
      tpu.vector_store %arg2[%c0_12, %c0_13], %15 {strides = array<i32>} : memref<1x128xf32, #tpu.memory_space<vmem>>, vector<1x128xf32>,
      %cst_14 = arith.constant 0.000000e+00 : f32
      %17 = vector.broadcast %cst_14 : f32 to vector<1x128xf32>
      %c0_15 = arith.constant 0 : index
      %c0_16 = arith.constant 0 : index
      %18 = vector.load %arg3[%c0_15, %c0_16] : memref<1x128xf32, #tpu.memory_space<vmem>>, vector<1x128xf32>
      tpu.vector_store %arg3[%c0_15, %c0_16], %17 {strides = array<i32>} : memref<1x128xf32, #tpu.memory_space<vmem>>, vector<1x128xf32>,
    } else {
    }
    %c0 = arith.constant 0 : index
    %c0_1 = arith.constant 0 : index
    %3 = vector.load %arg1[%c0, %c0_1] : memref<512x128xf32, #tpu.memory_space<vmem>>, vector<512x128xf32>
    %c0_2 = arith.constant 0 : index
    %c0_3 = arith.constant 0 : index
    %4 = vector.load %arg2[%c0_2, %c0_3] : memref<1x128xf32, #tpu.memory_space<vmem>>, vector<1x128xf32>
    %cst = arith.constant dense<0.000000e+00> : vector<128xf32>
    %5 = vector.multi_reduction <add>, %3, %cst [0] : vector<512x128xf32> to vector<128xf32>
    %6 = vector.shape_cast %5 : vector<128xf32> to vector<1x128xf32>
    %7 = arith.addf %4, %6 : vector<1x128xf32>
    %c0_4 = arith.constant 0 : index
    %c0_5 = arith.constant 0 : index
    %8 = vector.load %arg2[%c0_4, %c0_5] : memref<1x128xf32, #tpu.memory_space<vmem>>, vector<1x128xf32>
    tpu.vector_store %arg2[%c0_4, %c0_5], %7 {strides = array<i32>} : memref<1x128xf32, #tpu.memory_space<vmem>>, vector<1x128xf32>,
    %c0_6 = arith.constant 0 : index
    %c0_7 = arith.constant 0 : index
    %9 = vector.load %arg3[%c0_6, %c0_7] : memref<1x128xf32, #tpu.memory_space<vmem>>, vector<1x128xf32>
    %10 = arith.mulf %3, %3 : vector<512x128xf32>
    %cst_8 = arith.constant dense<0.000000e+00> : vector<128xf32>
    %11 = vector.multi_reduction <add>, %10, %cst_8 [0] : vector<512x128xf32> to vector<128xf32>
    %12 = vector.shape_cast %11 : vector<128xf32> to vector<1x128xf32>
    %13 = arith.addf %9, %12 : vector<1x128xf32>
    %c0_9 = arith.constant 0 : index
    %c0_10 = arith.constant 0 : index
    %14 = vector.load %arg3[%c0_9, %c0_10] : memref<1x128xf32, #tpu.memory_space<vmem>>, vector<1x128xf32>
    tpu.vector_store %arg3[%c0_9, %c0_10], %13 {strides = array<i32>} : memref<1x128xf32, #tpu.memory_space<vmem>>, vector<1x128xf32>,
    return
  }
  func.func @transform_0(%arg0: i32) -> (i32, i32) {
    %c0_i32 = arith.constant 0 : i32
    %c0_i32_0 = arith.constant 0 : i32
    return %arg0, %c0_i32 : i32, i32
  }
  func.func @transform_1(%arg0: i32) -> (i32, i32) {
    %c0_i32 = arith.constant 0 : i32
    %c0_i32_0 = arith.constant 0 : i32
    %c0_i32_1 = arith.constant 0 : i32
    return %c0_i32, %c0_i32_0 : i32, i32
  }
  func.func @transform_2(%arg0: i32) -> (i32, i32) {
    %c0_i32 = arith.constant 0 : i32
    %c0_i32_0 = arith.constant 0 : i32
    %c0_i32_1 = arith.constant 0 : i32
    return %c0_i32, %c0_i32_0 : i32, i32
  }
}

module attributes {stable_mosaic.version = 11 : i64} {
  func.func @kernel(%arg0: i32, %arg1: memref<1x9x9x128xbf16, #tpu.memory_space<vmem>>, %arg2: memref<1x9x9x128xbf16, #tpu.memory_space<vmem>>, %arg3: memref<1x9x9x128xbf16, #tpu.memory_space<vmem>>, %arg4: memref<1x9x9x128xbf16, #tpu.memory_space<vmem>>, %arg5: memref<1x1x128xf32, #tpu.memory_space<vmem>>, %arg6: memref<1x1x128xf32, #tpu.memory_space<vmem>>, %arg7: memref<9x128x128xbf16, #tpu.memory_space<vmem>>, %arg8: memref<1x8x8x128xbf16, #tpu.memory_space<vmem>>, %arg9: memref<1x8x8x128xbf16, #tpu.memory_space<vmem>>, %arg10: memref<1x2x128xf32, #tpu.memory_space<vmem>>, %arg11: memref<1x9x9x128xbf16, #tpu.memory_space<vmem>>) attributes {dimension_semantics = [#tpu.dimension_semantics<parallel>], iteration_bounds = array<i64: 2>, scalar_prefetch = 0 : i64, scratch_operands = 1 : i64, tpu.core_type = #tpu.core_type<tc>, window_params = [{transform_indices = @transform_0, window_bounds = array<i64: 1, 9, 9, 128>}, {transform_indices = @transform_1, window_bounds = array<i64: 1, 9, 9, 128>}, {transform_indices = @transform_2, window_bounds = array<i64: 1, 9, 9, 128>}, {transform_indices = @transform_3, window_bounds = array<i64: 1, 9, 9, 128>}, {pipeline_mode = #tpu.pipeline_mode<synchronous>, transform_indices = @transform_4, window_bounds = array<i64: 1, 1, 128>}, {pipeline_mode = #tpu.pipeline_mode<synchronous>, transform_indices = @transform_5, window_bounds = array<i64: 1, 1, 128>}, {pipeline_mode = #tpu.pipeline_mode<synchronous>, transform_indices = @transform_6, window_bounds = array<i64: 9, 128, 128>}, {transform_indices = @transform_7, window_bounds = array<i64: 1, 8, 8, 128>}, {transform_indices = @transform_8, window_bounds = array<i64: 1, 8, 8, 128>}, {transform_indices = @transform_9, window_bounds = array<i64: 1, 2, 128>}]} {
    %c0 = arith.constant 0 : index
    %c0_0 = arith.constant 0 : index
    %c0_1 = arith.constant 0 : index
    %0 = vector.load %arg5[%c0, %c0_0, %c0_1] : memref<1x1x128xf32, #tpu.memory_space<vmem>>, vector<1x1x128xf32>
    %1 = vector.shape_cast %0 : vector<1x1x128xf32> to vector<1x1x1x128xf32>
    %c0_2 = arith.constant 0 : index
    %c0_3 = arith.constant 0 : index
    %c0_4 = arith.constant 0 : index
    %2 = vector.load %arg6[%c0_2, %c0_3, %c0_4] : memref<1x1x128xf32, #tpu.memory_space<vmem>>, vector<1x1x128xf32>
    %3 = vector.shape_cast %2 : vector<1x1x128xf32> to vector<1x1x1x128xf32>
    %cst = arith.constant 0.000000e+00 : f32
    %4 = vector.broadcast %cst : f32 to vector<64x128xf32>
    %cst_5 = arith.constant 0.000000e+00 : f32
    %5 = vector.broadcast %cst_5 : f32 to vector<1x8x8x128xf32>
    %c0_6 = arith.constant 0 : index
    %c0_7 = arith.constant 0 : index
    %c0_8 = arith.constant 0 : index
    %c0_9 = arith.constant 0 : index
    %6 = vector.load %arg1[%c0_6, %c0_7, %c0_8, %c0_9] : memref<1x9x9x128xbf16, #tpu.memory_space<vmem>>, vector<1x9x9x128xbf16>
    %7 = arith.extf %6 : vector<1x9x9x128xbf16> to vector<1x9x9x128xf32>
    %8 = vector.broadcast %1 : vector<1x1x1x128xf32> to vector<1x9x9x128xf32>
    %9 = arith.subf %7, %8 : vector<1x9x9x128xf32>
    %10 = vector.broadcast %3 : vector<1x1x1x128xf32> to vector<1x9x9x128xf32>
    %11 = arith.mulf %9, %10 : vector<1x9x9x128xf32>
    %cst_10 = arith.constant 0.000000e+00 : f32
    %12 = vector.broadcast %cst_10 : f32 to vector<1x9x9x128xf32>
    %13 = arith.maximumf %11, %12 : vector<1x9x9x128xf32>
    %14 = arith.truncf %13 : vector<1x9x9x128xf32> to vector<1x9x9x128xbf16>
    %c0_11 = arith.constant 0 : index
    %c0_12 = arith.constant 0 : index
    %c0_13 = arith.constant 0 : index
    %c0_14 = arith.constant 0 : index
    %15 = vector.load %arg11[%c0_11, %c0_12, %c0_13, %c0_14] : memref<1x9x9x128xbf16, #tpu.memory_space<vmem>>, vector<1x9x9x128xbf16>
    tpu.vector_store %arg11[%c0_11, %c0_12, %c0_13, %c0_14], %14 {strides = array<i32>} : memref<1x9x9x128xbf16, #tpu.memory_space<vmem>>, vector<1x9x9x128xbf16>,
    %cst_15 = arith.constant 0.000000e+00 : bf16
    %16 = vector.broadcast %cst_15 : bf16 to vector<1x1x9x128xbf16>
    %c0_16 = arith.constant 0 : index
    %c0_17 = arith.constant 0 : index
    %c0_18 = arith.constant 0 : index
    %c0_19 = arith.constant 0 : index
    %17 = vector.load %arg11[%c0_16, %c0_17, %c0_18, %c0_19] : memref<1x9x9x128xbf16, #tpu.memory_space<vmem>>, vector<1x1x9x128xbf16>
    tpu.vector_store %arg11[%c0_16, %c0_17, %c0_18, %c0_19], %16 {strides = array<i32>} : memref<1x9x9x128xbf16, #tpu.memory_space<vmem>>, vector<1x1x9x128xbf16>,
    %cst_20 = arith.constant 0.000000e+00 : bf16
    %18 = vector.broadcast %cst_20 : bf16 to vector<1x9x1x128xbf16>
    %c0_21 = arith.constant 0 : index
    %c0_22 = arith.constant 0 : index
    %c0_23 = arith.constant 0 : index
    %c0_24 = arith.constant 0 : index
    %19 = vector.load %arg11[%c0_21, %c0_22, %c0_23, %c0_24] : memref<1x9x9x128xbf16, #tpu.memory_space<vmem>>, vector<1x9x1x128xbf16>
    tpu.vector_store %arg11[%c0_21, %c0_22, %c0_23, %c0_24], %18 {strides = array<i32>} : memref<1x9x9x128xbf16, #tpu.memory_space<vmem>>, vector<1x9x1x128xbf16>,
    %c0_25 = arith.constant 0 : index
    %c0_26 = arith.constant 0 : index
    %c0_27 = arith.constant 0 : index
    %c0_28 = arith.constant 0 : index
    %20 = vector.load %arg1[%c0_25, %c0_26, %c0_27, %c0_28] : memref<1x9x9x128xbf16, #tpu.memory_space<vmem>>, vector<1x8x8x128xbf16>
    %21 = arith.extf %20 : vector<1x8x8x128xbf16> to vector<1x8x8x128xf32>
    %22 = arith.addf %5, %21 : vector<1x8x8x128xf32>
    %c0_29 = arith.constant 0 : index
    %c0_30 = arith.constant 0 : index
    %c0_31 = arith.constant 0 : index
    %c0_32 = arith.constant 0 : index
    %23 = vector.load %arg11[%c0_29, %c0_30, %c0_31, %c0_32] : memref<1x9x9x128xbf16, #tpu.memory_space<vmem>>, vector<1x8x8x128xbf16>
    %24 = vector.shape_cast %23 : vector<1x8x8x128xbf16> to vector<64x128xbf16>
    %c0_33 = arith.constant 0 : index
    %c0_34 = arith.constant 0 : index
    %c0_35 = arith.constant 0 : index
    %25 = vector.load %arg7[%c0_33, %c0_34, %c0_35] : memref<9x128x128xbf16, #tpu.memory_space<vmem>>, vector<1x128x128xbf16>
    %26 = vector.shape_cast %25 : vector<1x128x128xbf16> to vector<128x128xbf16>
    %cst_36 = arith.constant dense<0.000000e+00> : vector<64x128xf32>
    %27 = tpu.matmul %24, %26, %cst_36 {dimension_numbers = #tpu.dot_dimension_numbers<[1], [0], [0], [1], [0, 0, 1, 1], [], []>} : vector<64x128xbf16>, vector<128x128xbf16>, vector<64x128xf32> -> vector<64x128xf32>
    %28 = arith.addf %4, %27 : vector<64x128xf32>
    %c0_37 = arith.constant 0 : index
    %c0_38 = arith.constant 0 : index
    %c1 = arith.constant 1 : index
    %c0_39 = arith.constant 0 : index
    %29 = vector.load %arg1[%c0_37, %c0_38, %c1, %c0_39] : memref<1x9x9x128xbf16, #tpu.memory_space<vmem>>, vector<1x8x8x128xbf16>
    %30 = arith.extf %29 : vector<1x8x8x128xbf16> to vector<1x8x8x128xf32>
    %31 = arith.addf %22, %30 : vector<1x8x8x128xf32>
    %c0_40 = arith.constant 0 : index
    %c0_41 = arith.constant 0 : index
    %c1_42 = arith.constant 1 : index
    %c0_43 = arith.constant 0 : index
    %32 = vector.load %arg11[%c0_40, %c0_41, %c1_42, %c0_43] : memref<1x9x9x128xbf16, #tpu.memory_space<vmem>>, vector<1x8x8x128xbf16>
    %33 = vector.shape_cast %32 : vector<1x8x8x128xbf16> to vector<64x128xbf16>
    %c2 = arith.constant 2 : index
    %c0_44 = arith.constant 0 : index
    %c0_45 = arith.constant 0 : index
    %34 = vector.load %arg7[%c2, %c0_44, %c0_45] : memref<9x128x128xbf16, #tpu.memory_space<vmem>>, vector<1x128x128xbf16>
    %35 = vector.shape_cast %34 : vector<1x128x128xbf16> to vector<128x128xbf16>
    %cst_46 = arith.constant dense<0.000000e+00> : vector<64x128xf32>
    %36 = tpu.matmul %33, %35, %cst_46 {dimension_numbers = #tpu.dot_dimension_numbers<[1], [0], [0], [1], [0, 0, 1, 1], [], []>} : vector<64x128xbf16>, vector<128x128xbf16>, vector<64x128xf32> -> vector<64x128xf32>
    %37 = arith.addf %28, %36 : vector<64x128xf32>
    %c0_47 = arith.constant 0 : index
    %c1_48 = arith.constant 1 : index
    %c0_49 = arith.constant 0 : index
    %c0_50 = arith.constant 0 : index
    %38 = vector.load %arg1[%c0_47, %c1_48, %c0_49, %c0_50] : memref<1x9x9x128xbf16, #tpu.memory_space<vmem>>, vector<1x8x8x128xbf16>
    %39 = arith.extf %38 : vector<1x8x8x128xbf16> to vector<1x8x8x128xf32>
    %40 = arith.addf %31, %39 : vector<1x8x8x128xf32>
    %c0_51 = arith.constant 0 : index
    %c1_52 = arith.constant 1 : index
    %c0_53 = arith.constant 0 : index
    %c0_54 = arith.constant 0 : index
    %41 = vector.load %arg11[%c0_51, %c1_52, %c0_53, %c0_54] : memref<1x9x9x128xbf16, #tpu.memory_space<vmem>>, vector<1x8x8x128xbf16>
    %42 = vector.shape_cast %41 : vector<1x8x8x128xbf16> to vector<64x128xbf16>
    %c6 = arith.constant 6 : index
    %c0_55 = arith.constant 0 : index
    %c0_56 = arith.constant 0 : index
    %43 = vector.load %arg7[%c6, %c0_55, %c0_56] : memref<9x128x128xbf16, #tpu.memory_space<vmem>>, vector<1x128x128xbf16>
    %44 = vector.shape_cast %43 : vector<1x128x128xbf16> to vector<128x128xbf16>
    %cst_57 = arith.constant dense<0.000000e+00> : vector<64x128xf32>
    %45 = tpu.matmul %42, %44, %cst_57 {dimension_numbers = #tpu.dot_dimension_numbers<[1], [0], [0], [1], [0, 0, 1, 1], [], []>} : vector<64x128xbf16>, vector<128x128xbf16>, vector<64x128xf32> -> vector<64x128xf32>
    %46 = arith.addf %37, %45 : vector<64x128xf32>
    %c0_58 = arith.constant 0 : index
    %c1_59 = arith.constant 1 : index
    %c1_60 = arith.constant 1 : index
    %c0_61 = arith.constant 0 : index
    %47 = vector.load %arg1[%c0_58, %c1_59, %c1_60, %c0_61] : memref<1x9x9x128xbf16, #tpu.memory_space<vmem>>, vector<1x8x8x128xbf16>
    %48 = arith.extf %47 : vector<1x8x8x128xbf16> to vector<1x8x8x128xf32>
    %49 = arith.addf %40, %48 : vector<1x8x8x128xf32>
    %c0_62 = arith.constant 0 : index
    %c1_63 = arith.constant 1 : index
    %c1_64 = arith.constant 1 : index
    %c0_65 = arith.constant 0 : index
    %50 = vector.load %arg11[%c0_62, %c1_63, %c1_64, %c0_65] : memref<1x9x9x128xbf16, #tpu.memory_space<vmem>>, vector<1x8x8x128xbf16>
    %51 = vector.shape_cast %50 : vector<1x8x8x128xbf16> to vector<64x128xbf16>
    %c8 = arith.constant 8 : index
    %c0_66 = arith.constant 0 : index
    %c0_67 = arith.constant 0 : index
    %52 = vector.load %arg7[%c8, %c0_66, %c0_67] : memref<9x128x128xbf16, #tpu.memory_space<vmem>>, vector<1x128x128xbf16>
    %53 = vector.shape_cast %52 : vector<1x128x128xbf16> to vector<128x128xbf16>
    %cst_68 = arith.constant dense<0.000000e+00> : vector<64x128xf32>
    %54 = tpu.matmul %51, %53, %cst_68 {dimension_numbers = #tpu.dot_dimension_numbers<[1], [0], [0], [1], [0, 0, 1, 1], [], []>} : vector<64x128xbf16>, vector<128x128xbf16>, vector<64x128xf32> -> vector<64x128xf32>
    %55 = arith.addf %46, %54 : vector<64x128xf32>
    %c0_69 = arith.constant 0 : index
    %c0_70 = arith.constant 0 : index
    %c0_71 = arith.constant 0 : index
    %c0_72 = arith.constant 0 : index
    %56 = vector.load %arg2[%c0_69, %c0_70, %c0_71, %c0_72] : memref<1x9x9x128xbf16, #tpu.memory_space<vmem>>, vector<1x9x9x128xbf16>
    %57 = arith.extf %56 : vector<1x9x9x128xbf16> to vector<1x9x9x128xf32>
    %58 = vector.broadcast %1 : vector<1x1x1x128xf32> to vector<1x9x9x128xf32>
    %59 = arith.subf %57, %58 : vector<1x9x9x128xf32>
    %60 = vector.broadcast %3 : vector<1x1x1x128xf32> to vector<1x9x9x128xf32>
    %61 = arith.mulf %59, %60 : vector<1x9x9x128xf32>
    %cst_73 = arith.constant 0.000000e+00 : f32
    %62 = vector.broadcast %cst_73 : f32 to vector<1x9x9x128xf32>
    %63 = arith.maximumf %61, %62 : vector<1x9x9x128xf32>
    %64 = arith.truncf %63 : vector<1x9x9x128xf32> to vector<1x9x9x128xbf16>
    %c0_74 = arith.constant 0 : index
    %c0_75 = arith.constant 0 : index
    %c0_76 = arith.constant 0 : index
    %c0_77 = arith.constant 0 : index
    %65 = vector.load %arg11[%c0_74, %c0_75, %c0_76, %c0_77] : memref<1x9x9x128xbf16, #tpu.memory_space<vmem>>, vector<1x9x9x128xbf16>
    tpu.vector_store %arg11[%c0_74, %c0_75, %c0_76, %c0_77], %64 {strides = array<i32>} : memref<1x9x9x128xbf16, #tpu.memory_space<vmem>>, vector<1x9x9x128xbf16>,
    %cst_78 = arith.constant 0.000000e+00 : bf16
    %66 = vector.broadcast %cst_78 : bf16 to vector<1x1x9x128xbf16>
    %c0_79 = arith.constant 0 : index
    %c0_80 = arith.constant 0 : index
    %c0_81 = arith.constant 0 : index
    %c0_82 = arith.constant 0 : index
    %67 = vector.load %arg11[%c0_79, %c0_80, %c0_81, %c0_82] : memref<1x9x9x128xbf16, #tpu.memory_space<vmem>>, vector<1x1x9x128xbf16>
    tpu.vector_store %arg11[%c0_79, %c0_80, %c0_81, %c0_82], %66 {strides = array<i32>} : memref<1x9x9x128xbf16, #tpu.memory_space<vmem>>, vector<1x1x9x128xbf16>,
    %cst_83 = arith.constant 0.000000e+00 : bf16
    %68 = vector.broadcast %cst_83 : bf16 to vector<1x9x1x128xbf16>
    %c0_84 = arith.constant 0 : index
    %c0_85 = arith.constant 0 : index
    %c8_86 = arith.constant 8 : index
    %c0_87 = arith.constant 0 : index
    %69 = vector.load %arg11[%c0_84, %c0_85, %c8_86, %c0_87] : memref<1x9x9x128xbf16, #tpu.memory_space<vmem>>, vector<1x9x1x128xbf16>
    tpu.vector_store %arg11[%c0_84, %c0_85, %c8_86, %c0_87], %68 {strides = array<i32>} : memref<1x9x9x128xbf16, #tpu.memory_space<vmem>>, vector<1x9x1x128xbf16>,
    %c0_88 = arith.constant 0 : index
    %c0_89 = arith.constant 0 : index
    %c0_90 = arith.constant 0 : index
    %c0_91 = arith.constant 0 : index
    %70 = vector.load %arg2[%c0_88, %c0_89, %c0_90, %c0_91] : memref<1x9x9x128xbf16, #tpu.memory_space<vmem>>, vector<1x8x8x128xbf16>
    %71 = arith.extf %70 : vector<1x8x8x128xbf16> to vector<1x8x8x128xf32>
    %72 = arith.addf %49, %71 : vector<1x8x8x128xf32>
    %c0_92 = arith.constant 0 : index
    %c0_93 = arith.constant 0 : index
    %c0_94 = arith.constant 0 : index
    %c0_95 = arith.constant 0 : index
    %73 = vector.load %arg11[%c0_92, %c0_93, %c0_94, %c0_95] : memref<1x9x9x128xbf16, #tpu.memory_space<vmem>>, vector<1x8x8x128xbf16>
    %74 = vector.shape_cast %73 : vector<1x8x8x128xbf16> to vector<64x128xbf16>
    %c1_96 = arith.constant 1 : index
    %c0_97 = arith.constant 0 : index
    %c0_98 = arith.constant 0 : index
    %75 = vector.load %arg7[%c1_96, %c0_97, %c0_98] : memref<9x128x128xbf16, #tpu.memory_space<vmem>>, vector<1x128x128xbf16>
    %76 = vector.shape_cast %75 : vector<1x128x128xbf16> to vector<128x128xbf16>
    %cst_99 = arith.constant dense<0.000000e+00> : vector<64x128xf32>
    %77 = tpu.matmul %74, %76, %cst_99 {dimension_numbers = #tpu.dot_dimension_numbers<[1], [0], [0], [1], [0, 0, 1, 1], [], []>} : vector<64x128xbf16>, vector<128x128xbf16>, vector<64x128xf32> -> vector<64x128xf32>
    %78 = arith.addf %55, %77 : vector<64x128xf32>
    %c0_100 = arith.constant 0 : index
    %c1_101 = arith.constant 1 : index
    %c0_102 = arith.constant 0 : index
    %c0_103 = arith.constant 0 : index
    %79 = vector.load %arg2[%c0_100, %c1_101, %c0_102, %c0_103] : memref<1x9x9x128xbf16, #tpu.memory_space<vmem>>, vector<1x8x8x128xbf16>
    %80 = arith.extf %79 : vector<1x8x8x128xbf16> to vector<1x8x8x128xf32>
    %81 = arith.addf %72, %80 : vector<1x8x8x128xf32>
    %c0_104 = arith.constant 0 : index
    %c1_105 = arith.constant 1 : index
    %c0_106 = arith.constant 0 : index
    %c0_107 = arith.constant 0 : index
    %82 = vector.load %arg11[%c0_104, %c1_105, %c0_106, %c0_107] : memref<1x9x9x128xbf16, #tpu.memory_space<vmem>>, vector<1x8x8x128xbf16>
    %83 = vector.shape_cast %82 : vector<1x8x8x128xbf16> to vector<64x128xbf16>
    %c7 = arith.constant 7 : index
    %c0_108 = arith.constant 0 : index
    %c0_109 = arith.constant 0 : index
    %84 = vector.load %arg7[%c7, %c0_108, %c0_109] : memref<9x128x128xbf16, #tpu.memory_space<vmem>>, vector<1x128x128xbf16>
    %85 = vector.shape_cast %84 : vector<1x128x128xbf16> to vector<128x128xbf16>
    %cst_110 = arith.constant dense<0.000000e+00> : vector<64x128xf32>
    %86 = tpu.matmul %83, %85, %cst_110 {dimension_numbers = #tpu.dot_dimension_numbers<[1], [0], [0], [1], [0, 0, 1, 1], [], []>} : vector<64x128xbf16>, vector<128x128xbf16>, vector<64x128xf32> -> vector<64x128xf32>
    %87 = arith.addf %78, %86 : vector<64x128xf32>
    %c0_111 = arith.constant 0 : index
    %c0_112 = arith.constant 0 : index
    %c0_113 = arith.constant 0 : index
    %c0_114 = arith.constant 0 : index
    %88 = vector.load %arg3[%c0_111, %c0_112, %c0_113, %c0_114] : memref<1x9x9x128xbf16, #tpu.memory_space<vmem>>, vector<1x9x9x128xbf16>
    %89 = arith.extf %88 : vector<1x9x9x128xbf16> to vector<1x9x9x128xf32>
    %90 = vector.broadcast %1 : vector<1x1x1x128xf32> to vector<1x9x9x128xf32>
    %91 = arith.subf %89, %90 : vector<1x9x9x128xf32>
    %92 = vector.broadcast %3 : vector<1x1x1x128xf32> to vector<1x9x9x128xf32>
    %93 = arith.mulf %91, %92 : vector<1x9x9x128xf32>
    %cst_115 = arith.constant 0.000000e+00 : f32
    %94 = vector.broadcast %cst_115 : f32 to vector<1x9x9x128xf32>
    %95 = arith.maximumf %93, %94 : vector<1x9x9x128xf32>
    %96 = arith.truncf %95 : vector<1x9x9x128xf32> to vector<1x9x9x128xbf16>
    %c0_116 = arith.constant 0 : index
    %c0_117 = arith.constant 0 : index
    %c0_118 = arith.constant 0 : index
    %c0_119 = arith.constant 0 : index
    %97 = vector.load %arg11[%c0_116, %c0_117, %c0_118, %c0_119] : memref<1x9x9x128xbf16, #tpu.memory_space<vmem>>, vector<1x9x9x128xbf16>
    tpu.vector_store %arg11[%c0_116, %c0_117, %c0_118, %c0_119], %96 {strides = array<i32>} : memref<1x9x9x128xbf16, #tpu.memory_space<vmem>>, vector<1x9x9x128xbf16>,
    %cst_120 = arith.constant 0.000000e+00 : bf16
    %98 = vector.broadcast %cst_120 : bf16 to vector<1x1x9x128xbf16>
    %c0_121 = arith.constant 0 : index
    %c8_122 = arith.constant 8 : index
    %c0_123 = arith.constant 0 : index
    %c0_124 = arith.constant 0 : index
    %99 = vector.load %arg11[%c0_121, %c8_122, %c0_123, %c0_124] : memref<1x9x9x128xbf16, #tpu.memory_space<vmem>>, vector<1x1x9x128xbf16>
    tpu.vector_store %arg11[%c0_121, %c8_122, %c0_123, %c0_124], %98 {strides = array<i32>} : memref<1x9x9x128xbf16, #tpu.memory_space<vmem>>, vector<1x1x9x128xbf16>,
    %cst_125 = arith.constant 0.000000e+00 : bf16
    %100 = vector.broadcast %cst_125 : bf16 to vector<1x9x1x128xbf16>
    %c0_126 = arith.constant 0 : index
    %c0_127 = arith.constant 0 : index
    %c0_128 = arith.constant 0 : index
    %c0_129 = arith.constant 0 : index
    %101 = vector.load %arg11[%c0_126, %c0_127, %c0_128, %c0_129] : memref<1x9x9x128xbf16, #tpu.memory_space<vmem>>, vector<1x9x1x128xbf16>
    tpu.vector_store %arg11[%c0_126, %c0_127, %c0_128, %c0_129], %100 {strides = array<i32>} : memref<1x9x9x128xbf16, #tpu.memory_space<vmem>>, vector<1x9x1x128xbf16>,
    %c0_130 = arith.constant 0 : index
    %c0_131 = arith.constant 0 : index
    %c0_132 = arith.constant 0 : index
    %c0_133 = arith.constant 0 : index
    %102 = vector.load %arg3[%c0_130, %c0_131, %c0_132, %c0_133] : memref<1x9x9x128xbf16, #tpu.memory_space<vmem>>, vector<1x8x8x128xbf16>
    %103 = arith.extf %102 : vector<1x8x8x128xbf16> to vector<1x8x8x128xf32>
    %104 = arith.addf %81, %103 : vector<1x8x8x128xf32>
    %c0_134 = arith.constant 0 : index
    %c0_135 = arith.constant 0 : index
    %c0_136 = arith.constant 0 : index
    %c0_137 = arith.constant 0 : index
    %105 = vector.load %arg11[%c0_134, %c0_135, %c0_136, %c0_137] : memref<1x9x9x128xbf16, #tpu.memory_space<vmem>>, vector<1x8x8x128xbf16>
    %106 = vector.shape_cast %105 : vector<1x8x8x128xbf16> to vector<64x128xbf16>
    %c3 = arith.constant 3 : index
    %c0_138 = arith.constant 0 : index
    %c0_139 = arith.constant 0 : index
    %107 = vector.load %arg7[%c3, %c0_138, %c0_139] : memref<9x128x128xbf16, #tpu.memory_space<vmem>>, vector<1x128x128xbf16>
    %108 = vector.shape_cast %107 : vector<1x128x128xbf16> to vector<128x128xbf16>
    %cst_140 = arith.constant dense<0.000000e+00> : vector<64x128xf32>
    %109 = tpu.matmul %106, %108, %cst_140 {dimension_numbers = #tpu.dot_dimension_numbers<[1], [0], [0], [1], [0, 0, 1, 1], [], []>} : vector<64x128xbf16>, vector<128x128xbf16>, vector<64x128xf32> -> vector<64x128xf32>
    %110 = arith.addf %87, %109 : vector<64x128xf32>
    %c0_141 = arith.constant 0 : index
    %c0_142 = arith.constant 0 : index
    %c1_143 = arith.constant 1 : index
    %c0_144 = arith.constant 0 : index
    %111 = vector.load %arg3[%c0_141, %c0_142, %c1_143, %c0_144] : memref<1x9x9x128xbf16, #tpu.memory_space<vmem>>, vector<1x8x8x128xbf16>
    %112 = arith.extf %111 : vector<1x8x8x128xbf16> to vector<1x8x8x128xf32>
    %113 = arith.addf %104, %112 : vector<1x8x8x128xf32>
    %c0_145 = arith.constant 0 : index
    %c0_146 = arith.constant 0 : index
    %c1_147 = arith.constant 1 : index
    %c0_148 = arith.constant 0 : index
    %114 = vector.load %arg11[%c0_145, %c0_146, %c1_147, %c0_148] : memref<1x9x9x128xbf16, #tpu.memory_space<vmem>>, vector<1x8x8x128xbf16>
    %115 = vector.shape_cast %114 : vector<1x8x8x128xbf16> to vector<64x128xbf16>
    %c5 = arith.constant 5 : index
    %c0_149 = arith.constant 0 : index
    %c0_150 = arith.constant 0 : index
    %116 = vector.load %arg7[%c5, %c0_149, %c0_150] : memref<9x128x128xbf16, #tpu.memory_space<vmem>>, vector<1x128x128xbf16>
    %117 = vector.shape_cast %116 : vector<1x128x128xbf16> to vector<128x128xbf16>
    %cst_151 = arith.constant dense<0.000000e+00> : vector<64x128xf32>
    %118 = tpu.matmul %115, %117, %cst_151 {dimension_numbers = #tpu.dot_dimension_numbers<[1], [0], [0], [1], [0, 0, 1, 1], [], []>} : vector<64x128xbf16>, vector<128x128xbf16>, vector<64x128xf32> -> vector<64x128xf32>
    %119 = arith.addf %110, %118 : vector<64x128xf32>
    %c0_152 = arith.constant 0 : index
    %c0_153 = arith.constant 0 : index
    %c0_154 = arith.constant 0 : index
    %c0_155 = arith.constant 0 : index
    %120 = vector.load %arg4[%c0_152, %c0_153, %c0_154, %c0_155] : memref<1x9x9x128xbf16, #tpu.memory_space<vmem>>, vector<1x9x9x128xbf16>
    %121 = arith.extf %120 : vector<1x9x9x128xbf16> to vector<1x9x9x128xf32>
    %122 = vector.broadcast %1 : vector<1x1x1x128xf32> to vector<1x9x9x128xf32>
    %123 = arith.subf %121, %122 : vector<1x9x9x128xf32>
    %124 = vector.broadcast %3 : vector<1x1x1x128xf32> to vector<1x9x9x128xf32>
    %125 = arith.mulf %123, %124 : vector<1x9x9x128xf32>
    %cst_156 = arith.constant 0.000000e+00 : f32
    %126 = vector.broadcast %cst_156 : f32 to vector<1x9x9x128xf32>
    %127 = arith.maximumf %125, %126 : vector<1x9x9x128xf32>
    %128 = arith.truncf %127 : vector<1x9x9x128xf32> to vector<1x9x9x128xbf16>
    %c0_157 = arith.constant 0 : index
    %c0_158 = arith.constant 0 : index
    %c0_159 = arith.constant 0 : index
    %c0_160 = arith.constant 0 : index
    %129 = vector.load %arg11[%c0_157, %c0_158, %c0_159, %c0_160] : memref<1x9x9x128xbf16, #tpu.memory_space<vmem>>, vector<1x9x9x128xbf16>
    tpu.vector_store %arg11[%c0_157, %c0_158, %c0_159, %c0_160], %128 {strides = array<i32>} : memref<1x9x9x128xbf16, #tpu.memory_space<vmem>>, vector<1x9x9x128xbf16>,
    %cst_161 = arith.constant 0.000000e+00 : bf16
    %130 = vector.broadcast %cst_161 : bf16 to vector<1x1x9x128xbf16>
    %c0_162 = arith.constant 0 : index
    %c8_163 = arith.constant 8 : index
    %c0_164 = arith.constant 0 : index
    %c0_165 = arith.constant 0 : index
    %131 = vector.load %arg11[%c0_162, %c8_163, %c0_164, %c0_165] : memref<1x9x9x128xbf16, #tpu.memory_space<vmem>>, vector<1x1x9x128xbf16>
    tpu.vector_store %arg11[%c0_162, %c8_163, %c0_164, %c0_165], %130 {strides = array<i32>} : memref<1x9x9x128xbf16, #tpu.memory_space<vmem>>, vector<1x1x9x128xbf16>,
    %cst_166 = arith.constant 0.000000e+00 : bf16
    %132 = vector.broadcast %cst_166 : bf16 to vector<1x9x1x128xbf16>
    %c0_167 = arith.constant 0 : index
    %c0_168 = arith.constant 0 : index
    %c8_169 = arith.constant 8 : index
    %c0_170 = arith.constant 0 : index
    %133 = vector.load %arg11[%c0_167, %c0_168, %c8_169, %c0_170] : memref<1x9x9x128xbf16, #tpu.memory_space<vmem>>, vector<1x9x1x128xbf16>
    tpu.vector_store %arg11[%c0_167, %c0_168, %c8_169, %c0_170], %132 {strides = array<i32>} : memref<1x9x9x128xbf16, #tpu.memory_space<vmem>>, vector<1x9x1x128xbf16>,
    %c0_171 = arith.constant 0 : index
    %c0_172 = arith.constant 0 : index
    %c0_173 = arith.constant 0 : index
    %c0_174 = arith.constant 0 : index
    %134 = vector.load %arg4[%c0_171, %c0_172, %c0_173, %c0_174] : memref<1x9x9x128xbf16, #tpu.memory_space<vmem>>, vector<1x8x8x128xbf16>
    %135 = arith.extf %134 : vector<1x8x8x128xbf16> to vector<1x8x8x128xf32>
    %136 = arith.addf %113, %135 : vector<1x8x8x128xf32>
    %c0_175 = arith.constant 0 : index
    %c0_176 = arith.constant 0 : index
    %c0_177 = arith.constant 0 : index
    %c0_178 = arith.constant 0 : index
    %137 = vector.load %arg11[%c0_175, %c0_176, %c0_177, %c0_178] : memref<1x9x9x128xbf16, #tpu.memory_space<vmem>>, vector<1x8x8x128xbf16>
    %138 = vector.shape_cast %137 : vector<1x8x8x128xbf16> to vector<64x128xbf16>
    %c4 = arith.constant 4 : index
    %c0_179 = arith.constant 0 : index
    %c0_180 = arith.constant 0 : index
    %139 = vector.load %arg7[%c4, %c0_179, %c0_180] : memref<9x128x128xbf16, #tpu.memory_space<vmem>>, vector<1x128x128xbf16>
    %140 = vector.shape_cast %139 : vector<1x128x128xbf16> to vector<128x128xbf16>
    %cst_181 = arith.constant dense<0.000000e+00> : vector<64x128xf32>
    %141 = tpu.matmul %138, %140, %cst_181 {dimension_numbers = #tpu.dot_dimension_numbers<[1], [0], [0], [1], [0, 0, 1, 1], [], []>} : vector<64x128xbf16>, vector<128x128xbf16>, vector<64x128xf32> -> vector<64x128xf32>
    %142 = arith.addf %119, %141 : vector<64x128xf32>
    %143 = vector.shape_cast %142 : vector<64x128xf32> to vector<1x8x8x128xf32>
    %144 = arith.truncf %143 : vector<1x8x8x128xf32> to vector<1x8x8x128xbf16>
    %c0_182 = arith.constant 0 : index
    %c0_183 = arith.constant 0 : index
    %c0_184 = arith.constant 0 : index
    %c0_185 = arith.constant 0 : index
    %145 = vector.load %arg8[%c0_182, %c0_183, %c0_184, %c0_185] : memref<1x8x8x128xbf16, #tpu.memory_space<vmem>>, vector<1x8x8x128xbf16>
    tpu.vector_store %arg8[%c0_182, %c0_183, %c0_184, %c0_185], %144 {strides = array<i32>} : memref<1x8x8x128xbf16, #tpu.memory_space<vmem>>, vector<1x8x8x128xbf16>,
    %cst_186 = arith.constant 0.111111112 : f32
    %146 = vector.broadcast %cst_186 : f32 to vector<1x8x8x128xf32>
    %147 = arith.mulf %136, %146 : vector<1x8x8x128xf32>
    %148 = arith.truncf %147 : vector<1x8x8x128xf32> to vector<1x8x8x128xbf16>
    %c0_187 = arith.constant 0 : index
    %c0_188 = arith.constant 0 : index
    %c0_189 = arith.constant 0 : index
    %c0_190 = arith.constant 0 : index
    %149 = vector.load %arg9[%c0_187, %c0_188, %c0_189, %c0_190] : memref<1x8x8x128xbf16, #tpu.memory_space<vmem>>, vector<1x8x8x128xbf16>
    tpu.vector_store %arg9[%c0_187, %c0_188, %c0_189, %c0_190], %148 {strides = array<i32>} : memref<1x8x8x128xbf16, #tpu.memory_space<vmem>>, vector<1x8x8x128xbf16>,
    %cst_191 = arith.constant dense<0.000000e+00> : vector<128xf32>
    %150 = vector.multi_reduction <add>, %142, %cst_191 [0] : vector<64x128xf32> to vector<128xf32>
    %151 = vector.shape_cast %150 : vector<128xf32> to vector<1x128xf32>
    %152 = arith.mulf %142, %142 : vector<64x128xf32>
    %cst_192 = arith.constant dense<0.000000e+00> : vector<128xf32>
    %153 = vector.multi_reduction <add>, %152, %cst_192 [0] : vector<64x128xf32> to vector<128xf32>
    %154 = vector.shape_cast %153 : vector<128xf32> to vector<1x128xf32>
    %155 = tpu.concatenate %151, %154 in 0 : vector<1x128xf32>, vector<1x128xf32> -> vector<2x128xf32>
    %c0_193 = arith.constant 0 : index
    %c0_194 = arith.constant 0 : index
    %c0_195 = arith.constant 0 : index
    %156 = vector.load %arg10[%c0_193, %c0_194, %c0_195] : memref<1x2x128xf32, #tpu.memory_space<vmem>>, vector<1x2x128xf32>
    %157 = vector.shape_cast %156 : vector<1x2x128xf32> to vector<2x128xf32>
    %158 = vector.shape_cast %155 : vector<2x128xf32> to vector<1x2x128xf32>
    tpu.vector_store %arg10[%c0_193, %c0_194, %c0_195], %158 {strides = array<i32>} : memref<1x2x128xf32, #tpu.memory_space<vmem>>, vector<1x2x128xf32>,
    return
  }
  func.func @transform_0(%arg0: i32) -> (i32, i32, i32, i32) {
    %c0_i32 = arith.constant 0 : i32
    %c0_i32_0 = arith.constant 0 : i32
    %c0_i32_1 = arith.constant 0 : i32
    %c0_i32_2 = arith.constant 0 : i32
    return %arg0, %c0_i32, %c0_i32_0, %c0_i32_1 : i32, i32, i32, i32
  }
  func.func @transform_1(%arg0: i32) -> (i32, i32, i32, i32) {
    %c0_i32 = arith.constant 0 : i32
    %c0_i32_0 = arith.constant 0 : i32
    %c0_i32_1 = arith.constant 0 : i32
    %c0_i32_2 = arith.constant 0 : i32
    return %arg0, %c0_i32, %c0_i32_0, %c0_i32_1 : i32, i32, i32, i32
  }
  func.func @transform_2(%arg0: i32) -> (i32, i32, i32, i32) {
    %c0_i32 = arith.constant 0 : i32
    %c0_i32_0 = arith.constant 0 : i32
    %c0_i32_1 = arith.constant 0 : i32
    %c0_i32_2 = arith.constant 0 : i32
    return %arg0, %c0_i32, %c0_i32_0, %c0_i32_1 : i32, i32, i32, i32
  }
  func.func @transform_3(%arg0: i32) -> (i32, i32, i32, i32) {
    %c0_i32 = arith.constant 0 : i32
    %c0_i32_0 = arith.constant 0 : i32
    %c0_i32_1 = arith.constant 0 : i32
    %c0_i32_2 = arith.constant 0 : i32
    return %arg0, %c0_i32, %c0_i32_0, %c0_i32_1 : i32, i32, i32, i32
  }
  func.func @transform_4(%arg0: i32) -> (i32, i32, i32) {
    %c0_i32 = arith.constant 0 : i32
    %c0_i32_0 = arith.constant 0 : i32
    %c0_i32_1 = arith.constant 0 : i32
    %c0_i32_2 = arith.constant 0 : i32
    return %c0_i32, %c0_i32_0, %c0_i32_1 : i32, i32, i32
  }
  func.func @transform_5(%arg0: i32) -> (i32, i32, i32) {
    %c0_i32 = arith.constant 0 : i32
    %c0_i32_0 = arith.constant 0 : i32
    %c0_i32_1 = arith.constant 0 : i32
    %c0_i32_2 = arith.constant 0 : i32
    return %c0_i32, %c0_i32_0, %c0_i32_1 : i32, i32, i32
  }
  func.func @transform_6(%arg0: i32) -> (i32, i32, i32) {
    %c0_i32 = arith.constant 0 : i32
    %c0_i32_0 = arith.constant 0 : i32
    %c0_i32_1 = arith.constant 0 : i32
    %c0_i32_2 = arith.constant 0 : i32
    return %c0_i32, %c0_i32_0, %c0_i32_1 : i32, i32, i32
  }
  func.func @transform_7(%arg0: i32) -> (i32, i32, i32, i32) {
    %c0_i32 = arith.constant 0 : i32
    %c0_i32_0 = arith.constant 0 : i32
    %c0_i32_1 = arith.constant 0 : i32
    %c0_i32_2 = arith.constant 0 : i32
    return %arg0, %c0_i32, %c0_i32_0, %c0_i32_1 : i32, i32, i32, i32
  }
  func.func @transform_8(%arg0: i32) -> (i32, i32, i32, i32) {
    %c0_i32 = arith.constant 0 : i32
    %c0_i32_0 = arith.constant 0 : i32
    %c0_i32_1 = arith.constant 0 : i32
    %c0_i32_2 = arith.constant 0 : i32
    return %arg0, %c0_i32, %c0_i32_0, %c0_i32_1 : i32, i32, i32, i32
  }
  func.func @transform_9(%arg0: i32) -> (i32, i32, i32) {
    %c0_i32 = arith.constant 0 : i32
    %c0_i32_0 = arith.constant 0 : i32
    %c0_i32_1 = arith.constant 0 : i32
    return %arg0, %c0_i32, %c0_i32_0 : i32, i32, i32
  }
}

module attributes {stable_mosaic.version = 11 : i64} {
  func.func @_conv1_kernel(%arg0: i32, %arg1: memref<1x8x8x128xbf16, #tpu.memory_space<vmem>>, %arg2: memref<1x1x128xf32, #tpu.memory_space<vmem>>, %arg3: memref<1x1x128xf32, #tpu.memory_space<vmem>>, %arg4: memref<9x128x128xbf16, #tpu.memory_space<vmem>>, %arg5: memref<1x8x8x128xbf16, #tpu.memory_space<vmem>>, %arg6: memref<1x8x8x128xf32, #tpu.memory_space<vmem>>, %arg7: memref<1x10x10x128xbf16, #tpu.memory_space<vmem>>) attributes {dimension_semantics = [#tpu.dimension_semantics<parallel>], iteration_bounds = array<i64: 2>, scalar_prefetch = 0 : i64, scratch_operands = 1 : i64, tpu.core_type = #tpu.core_type<tc>, window_params = [{transform_indices = @transform_0, window_bounds = array<i64: 1, 8, 8, 128>}, {pipeline_mode = #tpu.pipeline_mode<synchronous>, transform_indices = @transform_1, window_bounds = array<i64: 1, 1, 128>}, {pipeline_mode = #tpu.pipeline_mode<synchronous>, transform_indices = @transform_2, window_bounds = array<i64: 1, 1, 128>}, {pipeline_mode = #tpu.pipeline_mode<synchronous>, transform_indices = @transform_3, window_bounds = array<i64: 9, 128, 128>}, {transform_indices = @transform_4, window_bounds = array<i64: 1, 8, 8, 128>}, {transform_indices = @transform_5, window_bounds = array<i64: 1, 8, 8, 128>}]} {
    %c0 = arith.constant 0 : index
    %c0_0 = arith.constant 0 : index
    %c0_1 = arith.constant 0 : index
    %0 = vector.load %arg2[%c0, %c0_0, %c0_1] : memref<1x1x128xf32, #tpu.memory_space<vmem>>, vector<1x1x128xf32>
    %1 = vector.shape_cast %0 : vector<1x1x128xf32> to vector<1x1x1x128xf32>
    %c0_2 = arith.constant 0 : index
    %c0_3 = arith.constant 0 : index
    %c0_4 = arith.constant 0 : index
    %2 = vector.load %arg3[%c0_2, %c0_3, %c0_4] : memref<1x1x128xf32, #tpu.memory_space<vmem>>, vector<1x1x128xf32>
    %3 = vector.shape_cast %2 : vector<1x1x128xf32> to vector<1x1x1x128xf32>
    %cst = arith.constant 0.000000e+00 : bf16
    %4 = vector.broadcast %cst : bf16 to vector<1x10x10x128xbf16>
    %c0_5 = arith.constant 0 : index
    %c0_6 = arith.constant 0 : index
    %c0_7 = arith.constant 0 : index
    %c0_8 = arith.constant 0 : index
    %5 = vector.load %arg7[%c0_5, %c0_6, %c0_7, %c0_8] : memref<1x10x10x128xbf16, #tpu.memory_space<vmem>>, vector<1x10x10x128xbf16>
    tpu.vector_store %arg7[%c0_5, %c0_6, %c0_7, %c0_8], %4 {strides = array<i32>} : memref<1x10x10x128xbf16, #tpu.memory_space<vmem>>, vector<1x10x10x128xbf16>,
    %c0_9 = arith.constant 0 : index
    %c0_10 = arith.constant 0 : index
    %c0_11 = arith.constant 0 : index
    %c0_12 = arith.constant 0 : index
    %6 = vector.load %arg1[%c0_9, %c0_10, %c0_11, %c0_12] : memref<1x8x8x128xbf16, #tpu.memory_space<vmem>>, vector<1x8x8x128xbf16>
    %7 = arith.extf %6 : vector<1x8x8x128xbf16> to vector<1x8x8x128xf32>
    %8 = vector.broadcast %1 : vector<1x1x1x128xf32> to vector<1x8x8x128xf32>
    %9 = arith.subf %7, %8 : vector<1x8x8x128xf32>
    %10 = vector.broadcast %3 : vector<1x1x1x128xf32> to vector<1x8x8x128xf32>
    %11 = arith.mulf %9, %10 : vector<1x8x8x128xf32>
    %cst_13 = arith.constant 0.000000e+00 : f32
    %12 = vector.broadcast %cst_13 : f32 to vector<1x8x8x128xf32>
    %13 = arith.maximumf %11, %12 : vector<1x8x8x128xf32>
    %14 = arith.truncf %13 : vector<1x8x8x128xf32> to vector<1x8x8x128xbf16>
    %c0_14 = arith.constant 0 : index
    %c1 = arith.constant 1 : index
    %c1_15 = arith.constant 1 : index
    %c0_16 = arith.constant 0 : index
    %15 = vector.load %arg7[%c0_14, %c1, %c1_15, %c0_16] : memref<1x10x10x128xbf16, #tpu.memory_space<vmem>>, vector<1x8x8x128xbf16>
    tpu.vector_store %arg7[%c0_14, %c1, %c1_15, %c0_16], %14 {strides = array<i32>} : memref<1x10x10x128xbf16, #tpu.memory_space<vmem>>, vector<1x8x8x128xbf16>,
    %cst_17 = arith.constant 0.000000e+00 : f32
    %16 = vector.broadcast %cst_17 : f32 to vector<64x128xf32>
    %c0_18 = arith.constant 0 : index
    %c0_19 = arith.constant 0 : index
    %c0_20 = arith.constant 0 : index
    %c0_21 = arith.constant 0 : index
    %17 = vector.load %arg7[%c0_18, %c0_19, %c0_20, %c0_21] : memref<1x10x10x128xbf16, #tpu.memory_space<vmem>>, vector<1x8x8x128xbf16>
    %18 = vector.shape_cast %17 : vector<1x8x8x128xbf16> to vector<64x128xbf16>
    %c0_22 = arith.constant 0 : index
    %c0_23 = arith.constant 0 : index
    %c0_24 = arith.constant 0 : index
    %19 = vector.load %arg4[%c0_22, %c0_23, %c0_24] : memref<9x128x128xbf16, #tpu.memory_space<vmem>>, vector<1x128x128xbf16>
    %20 = vector.shape_cast %19 : vector<1x128x128xbf16> to vector<128x128xbf16>
    %cst_25 = arith.constant dense<0.000000e+00> : vector<64x128xf32>
    %21 = tpu.matmul %18, %20, %cst_25 {dimension_numbers = #tpu.dot_dimension_numbers<[1], [0], [0], [1], [0, 0, 1, 1], [], []>} : vector<64x128xbf16>, vector<128x128xbf16>, vector<64x128xf32> -> vector<64x128xf32>
    %22 = arith.addf %16, %21 : vector<64x128xf32>
    %c0_26 = arith.constant 0 : index
    %c0_27 = arith.constant 0 : index
    %c1_28 = arith.constant 1 : index
    %c0_29 = arith.constant 0 : index
    %23 = vector.load %arg7[%c0_26, %c0_27, %c1_28, %c0_29] : memref<1x10x10x128xbf16, #tpu.memory_space<vmem>>, vector<1x8x8x128xbf16>
    %24 = vector.shape_cast %23 : vector<1x8x8x128xbf16> to vector<64x128xbf16>
    %c1_30 = arith.constant 1 : index
    %c0_31 = arith.constant 0 : index
    %c0_32 = arith.constant 0 : index
    %25 = vector.load %arg4[%c1_30, %c0_31, %c0_32] : memref<9x128x128xbf16, #tpu.memory_space<vmem>>, vector<1x128x128xbf16>
    %26 = vector.shape_cast %25 : vector<1x128x128xbf16> to vector<128x128xbf16>
    %cst_33 = arith.constant dense<0.000000e+00> : vector<64x128xf32>
    %27 = tpu.matmul %24, %26, %cst_33 {dimension_numbers = #tpu.dot_dimension_numbers<[1], [0], [0], [1], [0, 0, 1, 1], [], []>} : vector<64x128xbf16>, vector<128x128xbf16>, vector<64x128xf32> -> vector<64x128xf32>
    %28 = arith.addf %22, %27 : vector<64x128xf32>
    %c0_34 = arith.constant 0 : index
    %c0_35 = arith.constant 0 : index
    %c2 = arith.constant 2 : index
    %c0_36 = arith.constant 0 : index
    %29 = vector.load %arg7[%c0_34, %c0_35, %c2, %c0_36] : memref<1x10x10x128xbf16, #tpu.memory_space<vmem>>, vector<1x8x8x128xbf16>
    %30 = vector.shape_cast %29 : vector<1x8x8x128xbf16> to vector<64x128xbf16>
    %c2_37 = arith.constant 2 : index
    %c0_38 = arith.constant 0 : index
    %c0_39 = arith.constant 0 : index
    %31 = vector.load %arg4[%c2_37, %c0_38, %c0_39] : memref<9x128x128xbf16, #tpu.memory_space<vmem>>, vector<1x128x128xbf16>
    %32 = vector.shape_cast %31 : vector<1x128x128xbf16> to vector<128x128xbf16>
    %cst_40 = arith.constant dense<0.000000e+00> : vector<64x128xf32>
    %33 = tpu.matmul %30, %32, %cst_40 {dimension_numbers = #tpu.dot_dimension_numbers<[1], [0], [0], [1], [0, 0, 1, 1], [], []>} : vector<64x128xbf16>, vector<128x128xbf16>, vector<64x128xf32> -> vector<64x128xf32>
    %34 = arith.addf %28, %33 : vector<64x128xf32>
    %c0_41 = arith.constant 0 : index
    %c1_42 = arith.constant 1 : index
    %c0_43 = arith.constant 0 : index
    %c0_44 = arith.constant 0 : index
    %35 = vector.load %arg7[%c0_41, %c1_42, %c0_43, %c0_44] : memref<1x10x10x128xbf16, #tpu.memory_space<vmem>>, vector<1x8x8x128xbf16>
    %36 = vector.shape_cast %35 : vector<1x8x8x128xbf16> to vector<64x128xbf16>
    %c3 = arith.constant 3 : index
    %c0_45 = arith.constant 0 : index
    %c0_46 = arith.constant 0 : index
    %37 = vector.load %arg4[%c3, %c0_45, %c0_46] : memref<9x128x128xbf16, #tpu.memory_space<vmem>>, vector<1x128x128xbf16>
    %38 = vector.shape_cast %37 : vector<1x128x128xbf16> to vector<128x128xbf16>
    %cst_47 = arith.constant dense<0.000000e+00> : vector<64x128xf32>
    %39 = tpu.matmul %36, %38, %cst_47 {dimension_numbers = #tpu.dot_dimension_numbers<[1], [0], [0], [1], [0, 0, 1, 1], [], []>} : vector<64x128xbf16>, vector<128x128xbf16>, vector<64x128xf32> -> vector<64x128xf32>
    %40 = arith.addf %34, %39 : vector<64x128xf32>
    %c0_48 = arith.constant 0 : index
    %c1_49 = arith.constant 1 : index
    %c1_50 = arith.constant 1 : index
    %c0_51 = arith.constant 0 : index
    %41 = vector.load %arg7[%c0_48, %c1_49, %c1_50, %c0_51] : memref<1x10x10x128xbf16, #tpu.memory_space<vmem>>, vector<1x8x8x128xbf16>
    %42 = vector.shape_cast %41 : vector<1x8x8x128xbf16> to vector<64x128xbf16>
    %c4 = arith.constant 4 : index
    %c0_52 = arith.constant 0 : index
    %c0_53 = arith.constant 0 : index
    %43 = vector.load %arg4[%c4, %c0_52, %c0_53] : memref<9x128x128xbf16, #tpu.memory_space<vmem>>, vector<1x128x128xbf16>
    %44 = vector.shape_cast %43 : vector<1x128x128xbf16> to vector<128x128xbf16>
    %cst_54 = arith.constant dense<0.000000e+00> : vector<64x128xf32>
    %45 = tpu.matmul %42, %44, %cst_54 {dimension_numbers = #tpu.dot_dimension_numbers<[1], [0], [0], [1], [0, 0, 1, 1], [], []>} : vector<64x128xbf16>, vector<128x128xbf16>, vector<64x128xf32> -> vector<64x128xf32>
    %46 = arith.addf %40, %45 : vector<64x128xf32>
    %c0_55 = arith.constant 0 : index
    %c1_56 = arith.constant 1 : index
    %c2_57 = arith.constant 2 : index
    %c0_58 = arith.constant 0 : index
    %47 = vector.load %arg7[%c0_55, %c1_56, %c2_57, %c0_58] : memref<1x10x10x128xbf16, #tpu.memory_space<vmem>>, vector<1x8x8x128xbf16>
    %48 = vector.shape_cast %47 : vector<1x8x8x128xbf16> to vector<64x128xbf16>
    %c5 = arith.constant 5 : index
    %c0_59 = arith.constant 0 : index
    %c0_60 = arith.constant 0 : index
    %49 = vector.load %arg4[%c5, %c0_59, %c0_60] : memref<9x128x128xbf16, #tpu.memory_space<vmem>>, vector<1x128x128xbf16>
    %50 = vector.shape_cast %49 : vector<1x128x128xbf16> to vector<128x128xbf16>
    %cst_61 = arith.constant dense<0.000000e+00> : vector<64x128xf32>
    %51 = tpu.matmul %48, %50, %cst_61 {dimension_numbers = #tpu.dot_dimension_numbers<[1], [0], [0], [1], [0, 0, 1, 1], [], []>} : vector<64x128xbf16>, vector<128x128xbf16>, vector<64x128xf32> -> vector<64x128xf32>
    %52 = arith.addf %46, %51 : vector<64x128xf32>
    %c0_62 = arith.constant 0 : index
    %c2_63 = arith.constant 2 : index
    %c0_64 = arith.constant 0 : index
    %c0_65 = arith.constant 0 : index
    %53 = vector.load %arg7[%c0_62, %c2_63, %c0_64, %c0_65] : memref<1x10x10x128xbf16, #tpu.memory_space<vmem>>, vector<1x8x8x128xbf16>
    %54 = vector.shape_cast %53 : vector<1x8x8x128xbf16> to vector<64x128xbf16>
    %c6 = arith.constant 6 : index
    %c0_66 = arith.constant 0 : index
    %c0_67 = arith.constant 0 : index
    %55 = vector.load %arg4[%c6, %c0_66, %c0_67] : memref<9x128x128xbf16, #tpu.memory_space<vmem>>, vector<1x128x128xbf16>
    %56 = vector.shape_cast %55 : vector<1x128x128xbf16> to vector<128x128xbf16>
    %cst_68 = arith.constant dense<0.000000e+00> : vector<64x128xf32>
    %57 = tpu.matmul %54, %56, %cst_68 {dimension_numbers = #tpu.dot_dimension_numbers<[1], [0], [0], [1], [0, 0, 1, 1], [], []>} : vector<64x128xbf16>, vector<128x128xbf16>, vector<64x128xf32> -> vector<64x128xf32>
    %58 = arith.addf %52, %57 : vector<64x128xf32>
    %c0_69 = arith.constant 0 : index
    %c2_70 = arith.constant 2 : index
    %c1_71 = arith.constant 1 : index
    %c0_72 = arith.constant 0 : index
    %59 = vector.load %arg7[%c0_69, %c2_70, %c1_71, %c0_72] : memref<1x10x10x128xbf16, #tpu.memory_space<vmem>>, vector<1x8x8x128xbf16>
    %60 = vector.shape_cast %59 : vector<1x8x8x128xbf16> to vector<64x128xbf16>
    %c7 = arith.constant 7 : index
    %c0_73 = arith.constant 0 : index
    %c0_74 = arith.constant 0 : index
    %61 = vector.load %arg4[%c7, %c0_73, %c0_74] : memref<9x128x128xbf16, #tpu.memory_space<vmem>>, vector<1x128x128xbf16>
    %62 = vector.shape_cast %61 : vector<1x128x128xbf16> to vector<128x128xbf16>
    %cst_75 = arith.constant dense<0.000000e+00> : vector<64x128xf32>
    %63 = tpu.matmul %60, %62, %cst_75 {dimension_numbers = #tpu.dot_dimension_numbers<[1], [0], [0], [1], [0, 0, 1, 1], [], []>} : vector<64x128xbf16>, vector<128x128xbf16>, vector<64x128xf32> -> vector<64x128xf32>
    %64 = arith.addf %58, %63 : vector<64x128xf32>
    %c0_76 = arith.constant 0 : index
    %c2_77 = arith.constant 2 : index
    %c2_78 = arith.constant 2 : index
    %c0_79 = arith.constant 0 : index
    %65 = vector.load %arg7[%c0_76, %c2_77, %c2_78, %c0_79] : memref<1x10x10x128xbf16, #tpu.memory_space<vmem>>, vector<1x8x8x128xbf16>
    %66 = vector.shape_cast %65 : vector<1x8x8x128xbf16> to vector<64x128xbf16>
    %c8 = arith.constant 8 : index
    %c0_80 = arith.constant 0 : index
    %c0_81 = arith.constant 0 : index
    %67 = vector.load %arg4[%c8, %c0_80, %c0_81] : memref<9x128x128xbf16, #tpu.memory_space<vmem>>, vector<1x128x128xbf16>
    %68 = vector.shape_cast %67 : vector<1x128x128xbf16> to vector<128x128xbf16>
    %cst_82 = arith.constant dense<0.000000e+00> : vector<64x128xf32>
    %69 = tpu.matmul %66, %68, %cst_82 {dimension_numbers = #tpu.dot_dimension_numbers<[1], [0], [0], [1], [0, 0, 1, 1], [], []>} : vector<64x128xbf16>, vector<128x128xbf16>, vector<64x128xf32> -> vector<64x128xf32>
    %70 = arith.addf %64, %69 : vector<64x128xf32>
    %71 = vector.shape_cast %70 : vector<64x128xf32> to vector<1x8x8x128xf32>
    %c0_83 = arith.constant 0 : index
    %c0_84 = arith.constant 0 : index
    %c0_85 = arith.constant 0 : index
    %c0_86 = arith.constant 0 : index
    %72 = vector.load %arg5[%c0_83, %c0_84, %c0_85, %c0_86] : memref<1x8x8x128xbf16, #tpu.memory_space<vmem>>, vector<1x8x8x128xbf16>
    %73 = arith.extf %72 : vector<1x8x8x128xbf16> to vector<1x8x8x128xf32>
    %74 = arith.addf %71, %73 : vector<1x8x8x128xf32>
    %c0_87 = arith.constant 0 : index
    %c0_88 = arith.constant 0 : index
    %c0_89 = arith.constant 0 : index
    %c0_90 = arith.constant 0 : index
    %75 = vector.load %arg6[%c0_87, %c0_88, %c0_89, %c0_90] : memref<1x8x8x128xf32, #tpu.memory_space<vmem>>, vector<1x8x8x128xf32>
    tpu.vector_store %arg6[%c0_87, %c0_88, %c0_89, %c0_90], %74 {strides = array<i32>} : memref<1x8x8x128xf32, #tpu.memory_space<vmem>>, vector<1x8x8x128xf32>,
    return
  }
  func.func @transform_0(%arg0: i32) -> (i32, i32, i32, i32) {
    %c0_i32 = arith.constant 0 : i32
    %c0_i32_0 = arith.constant 0 : i32
    %c0_i32_1 = arith.constant 0 : i32
    %c0_i32_2 = arith.constant 0 : i32
    return %arg0, %c0_i32, %c0_i32_0, %c0_i32_1 : i32, i32, i32, i32
  }
  func.func @transform_1(%arg0: i32) -> (i32, i32, i32) {
    %c0_i32 = arith.constant 0 : i32
    %c0_i32_0 = arith.constant 0 : i32
    %c0_i32_1 = arith.constant 0 : i32
    %c0_i32_2 = arith.constant 0 : i32
    return %c0_i32, %c0_i32_0, %c0_i32_1 : i32, i32, i32
  }
  func.func @transform_2(%arg0: i32) -> (i32, i32, i32) {
    %c0_i32 = arith.constant 0 : i32
    %c0_i32_0 = arith.constant 0 : i32
    %c0_i32_1 = arith.constant 0 : i32
    %c0_i32_2 = arith.constant 0 : i32
    return %c0_i32, %c0_i32_0, %c0_i32_1 : i32, i32, i32
  }
  func.func @transform_3(%arg0: i32) -> (i32, i32, i32) {
    %c0_i32 = arith.constant 0 : i32
    %c0_i32_0 = arith.constant 0 : i32
    %c0_i32_1 = arith.constant 0 : i32
    %c0_i32_2 = arith.constant 0 : i32
    return %c0_i32, %c0_i32_0, %c0_i32_1 : i32, i32, i32
  }
  func.func @transform_4(%arg0: i32) -> (i32, i32, i32, i32) {
    %c0_i32 = arith.constant 0 : i32
    %c0_i32_0 = arith.constant 0 : i32
    %c0_i32_1 = arith.constant 0 : i32
    %c0_i32_2 = arith.constant 0 : i32
    return %arg0, %c0_i32, %c0_i32_0, %c0_i32_1 : i32, i32, i32, i32
  }
  func.func @transform_5(%arg0: i32) -> (i32, i32, i32, i32) {
    %c0_i32 = arith.constant 0 : i32
    %c0_i32_0 = arith.constant 0 : i32
    %c0_i32_1 = arith.constant 0 : i32
    %c0_i32_2 = arith.constant 0 : i32
    return %arg0, %c0_i32, %c0_i32_0, %c0_i32_1 : i32, i32, i32, i32
  }
}

</mosaic_0001>

<bundles_post_ra>
// kernel: downsample_block_forward.3
= control target key start
LH: loop header
LB: loop body
LE: loop exit
PB: predicated region body
PF: predicated region fallthrough
CT: control target
= control target key end

     0   :  { %v297_v0 = vmov 0.0   ;;  %s523_s0 = inlined_call_operand.vmem [shape: f32[512,128], index: 0, kind: input, shape index: {}]   ;;  %s524_s1 = inlined_call_operand.vmem [shape: f32[1,128], index: 1, kind: output, shape index: {0}]   ;;  %s525_s2 = inlined_call_operand.vmem [shape: f32[1,128], index: 2, kind: output, shape index: {1}]  }
   0x1   :  { %14 = vst [vmem:[%s524_s1] sm:$0x1] %v297_v0  ;;  %v16_v1 = vld [vmem:[%s523_s0] sm:$0xff]  ;;  %v17_v2 = vld [vmem:[%s523_s0 + $0x8] sm:$0xff]  ;;  %v18_v3 = vld [vmem:[%s523_s0 + $0x10] sm:$0xff] }
   0x2   :  { %15 = vst [vmem:[%s525_s2] sm:$0x1] %v297_v0  ;;  %v19_v4 = vld [vmem:[%s523_s0 + $0x18] sm:$0xff]  ;;  %v81_v5 = vadd.f32 %v17_v2, %v16_v1  ;;  %v153_v6 = vmul.f32 %v16_v1, %v16_v1  ;;  %v154_v7 = vmul.f32 %v17_v2, %v17_v2  ;;  %v155_v8 = vmul.f32 %v18_v3, %v18_v3  ;;  %v20_v9 = vld [vmem:[%s523_s0 + $0x20] sm:$0xff]  ;;  %v21_v13 = vld [vmem:[%s523_s0 + $0x28] sm:$0xff] }
   0x3   :  { %v156_v11 = vmul.f32 %v19_v4, %v19_v4  ;;  %v157_v15 = vmul.f32 %v20_v9, %v20_v9  ;;  %v22_v17 = vld [vmem:[%s523_s0 + $0x30] sm:$0xff]  ;;  %v158_v19 = vmul.f32 %v21_v13, %v21_v13  ;;  %v23_v21 = vld [vmem:[%s523_s0 + $0x38] sm:$0xff]  ;;  %v24_v25 = vld [vmem:[%s523_s0 + $0x40] sm:$0xff] }
   0x4   :  { %v82_v10 = vadd.f32 %v81_v5, %v18_v3  ;;  %v217_v12 = vadd.f32 %v154_v7, %v153_v6  ;;  %v159_v23 = vmul.f32 %v22_v17, %v22_v17  ;;  %v160_v27 = vmul.f32 %v23_v21, %v23_v21  ;;  %v25_v29 = vld [vmem:[%s523_s0 + $0x48] sm:$0xff]  ;;  %v26_v33 = vld [vmem:[%s523_s0 + $0x50] sm:$0xff]  ;;  %v27_v37 = vld [vmem:[%s523_s0 + $0x58] sm:$0xff] }
   0x5   :  { %v161_v31 = vmul.f32 %v24_v25, %v24_v25  ;;  %v162_v35 = vmul.f32 %v25_v29, %v25_v29  ;;  %v163_v39 = vmul.f32 %v26_v33, %v26_v33  ;;  %v28_v41 = vld [vmem:[%s523_s0 + $0x60] sm:$0xff]  ;;  %v164_v43 = vmul.f32 %v27_v37, %v27_v37  ;;  %v29_v45 = vld [vmem:[%s523_s0 + $0x68] sm:$0xff]  ;;  %v30_v49 = vld [vmem:[%s523_s0 + $0x70] sm:$0xff] }
   0x6   :  { %v83_v14 = vadd.f32 %v82_v10, %v19_v4  ;;  %v218_v16 = vadd.f32 %v217_v12, %v155_v8  ;;  %v165_v47 = vmul.f32 %v28_v41, %v28_v41  ;;  %v166_v51 = vmul.f32 %v29_v45, %v29_v45  ;;  %v31_v53 = vld [vmem:[%s523_s0 + $0x78] sm:$0xff]  ;;  %v32_v57 = vld [vmem:[%s523_s0 + $0x80] sm:$0xff]  ;;  %v33_v61 = vld [vmem:[%s523_s0 + $0x88] sm:$0xff] }
   0x7   :  { %v167_v55 = vmul.f32 %v30_v49, %v30_v49  ;;  %v168_v59 = vmul.f32 %v31_v53, %v31_v53  ;;  %v169_v63 = vmul.f32 %v32_v57, %v32_v57  ;;  %v34_v1 = vld [vmem:[%s523_s0 + $0x90] sm:$0xff]  ;;  %v170_v3 = vmul.f32 %v33_v61, %v33_v61  ;;  %v35_v5 = vld [vmem:[%s523_s0 + $0x98] sm:$0xff] }
   0x8   :  { %v84_v18 = vadd.f32 %v83_v14, %v20_v9  ;;  %v219_v20 = vadd.f32 %v218_v16, %v156_v11  ;;  %v171_v7 = vmul.f32 %v34_v1, %v34_v1  ;;  %v36_v9 = vld [vmem:[%s523_s0 + $0xa0] sm:$0xff]  ;;  %v172_v11 = vmul.f32 %v35_v5, %v35_v5 }
   0xa   :  { %v85_v22 = vadd.f32 %v84_v18, %v21_v13  ;;  %v220_v24 = vadd.f32 %v219_v20, %v157_v15  ;;  %v37_v13 = vld [vmem:[%s523_s0 + $0xa8] sm:$0xff]  ;;  %v173_v15 = vmul.f32 %v36_v9, %v36_v9 }
   0xc   :  { %v86_v26 = vadd.f32 %v85_v22, %v22_v17  ;;  %v221_v28 = vadd.f32 %v220_v24, %v158_v19  ;;  %v38_v17 = vld [vmem:[%s523_s0 + $0xb0] sm:$0xff]  ;;  %v174_v19 = vmul.f32 %v37_v13, %v37_v13 }
   0xe   :  { %v87_v30 = vadd.f32 %v86_v26, %v23_v21  ;;  %v222_v32 = vadd.f32 %v221_v28, %v159_v23  ;;  %v39_v21 = vld [vmem:[%s523_s0 + $0xb8] sm:$0xff]  ;;  %v175_v23 = vmul.f32 %v38_v17, %v38_v17 }
  0x10   :  { %v88_v34 = vadd.f32 %v87_v30, %v24_v25  ;;  %v223_v36 = vadd.f32 %v222_v32, %v160_v27  ;;  %v40_v25 = vld [vmem:[%s523_s0 + $0xc0] sm:$0xff]  ;;  %v176_v27 = vmul.f32 %v39_v21, %v39_v21 }
  0x12   :  { %v89_v38 = vadd.f32 %v88_v34, %v25_v29  ;;  %v224_v40 = vadd.f32 %v223_v36, %v161_v31  ;;  %v41_v29 = vld [vmem:[%s523_s0 + $0xc8] sm:$0xff]  ;;  %v177_v31 = vmul.f32 %v40_v25, %v40_v25 }
  0x14   :  { %v90_v42 = vadd.f32 %v89_v38, %v26_v33  ;;  %v225_v44 = vadd.f32 %v224_v40, %v162_v35  ;;  %v42_v33 = vld [vmem:[%s523_s0 + $0xd0] sm:$0xff]  ;;  %v178_v35 = vmul.f32 %v41_v29, %v41_v29 }
  0x16   :  { %v91_v46 = vadd.f32 %v90_v42, %v27_v37  ;;  %v226_v48 = vadd.f32 %v225_v44, %v163_v39  ;;  %v43_v37 = vld [vmem:[%s523_s0 + $0xd8] sm:$0xff]  ;;  %v179_v39 = vmul.f32 %v42_v33, %v42_v33 }
  0x18   :  { %v92_v50 = vadd.f32 %v91_v46, %v28_v41  ;;  %v227_v52 = vadd.f32 %v226_v48, %v164_v43  ;;  %v44_v41 = vld [vmem:[%s523_s0 + $0xe0] sm:$0xff]  ;;  %v180_v43 = vmul.f32 %v43_v37, %v43_v37 }
  0x1a   :  { %v93_v54 = vadd.f32 %v92_v50, %v29_v45  ;;  %v228_v56 = vadd.f32 %v227_v52, %v165_v47  ;;  %v45_v45 = vld [vmem:[%s523_s0 + $0xe8] sm:$0xff]  ;;  %v181_v47 = vmul.f32 %v44_v41, %v44_v41 }
  0x1c   :  { %v94_v58 = vadd.f32 %v93_v54, %v30_v49  ;;  %v229_v60 = vadd.f32 %v228_v56, %v166_v51  ;;  %v46_v49 = vld [vmem:[%s523_s0 + $0xf0] sm:$0xff]  ;;  %v182_v51 = vmul.f32 %v45_v45, %v45_v45 }
  0x1e   :  { %v95_v62 = vadd.f32 %v94_v58, %v31_v53  ;;  %v230_v0 = vadd.f32 %v229_v60, %v167_v55  ;;  %v47_v53 = vld [vmem:[%s523_s0 + $0xf8] sm:$0xff]  ;;  %v183_v55 = vmul.f32 %v46_v49, %v46_v49 }
  0x20   :  { %v96_v2 = vadd.f32 %v95_v62, %v32_v57  ;;  %v231_v4 = vadd.f32 %v230_v0, %v168_v59  ;;  %v48_v57 = vld [vmem:[%s523_s0 + $0x100] sm:$0xff]  ;;  %v184_v59 = vmul.f32 %v47_v53, %v47_v53 }
  0x22   :  { %v97_v6 = vadd.f32 %v96_v2, %v33_v61  ;;  %v232_v8 = vadd.f32 %v231_v4, %v169_v63  ;;  %v49_v61 = vld [vmem:[%s523_s0 + $0x108] sm:$0xff]  ;;  %v185_v63 = vmul.f32 %v48_v57, %v48_v57 }
  0x24   :  { %v98_v10 = vadd.f32 %v97_v6, %v34_v1  ;;  %v233_v12 = vadd.f32 %v232_v8, %v170_v3  ;;  %v50_v1 = vld [vmem:[%s523_s0 + $0x110] sm:$0xff]  ;;  %v186_v3 = vmul.f32 %v49_v61, %v49_v61 }
  0x26   :  { %v99_v14 = vadd.f32 %v98_v10, %v35_v5  ;;  %v234_v16 = vadd.f32 %v233_v12, %v171_v7  ;;  %v51_v5 = vld [vmem:[%s523_s0 + $0x118] sm:$0xff]  ;;  %v187_v7 = vmul.f32 %v50_v1, %v50_v1 }
  0x28   :  { %v100_v18 = vadd.f32 %v99_v14, %v36_v9  ;;  %v235_v20 = vadd.f32 %v234_v16, %v172_v11  ;;  %v52_v9 = vld [vmem:[%s523_s0 + $0x120] sm:$0xff]  ;;  %v188_v11 = vmul.f32 %v51_v5, %v51_v5 }
  0x2a   :  { %v101_v22 = vadd.f32 %v100_v18, %v37_v13  ;;  %v236_v24 = vadd.f32 %v235_v20, %v173_v15  ;;  %v53_v13 = vld [vmem:[%s523_s0 + $0x128] sm:$0xff]  ;;  %v189_v15 = vmul.f32 %v52_v9, %v52_v9 }
  0x2c   :  { %v102_v26 = vadd.f32 %v101_v22, %v38_v17  ;;  %v237_v28 = vadd.f32 %v236_v24, %v174_v19  ;;  %v54_v17 = vld [vmem:[%s523_s0 + $0x130] sm:$0xff]  ;;  %v190_v19 = vmul.f32 %v53_v13, %v53_v13 }
  0x2e   :  { %v103_v30 = vadd.f32 %v102_v26, %v39_v21  ;;  %v238_v32 = vadd.f32 %v237_v28, %v175_v23  ;;  %v55_v21 = vld [vmem:[%s523_s0 + $0x138] sm:$0xff]  ;;  %v191_v23 = vmul.f32 %v54_v17, %v54_v17 }
  0x30   :  { %v104_v34 = vadd.f32 %v103_v30, %v40_v25  ;;  %v239_v36 = vadd.f32 %v238_v32, %v176_v27  ;;  %v56_v25 = vld [vmem:[%s523_s0 + $0x140] sm:$0xff]  ;;  %v192_v27 = vmul.f32 %v55_v21, %v55_v21 }
  0x32   :  { %v105_v38 = vadd.f32 %v104_v34, %v41_v29  ;;  %v240_v40 = vadd.f32 %v239_v36, %v177_v31  ;;  %v57_v29 = vld [vmem:[%s523_s0 + $0x148] sm:$0xff]  ;;  %v193_v31 = vmul.f32 %v56_v25, %v56_v25 }
  0x34   :  { %v106_v42 = vadd.f32 %v105_v38, %v42_v33  ;;  %v241_v44 = vadd.f32 %v240_v40, %v178_v35  ;;  %v58_v33 = vld [vmem:[%s523_s0 + $0x150] sm:$0xff]  ;;  %v194_v35 = vmul.f32 %v57_v29, %v57_v29 }
  0x36   :  { %v107_v46 = vadd.f32 %v106_v42, %v43_v37  ;;  %v242_v48 = vadd.f32 %v241_v44, %v179_v39  ;;  %v59_v37 = vld [vmem:[%s523_s0 + $0x158] sm:$0xff]  ;;  %v195_v39 = vmul.f32 %v58_v33, %v58_v33 }
  0x38   :  { %v108_v50 = vadd.f32 %v107_v46, %v44_v41  ;;  %v243_v52 = vadd.f32 %v242_v48, %v180_v43  ;;  %v60_v41 = vld [vmem:[%s523_s0 + $0x160] sm:$0xff]  ;;  %v196_v43 = vmul.f32 %v59_v37, %v59_v37 }
  0x3a   :  { %v109_v54 = vadd.f32 %v108_v50, %v45_v45  ;;  %v244_v56 = vadd.f32 %v243_v52, %v181_v47  ;;  %v61_v45 = vld [vmem:[%s523_s0 + $0x168] sm:$0xff]  ;;  %v197_v47 = vmul.f32 %v60_v41, %v60_v41 }
  0x3c   :  { %v110_v58 = vadd.f32 %v109_v54, %v46_v49  ;;  %v245_v60 = vadd.f32 %v244_v56, %v182_v51  ;;  %v62_v49 = vld [vmem:[%s523_s0 + $0x170] sm:$0xff]  ;;  %v198_v51 = vmul.f32 %v61_v45, %v61_v45 }
  0x3e   :  { %v111_v62 = vadd.f32 %v110_v58, %v47_v53  ;;  %v246_v0 = vadd.f32 %v245_v60, %v183_v55  ;;  %v63_v53 = vld [vmem:[%s523_s0 + $0x178] sm:$0xff]  ;;  %v199_v55 = vmul.f32 %v62_v49, %v62_v49 }
  0x40   :  { %v112_v2 = vadd.f32 %v111_v62, %v48_v57  ;;  %v247_v4 = vadd.f32 %v246_v0, %v184_v59  ;;  %v64_v57 = vld [vmem:[%s523_s0 + $0x180] sm:$0xff]  ;;  %v200_v59 = vmul.f32 %v63_v53, %v63_v53 }
  0x42   :  { %v113_v6 = vadd.f32 %v112_v2, %v49_v61  ;;  %v248_v8 = vadd.f32 %v247_v4, %v185_v63  ;;  %v65_v61 = vld [vmem:[%s523_s0 + $0x188] sm:$0xff]  ;;  %v201_v63 = vmul.f32 %v64_v57, %v64_v57 }
  0x44   :  { %v114_v10 = vadd.f32 %v113_v6, %v50_v1  ;;  %v249_v12 = vadd.f32 %v248_v8, %v186_v3  ;;  %v66_v1 = vld [vmem:[%s523_s0 + $0x190] sm:$0xff]  ;;  %v202_v3 = vmul.f32 %v65_v61, %v65_v61 }
  0x46   :  { %v115_v14 = vadd.f32 %v114_v10, %v51_v5  ;;  %v250_v16 = vadd.f32 %v249_v12, %v187_v7  ;;  %v67_v5 = vld [vmem:[%s523_s0 + $0x198] sm:$0xff]  ;;  %v203_v7 = vmul.f32 %v66_v1, %v66_v1 }
  0x48   :  { %v116_v18 = vadd.f32 %v115_v14, %v52_v9  ;;  %v251_v20 = vadd.f32 %v250_v16, %v188_v11  ;;  %v68_v9 = vld [vmem:[%s523_s0 + $0x1a0] sm:$0xff]  ;;  %v204_v11 = vmul.f32 %v67_v5, %v67_v5 }
  0x4a   :  { %v117_v22 = vadd.f32 %v116_v18, %v53_v13  ;;  %v252_v24 = vadd.f32 %v251_v20, %v189_v15  ;;  %v69_v13 = vld [vmem:[%s523_s0 + $0x1a8] sm:$0xff]  ;;  %v205_v15 = vmul.f32 %v68_v9, %v68_v9 }
  0x4c   :  { %v118_v26 = vadd.f32 %v117_v22, %v54_v17  ;;  %v253_v28 = vadd.f32 %v252_v24, %v190_v19  ;;  %v70_v17 = vld [vmem:[%s523_s0 + $0x1b0] sm:$0xff]  ;;  %v206_v19 = vmul.f32 %v69_v13, %v69_v13 }
  0x4e   :  { %v119_v30 = vadd.f32 %v118_v26, %v55_v21  ;;  %v254_v32 = vadd.f32 %v253_v28, %v191_v23  ;;  %v71_v21 = vld [vmem:[%s523_s0 + $0x1b8] sm:$0xff]  ;;  %v207_v23 = vmul.f32 %v70_v17, %v70_v17 }
  0x50   :  { %v120_v34 = vadd.f32 %v119_v30, %v56_v25  ;;  %v255_v36 = vadd.f32 %v254_v32, %v192_v27  ;;  %v72_v25 = vld [vmem:[%s523_s0 + $0x1c0] sm:$0xff]  ;;  %v208_v27 = vmul.f32 %v71_v21, %v71_v21 }
  0x52   :  { %v121_v38 = vadd.f32 %v120_v34, %v57_v29  ;;  %v256_v40 = vadd.f32 %v255_v36, %v193_v31  ;;  %v73_v29 = vld [vmem:[%s523_s0 + $0x1c8] sm:$0xff]  ;;  %v209_v31 = vmul.f32 %v72_v25, %v72_v25 }
  0x54   :  { %v122_v42 = vadd.f32 %v121_v38, %v58_v33  ;;  %v257_v44 = vadd.f32 %v256_v40, %v194_v35  ;;  %v74_v33 = vld [vmem:[%s523_s0 + $0x1d0] sm:$0xff]  ;;  %v210_v35 = vmul.f32 %v73_v29, %v73_v29 }
  0x56   :  { %v123_v46 = vadd.f32 %v122_v42, %v59_v37  ;;  %v258_v48 = vadd.f32 %v257_v44, %v195_v39  ;;  %v75_v37 = vld [vmem:[%s523_s0 + $0x1d8] sm:$0xff]  ;;  %v211_v39 = vmul.f32 %v74_v33, %v74_v33 }
  0x58   :  { %v124_v50 = vadd.f32 %v123_v46, %v60_v41  ;;  %v259_v52 = vadd.f32 %v258_v48, %v196_v43  ;;  %v76_v41 = vld [vmem:[%s523_s0 + $0x1e0] sm:$0xff]  ;;  %v212_v43 = vmul.f32 %v75_v37, %v75_v37 }
  0x5a   :  { %v125_v54 = vadd.f32 %v124_v50, %v61_v45  ;;  %v260_v56 = vadd.f32 %v259_v52, %v197_v47  ;;  %v77_v45 = vld [vmem:[%s523_s0 + $0x1e8] sm:$0xff]  ;;  %v213_v47 = vmul.f32 %v76_v41, %v76_v41 }
  0x5c   :  { %v126_v58 = vadd.f32 %v125_v54, %v62_v49  ;;  %v261_v60 = vadd.f32 %v260_v56, %v198_v51  ;;  %v78_v49 = vld [vmem:[%s523_s0 + $0x1f0] sm:$0xff]  ;;  %v214_v51 = vmul.f32 %v77_v45, %v77_v45 }
  0x5e   :  { %v127_v62 = vadd.f32 %v126_v58, %v63_v53  ;;  %v262_v0 = vadd.f32 %v261_v60, %v199_v55  ;;  %v79_v53 = vld [vmem:[%s523_s0 + $0x1f8] sm:$0xff]  ;;  %v215_v55 = vmul.f32 %v78_v49, %v78_v49 }
  0x5f   :  { %v216_v58 = vmul.f32 %v79_v53, %v79_v53 }
  0x60   :  { %v128_v2 = vadd.f32 %v127_v62, %v64_v57  ;;  %v263_v4 = vadd.f32 %v262_v0, %v200_v59 }
  0x62   :  { %v129_v6 = vadd.f32 %v128_v2, %v65_v61  ;;  %v264_v8 = vadd.f32 %v263_v4, %v201_v63 }
  0x64   :  { %v130_v10 = vadd.f32 %v129_v6, %v66_v1  ;;  %v265_v12 = vadd.f32 %v264_v8, %v202_v3 }
  0x66   :  { %v131_v14 = vadd.f32 %v130_v10, %v67_v5  ;;  %v266_v16 = vadd.f32 %v265_v12, %v203_v7  ;;  %v80_v7 = vld [vmem:[%s524_s1] sm:$0x1] }
  0x67   :  { %v152_v12 = vld [vmem:[%s525_s2] sm:$0x1] }
  0x68   :  { %v132_v18 = vadd.f32 %v131_v14, %v68_v9  ;;  %v267_v20 = vadd.f32 %v266_v16, %v204_v11 }
  0x6a   :  { %v133_v22 = vadd.f32 %v132_v18, %v69_v13  ;;  %v268_v24 = vadd.f32 %v267_v20, %v205_v15 }
  0x6c   :  { %v134_v26 = vadd.f32 %v133_v22, %v70_v17  ;;  %v269_v28 = vadd.f32 %v268_v24, %v206_v19 }
  0x6e   :  { %v135_v30 = vadd.f32 %v134_v26, %v71_v21  ;;  %v270_v32 = vadd.f32 %v269_v28, %v207_v23 }
  0x70   :  { %v136_v34 = vadd.f32 %v135_v30, %v72_v25  ;;  %v271_v36 = vadd.f32 %v270_v32, %v208_v27 }
  0x72   :  { %v137_v38 = vadd.f32 %v136_v34, %v73_v29  ;;  %v272_v40 = vadd.f32 %v271_v36, %v209_v31 }
  0x74   :  { %v138_v42 = vadd.f32 %v137_v38, %v74_v33  ;;  %v273_v44 = vadd.f32 %v272_v40, %v210_v35 }
  0x76   :  { %v139_v46 = vadd.f32 %v138_v42, %v75_v37  ;;  %v274_v48 = vadd.f32 %v273_v44, %v211_v39 }
  0x78   :  { %v140_v50 = vadd.f32 %v139_v46, %v76_v41  ;;  %v275_v52 = vadd.f32 %v274_v48, %v212_v43 }
  0x7a   :  { %v141_v54 = vadd.f32 %v140_v50, %v77_v45  ;;  %v276_v56 = vadd.f32 %v275_v52, %v213_v47 }
  0x7c   :  { %v142_v57 = vadd.f32 %v141_v54, %v78_v49  ;;  %v277_v59 = vadd.f32 %v276_v56, %v214_v51 }
  0x7e   :  { %v143_v60 = vadd.f32 %v142_v57, %v79_v53  ;;  %v278_v61 = vadd.f32 %v277_v59, %v215_v55 }
  0x80   :  { %v144_v62 = vrot.slane %v143_v60, 4  ;;  %v279_v63 = vadd.f32 %v278_v61, %v216_v58 }
  0x82   :  { %v145_v0 = vadd.f32 %v144_v62, %v143_v60  ;;  %v280_v1 = vrot.slane %v279_v63, 4 }
  0x84   :  { %v146_v2 = vrot.slane %v145_v0, 2  ;;  %v281_v3 = vadd.f32 %v280_v1, %v279_v63 }
  0x86   :  { %v147_v4 = vadd.f32 %v146_v2, %v145_v0  ;;  %v282_v5 = vrot.slane %v281_v3, 2 }
  0x88   :  { %v148_v6 = vrot.slane %v147_v4, 1  ;;  %v283_v8 = vadd.f32 %v282_v5, %v281_v3 }
  0x8a   :  { %v149_v9 = vadd.f32 %v148_v6, %v147_v4  ;;  %v284_v10 = vrot.slane %v283_v8, 1 }
  0x8c   :  { %v150_v11 = vadd.f32 %v149_v9, %v80_v7  ;;  %v285_v13 = vadd.f32 %v284_v10, %v283_v8 }
  0x8e   :  { %151 = vst [vmem:[%s524_s1] sm:$0x1] %v150_v11  ;;  %v286_v14 = vadd.f32 %v285_v13, %v152_v12 }
  0x90   :  { %287 = vst [vmem:[%s525_s2] sm:$0x1] %v286_v14 }

// kernel: downsample_block_forward.5
= control target key start
LH: loop header
LB: loop body
LE: loop exit
PB: predicated region body
PF: predicated region fallthrough
CT: control target
= control target key end

     0   :  { %s2892_s18 = smov 0   ;;  %s3537_s0 = inlined_call_operand.vmem [shape: bf16[2,8,8,128], index: 0, kind: input, shape index: {}]   ;;  %s3538_s1 = inlined_call_operand.vmem [shape: f32[1,1,128], index: 1, kind: input, shape index: {}]   ;;  %s3539_s2 = inlined_call_operand.vmem [shape: f32[1,1,128], index: 2, kind: input, shape index: {}]   ;;  %s3540_s3 = inlined_call_operand.vmem [shape: bf16[9,128,128], index: 3, kind: input, shape index: {}]   ;;  %s3541_s4 = inlined_call_operand.vmem [shape: bf16[2,8,8,128], index: 4, kind: input, shape index: {}]   ;;  %s3542_s5 = inlined_call_operand.vmem [shape: f32[2,8,8,128], index: 5, kind: output, shape index: {}]  }
   0x1 LB: > { %s2200_s19 = sadd.s32 4294967295, %s2859_s18   ;;  %p2204_p0 = scmp.ge.s32.totalorder %s2859_s18, 1  ;;  %s2859_s18 = sphi %s2892_s18, %s15_s18  }
   0x2   : > { %p197_p1 = scmp.lt.s32.totalorder %s2859_s18, 3 }
   0x4   : > { %p198_p2 = pnand %p2204_p0, %p197_p1 }
   0x5   : > { %p230_p3 = scmp.lt.s32.totalorder (!%p198_p2), %s2200_s19, 1 }
   0x6   : > { %201 = sbr.rel (%p198_p2) target bundleno = 344 (0x158), region = 40 }
   0xb   : > { %v2723_v0 = vld [vmem:[%s3540_s3 + $0x78] sm:$0xff]  ;;  %v2861_v2 = vmov 0   ;;  %v2722_v3 = vld [vmem:[%s3540_s3 + $0x70] sm:$0xff]  ;;  %s3552_s19 = smov (!%p230_p3, %s2200_s19), 1  ;;  %v2721_v6 = vld [vmem:[%s3540_s3 + $0x68] sm:$0xff]  ;;  %vm403_vm0 = vcmask 1043456  }
   0xc   : > { %v2731_v1 = vld [vmem:[%s3540_s3 + $0xb8] sm:$0xff]  ;;  %256 = vst [vmem:[#allocation2 + $0x20] sm:$0xf] %v2861_v2  ;;  %2826 = vmatpush.bf16.msra.mxu1 %v2723_v0  ;;  %685 = vmatpush.bf16.msra.mxu0 %v2723_v0  ;;  %v2730_v4 = vld [vmem:[%s3540_s3 + $0xb0] sm:$0xff]  ;;  %s2701_s30 = sshll.u32 %s3552_s19, 5  ;;  %v2729_v10 = vld [vmem:[%s3540_s3 + $0xa8] sm:$0xff] }
   0xd   : > { %257 = vst [vmem:[#allocation2 + $0x24] sm:$0x1] %v2861_v2  ;;  %955 = vmatpush.bf16.msra.mxu2 %v2731_v1  ;;  %v2743_v5 = vld [vmem:[%s3540_s3 + $0xf8] sm:$0xff]  ;;  %v2742_v7 = vld [vmem:[%s3540_s3 + $0xf0] sm:$0xff]  ;;  %s234_s12 = scalar_lea.vmem %s3537_s0, %s2701_s30  ;;  %v2939_v13 = vld [vmem:[%s3538_s1] ss:$0 sm:$0xff]  ;;  %s3499_s17 = scalar_lea.vmem %s3541_s4, %s2701_s30 }
   0xe   : > { %258 = vst [vmem:[#allocation2 + $0x28] sm:$0xf] %v2861_v2  ;;  %1089 = vmatpush.bf16.msra.mxu3 %v2743_v5  ;;  %v2820_v8 = vld [vmem:[%s234_s12 + $0x8] sm:$0xff]   ;;  %v2821_v9 = vld [vmem:[%s234_s12 + $0x10] sm:$0xff]   ;;  %v2944_v14 = vld [vmem:[%s3539_s2] ss:$0 sm:$0xff] }
   0xf   : > { %259 = vst [vmem:[#allocation2 + $0x2c] sm:$0x1] %v2861_v2  ;;  %v2795_v11 = vunpack.c.h.bf16 %v2820_v8  ;;  %v2798_v12 = vunpack.c.l.bf16 %v2821_v9  ;;  %v2799_v15 = vunpack.c.h.bf16 %v2821_v9  ;;  %v2794_v16 = vunpack.c.l.bf16 %v2820_v8  ;;  %v2741_v17 = vld [vmem:[%s3540_s3 + $0xe8] sm:$0xff]  ;;  %v2953_v20 = vld [vmem:[%s234_s12] sm:$0xff]   ;;  %v2960_v23 = vld [vmem:[%s234_s12 + $0x18] sm:$0xff]   ;;  %s2703_s20 = sshll.u32 %s3552_s19, 6 }
  0x10   : > { %2827 = vmatpush.bf16.msra.mxu1 %v2722_v3  ;;  %686 = vmatpush.bf16.msra.mxu0 %v2722_v3  ;;  %248 = vst [vmem:[#allocation2] sm:$0xf] %v2861_v2  ;;  %v2720_v21 = vld [vmem:[%s3540_s3 + $0x60] sm:$0xff]  ;;  %v2790_v22 = vunpack.c.l.bf16 %v2953_v20  ;;  %v2802_v29 = vunpack.c.l.bf16 %v2960_v23  ;;  %vm409_vm1 = vcmask 1040384   ;;  %vm404_vm2 = vsmask.f32 7938  ;;  %s3506_s23 = scalar_lea.vmem %s3542_s5, %s2703_s20 }
  0x11   : > { %956 = vmatpush.bf16.msra.mxu2 %v2730_v4  ;;  %v290_v18 = vsub.f32 %v2795_v11, %v2939_v13  ;;  %v291_v19 = vsub.f32 %v2798_v12, %v2939_v13  ;;  %249 = vst [vmem:[#allocation2 + $0x4] sm:$0x1] %v2861_v2  ;;  %v292_v24 = vsub.f32 %v2799_v15, %v2939_v13  ;;  %v2728_v26 = vld [vmem:[%s3540_s3 + $0xa0] sm:$0xff]  ;;  %v2719_v33 = vld [vmem:[%s3540_s3 + $0x58] sm:$0xff]  ;;  %vm410_vm3 = vsmask.f32 256  ;;  %vm3007_vm7 = vmand %vm403_vm0, %vm404_vm2 }
  0x12   : > { %1090 = vmatpush.bf16.msra.mxu3 %v2742_v7  ;;  %250 = vst [vmem:[#allocation2 + $0x8] sm:$0xf] %v2861_v2  ;;  %v289_v25 = vsub.f32 %v2794_v16, %v2939_v13  ;;  %v287_v30 = vsub.f32 %v2790_v22, %v2939_v13  ;;  %v2727_v37 = vld [vmem:[%s3540_s3 + $0x98] sm:$0xff]  ;;  %v2740_v40 = vld [vmem:[%s3540_s3 + $0xe0] sm:$0xff]  ;;  %v293_v41 = vsub.f32 %v2802_v29, %v2939_v13  ;;  %v2791_v42 = vunpack.c.h.bf16 %v2953_v20  ;;  %v2718_v43 = vld [vmem:[%s3540_s3 + $0x50] sm:$0xff] }
  0x13   : > { %v301_v27 = vmul.f32 %v2944_v14, %v290_v18  ;;  %v302_v28 = vmul.f32 %v2944_v14, %v291_v19  ;;  %251 = vst [vmem:[#allocation2 + $0xc] sm:$0x1] %v2861_v2  ;;  %v2980_v35 = vmul.f32 %v2944_v14, %v292_v24  ;;  %v2726_v50 = vld [vmem:[%s3540_s3 + $0x90] sm:$0xff]  ;;  %v427_v51 = vld [vmem:[#allocation2 + $0x20] sm:$0xf]  ;;  %vm839_vm6 = vcmask 1042432   ;;  %vm3020_vm8 = vmand %vm409_vm1, %vm410_vm3 }
  0x14   : > { %2828 = vmatpush.bf16.msra.mxu1 %v2721_v6  ;;  %687 = vmatpush.bf16.msra.mxu0 %v2721_v6  ;;  %252 = vst [vmem:[#allocation2 + $0x10] sm:$0xf] %v2861_v2  ;;  %v298_v34 = vmul.f32 %v2944_v14, %v287_v30  ;;  %v2983_v36 = vmul.f32 %v2944_v14, %v289_v25  ;;  %v430_v52 = vld [vmem:[#allocation2 + $0x24] sm:$0x1]  ;;  %vm489_vm4 = vsmask.f32 3328 }
  0x15   : > { %957 = vmatpush.bf16.msra.mxu2 %v2729_v10  ;;  %v309_v31 = vmax.f32 %v301_v27, 0.0  ;;  %v310_v32 = vmax.f32 %v302_v28, 0.0  ;;  %253 = vst [vmem:[#allocation2 + $0x14] sm:$0x1] %v2861_v2  ;;  %v433_v53 = vld [vmem:[#allocation2 + $0x28] sm:$0xf]  ;;  %v3015_v62 = vmul.f32 %v2944_v14, %v293_v41  ;;  %v288_v63 = vsub.f32 %v2791_v42, %v2939_v13 }
  0x16   : > { %1091 = vmatpush.bf16.msra.mxu3 %v2741_v17  ;;  %254 = vst [vmem:[#allocation2 + $0x18] sm:$0xf] %v2861_v2  ;;  %v306_v44 = vmax.f32 %v298_v34, 0.0  ;;  %vm490_vm5 = vsmask.f32 7440  ;;  %v311_v55 = vmax.f32 %v2980_v35, 0.0 }
  0x17   : > { %v317_v38 = vpack.c.bf16 %v309_v31, %v309_v31  ;;  %v318_v39 = vpack.c.bf16 %v310_v32, %v310_v32  ;;  %255 = vst [vmem:[#allocation2 + $0x1c] sm:$0x1] %v2861_v2  ;;  %v457_v45 = vld [vmem:[#allocation2] sm:$0xf]  ;;  %v308_v56 = vmax.f32 %v2983_v36, 0.0  ;;  %v2717_v6 = vld [vmem:[%s3540_s3 + $0x48] sm:$0xff]  ;;  %v299_v34 = vmul.f32 %v2944_v14, %v288_v63  ;;  %vm3088_vm11 = vmor %vm489_vm4, %vm490_vm5 }
  0x18   : > { %2829 = vmatpush.bf16.msra.mxu1 %v2720_v21  ;;  %688 = vmatpush.bf16.msra.mxu0 %v2720_v21  ;;  %260 = vst [vmem:[#allocation2 + $0x30] sm:$0xf] %v2861_v2  ;;  %v314_v54 = vpack.c.bf16 %v306_v44, %v306_v44  ;;  %v436_v60 = vld [vmem:[#allocation2 + $0x2c] sm:$0x1]  ;;  %v3012_v61 = vld [vmem:[#allocation2 + $0x4] sm:$0x1]  ;;  %v319_v25 = vpack.c.bf16 %v311_v55, %v311_v55 }
  0x19   : > { %958 = vmatpush.bf16.msra.mxu2 %v2728_v26  ;;  %v347_v46 = vshrl.u32 %v317_v38, 16  ;;  %v350_v47 = vshll.u32 %v317_v38, 16  ;;  %v355_v48 = vshrl.u32 %v318_v39, 16  ;;  %v358_v49 = vshll.u32 %v318_v39, 16  ;;  %261 = vst [vmem:[#allocation2 + $0x34] sm:$0x1] %v2861_v2 }
  0x1a   : > { %1092 = vmatpush.bf16.msra.mxu3 %v2740_v40  ;;  %262 = vst [vmem:[#allocation2 + $0x38] sm:$0xf] %v2861_v2  ;;  %v323_v1 = vshrl.u32 %v314_v54, 16  ;;  %v326_v3 = vshll.u32 %v314_v54, 16  ;;  %v493_v4 = vshrl.u32 %v457_v45, 16  ;;  %v496_v5 = vshll.u32 %v457_v45, 16 }
  0x1b   : > { %v349_v57 = vrot.slane %v347_v46, 7  ;;  %v357_v58 = vrot.slane %v355_v48, 7  ;;  %263 = vst [vmem:[#allocation2 + $0x3c] sm:$0x1] %v2861_v2  ;;  %v2739_v11 = vld [vmem:[%s3540_s3 + $0xd8] sm:$0xff]  ;;  %v502_v17 = vshll.u32 %v3012_v61, 16 }
  0x1c   : > { %2830 = vmatpush.bf16.msra.mxu1 %v2719_v33  ;;  %689 = vmatpush.bf16.msra.mxu0 %v2719_v33  ;;  %264 = vst [vmem:[#allocation2 + $0x40] sm:$0xf] %v2861_v2  ;;  %v325_v12 = vrot.slane %v323_v1, 7  ;;  %v495_v15 = vrot.slane %v493_v4, 4  ;;  %v498_v16 = vrot.slane %v496_v5, 5  ;;  %v2725_v21 = vld [vmem:[%s3540_s3 + $0x88] sm:$0xff] }
  0x1d   : > { %959 = vmatpush.bf16.msra.mxu2 %v2727_v37  ;;  %v352_v7 = vor.u32 %v350_v47, %v349_v57  ;;  %v353_v8 = vrot.slane %v349_v57, 4  ;;  %v360_v9 = vor.u32 %v358_v49, %v357_v58  ;;  %v361_v10 = vrot.slane %v357_v58, 4  ;;  %265 = vst [vmem:[#allocation2 + $0x44] sm:$0x1] %v2861_v2  ;;  %v406_v22 = vld [vmem:[#allocation2 + $0x8] sm:$0xf] }
  0x1e   : > { %266 = vst [vmem:[#allocation2 + $0x48] sm:$0xf] %v2861_v2  ;;  %v815_v24 = vld [vmem:[#allocation2] sm:$0xe]  ;;  %v328_v27 = vor.u32 %v326_v3, %v325_v12  ;;  %v329_v28 = vrot.slane %v325_v12, 4  ;;  %v499_v30 = vor.u32 %v498_v16, %v495_v15  ;;  %1093 = vmatpush.bf16.msra.mxu3 %v2739_v11  ;;  %v2738_v31 = vld [vmem:[%s3540_s3 + $0xd0] sm:$0xff]  ;;  %v3077_v47 = vpack.c.bf16 %v308_v56, %v308_v56 }
  0x1f   : > { %v428_v18 = vsel %vm3007_vm7, %v352_v7, %v427_v51  ;;  %v431_v19 = vsel %vm3020_vm8, %v353_v8, %v430_v52  ;;  %v434_v20 = vsel %vm3007_vm7, %v360_v9, %v433_v53  ;;  %v437_v26 = vsel %vm3020_vm8, %v361_v10, %v436_v60  ;;  %v412_v29 = vld [vmem:[#allocation2 + $0xc] sm:$0x1]  ;;  %v2716_v35 = vld [vmem:[%s3540_s3 + $0x40] sm:$0xff]  ;;  %v2715_v41 = vld [vmem:[%s3540_s3 + $0x38] sm:$0xff]  ;;  %267 = vst [vmem:[#allocation2 + $0x4c] sm:$0x1] %v2861_v2 }
  0x20   : > { %2831 = vmatpush.bf16.msra.mxu1 %v2718_v43  ;;  %690 = vmatpush.bf16.msra.mxu0 %v2718_v43  ;;  %429 = vst [vmem:[#allocation2 + $0x20] sm:$0xf] %v428_v18  ;;  %v3048_v32 = vrot.slane %v502_v17, 5  ;;  %vm840_vm9 = vcmask 1046532   ;;  %v2307_v33 = vrot.slane %v815_v24, 9  ;;  %v407_v37 = vsel %vm3007_vm7, %v328_v27, %v406_v22  ;;  %v2724_v42 = vld [vmem:[%s3540_s3 + $0x80] sm:$0xff] }
  0x21   : > { %960 = vmatpush.bf16.msra.mxu2 %v2726_v50  ;;  %432 = vst [vmem:[#allocation2 + $0x24] sm:$0x1] %v431_v19  ;;  %v3056_v38 = vrot.slane %v499_v30, 4  ;;  %v844_v39 = vrot.slane %v3012_v61, 5  ;;  %v312_v40 = vmax.f32 %v3015_v62, 0.0  ;;  %v413_v43 = vsel %vm3020_vm8, %v329_v28, %v412_v29  ;;  %vm3070_vm10 = vmor %vm839_vm6, %vm840_vm9  ;;  %v2751_v48 = vld [vmem:[%s3540_s3 + $0x138] sm:$0xff] }
  0x22   : > { %435 = vst [vmem:[#allocation2 + $0x28] sm:$0xf] %v434_v20  ;;  %v363_v45 = vshrl.u32 %v319_v25, 16  ;;  %v366_v46 = vshll.u32 %v319_v25, 16  ;;  %1094 = vmatpush.bf16.msra.mxu3 %v2738_v31  ;;  %v2737_v49 = vld [vmem:[%s3540_s3 + $0xc8] sm:$0xff]  ;;  %v2714_v2 = vld [vmem:[%s3540_s3 + $0x30] sm:$0xff] }
  0x23   : > { %438 = vst [vmem:[#allocation2 + $0x2c] sm:$0x1] %v437_v26  ;;  %v320_v50 = vpack.c.bf16 %v312_v40, %v312_v40  ;;  %v439_v52 = vld [vmem:[#allocation2 + $0x30] sm:$0xf]  ;;  %v307_v53 = vmax.f32 %v299_v34, 0.0  ;;  %v505_v54 = vsel %vm3088_vm11, %v3056_v38, %v3048_v32  ;;  %v3101_v55 = vsel %vm3070_vm10, %v2307_v33, %v844_v39  ;;  %v2771_v1 = vld [vmem:[%s3540_s3 + $0x1b8] sm:$0xff] }
  0x24   : > { %2832 = vmatpush.bf16.msra.mxu1 %v2717_v6  ;;  %691 = vmatpush.bf16.msra.mxu0 %v2717_v6  ;;  %408 = vst [vmem:[#allocation2 + $0x8] sm:$0xf] %v407_v37  ;;  %v365_v36 = vrot.slane %v363_v45, 7  ;;  %v2750_v56 = vld [vmem:[%s3540_s3 + $0x130] sm:$0xff]  ;;  %v2736_v3 = vld [vmem:[%s3540_s3 + $0xc0] sm:$0xff]  ;;  %v339_v5 = vshrl.u32 %v3077_v47, 16  ;;  %v891_v40 = vunpack.c.l.b16 %v3101_v55 }
  0x25   : > { %961 = vmatpush.bf16.msra.mxu2 %v2725_v21  ;;  %414 = vst [vmem:[#allocation2 + $0xc] sm:$0x1] %v413_v43  ;;  %v371_v57 = vshrl.u32 %v320_v50, 16  ;;  %v374_v58 = vshll.u32 %v320_v50, 16  ;;  %v442_v60 = vld [vmem:[#allocation2 + $0x34] sm:$0x1]  ;;  %v3112_v4 = vpack.c.bf16 %v307_v53, %v307_v53 }
  0x26   : > { %v368_v62 = vor.u32 %v366_v46, %v365_v36  ;;  %v369_v63 = vrot.slane %v365_v36, 4  ;;  %1095 = vmatpush.bf16.msra.mxu3 %v2737_v49  ;;  %v342_v10 = vshll.u32 %v3077_v47, 16  ;;  %v2713_v15 = vld [vmem:[%s3540_s3 + $0x28] sm:$0xff]  ;;  %v445_v25 = vld [vmem:[#allocation2 + $0x38] sm:$0xf]  ;;  %v2712_v53 = vld [vmem:[%s3540_s3 + $0x20] sm:$0xff] }
  0x27   : > { %v461_v61 = vld [vmem:[#allocation2 + $0x20] sm:$0xf]  ;;  %v373_v9 = vrot.slane %v371_v57, 7  ;;  %v331_v18 = vshrl.u32 %v3112_v4, 16  ;;  %v448_v26 = vld [vmem:[#allocation2 + $0x3c] sm:$0x1] }
  0x28   : > { %2833 = vmatpush.bf16.msra.mxu1 %v2716_v35  ;;  %692 = vmatpush.bf16.msra.mxu0 %v2716_v35  ;;  %v3115_v6 = vld [vmem:[#allocation2 + $0x24] sm:$0x1]  ;;  %v549_v7 = vshrl.u32 %v461_v61, 16  ;;  %v552_v8 = vshll.u32 %v461_v61, 16  ;;  %v440_v16 = vsel %vm3007_vm7, %v368_v62, %v439_v52  ;;  %v443_v17 = vsel %vm3020_vm8, %v369_v63, %v442_v60  ;;  %v2749_v29 = vld [vmem:[%s3540_s3 + $0x128] sm:$0xff]  ;;  %v2770_v32 = vld [vmem:[%s3540_s3 + $0x1b0] sm:$0xff] }
  0x29   : > { %962 = vmatpush.bf16.msra.mxu2 %v2724_v42  ;;  %v462_v11 = vld [vmem:[#allocation2 + $0x28] sm:$0xf]  ;;  %v558_v12 = vshll.u32 %v3115_v6, 16  ;;  %v376_v30 = vor.u32 %v374_v58, %v373_v9  ;;  %v377_v31 = vrot.slane %v373_v9, 4  ;;  %441 = vst [vmem:[#allocation2 + $0x30] sm:$0xf] %v440_v16 }
  0x2a   : > { %v3127_v19 = vld [vmem:[#allocation2 + $0x2c] sm:$0x1]  ;;  %v551_v20 = vrot.slane %v549_v7, 4  ;;  %v554_v21 = vrot.slane %v552_v8, 5  ;;  %v563_v22 = vshrl.u32 %v462_v11, 16  ;;  %v566_v24 = vshll.u32 %v462_v11, 16  ;;  %1096 = vmatpush.bf16.msra.mxu3 %v2736_v3 }
  0x2b   : > { %v560_v27 = vrot.slane %v558_v12, 5  ;;  %v572_v28 = vshll.u32 %v3127_v19, 16  ;;  %v458_v37 = vld [vmem:[#allocation2 + $0x8] sm:$0xf]  ;;  %444 = vst [vmem:[#allocation2 + $0x34] sm:$0x1] %v443_v17  ;;  %v446_v55 = vsel %vm3007_vm7, %v376_v30, %v445_v25  ;;  %v621_v11 = vunpack.c.l.b16 %v505_v54 }
  0x2c   : > { %786 = vmatpush.bf16.msrb.mxu1 %v2715_v41  ;;  %1335 = vmatpush.bf16.msrb.mxu0 %v2751_v48  ;;  %v555_v33 = vor.u32 %v554_v21, %v551_v20  ;;  %v565_v34 = vrot.slane %v563_v22, 4  ;;  %v568_v35 = vrot.slane %v566_v24, 5  ;;  %v816_v39 = vld [vmem:[#allocation2 + $0x8] sm:$0xe]  ;;  %v482_v42 = vld [vmem:[#allocation2 + $0xc] sm:$0x1] }
  0x2d   : > { %1644 = vmatpush.bf16.msrb.mxu2 %v2771_v1  ;;  %v574_v41 = vrot.slane %v572_v28, 5  ;;  %v507_v43 = vshrl.u32 %v458_v37, 16  ;;  %v510_v45 = vshll.u32 %v458_v37, 16  ;;  %v2308_v46 = vrot.slane %v816_v39, 9  ;;  %447 = vst [vmem:[#allocation2 + $0x38] sm:$0xf] %v446_v55 }
  0x2e   : > { %v556_v48 = vrot.slane %v555_v33, 4  ;;  %v569_v49 = vor.u32 %v568_v35, %v565_v34  ;;  %v516_v50 = vshll.u32 %v482_v42, 16  ;;  %v2748_v62 = vld [vmem:[%s3540_s3 + $0x120] sm:$0xff]  ;;  %v333_v7 = vrot.slane %v331_v18, 7  ;;  %v415_v8 = vld [vmem:[#allocation2 + $0x10] sm:$0xf] }
  0x2f   : > { %v509_v36 = vrot.slane %v507_v43, 4  ;;  %v512_v52 = vrot.slane %v510_v45, 5  ;;  %v341_v16 = vrot.slane %v339_v5, 7  ;;  %v418_v17 = vld [vmem:[#allocation2 + $0x14] sm:$0x1]  ;;  %v2711_v24 = vld [vmem:[%s3540_s3 + $0x18] sm:$0xff] }
  0x30   : > { %787 = vmatpush.bf16.msrb.mxu1 %v2714_v2  ;;  %1336 = vmatpush.bf16.msrb.mxu0 %v2750_v56  ;;  %v848_v2 = vrot.slane %v482_v42, 5  ;;  %v449_v56 = vsel %vm3020_vm8, %v377_v31, %v448_v26  ;;  %v561_v57 = vsel %vm3088_vm11, %v556_v48, %v560_v27  ;;  %v570_v58 = vrot.slane %v569_v49, 4  ;;  %v463_v12 = vld [vmem:[#allocation2 + $0x30] sm:$0xf]  ;;  %v421_v25 = vld [vmem:[#allocation2 + $0x18] sm:$0xf] }
  0x31   : > { %v518_v60 = vrot.slane %v516_v50, 5  ;;  %v625_v63 = vunpack.c.l.b16 %v561_v57  ;;  %v513_v1 = vor.u32 %v512_v52, %v509_v36  ;;  %450 = vst [vmem:[#allocation2 + $0x3c] sm:$0x1] %v449_v56  ;;  %v577_v22 = vshrl.u32 %v463_v12, 16  ;;  %v424_v26 = vld [vmem:[#allocation2 + $0x1c] sm:$0x1]  ;;  %1645 = vmatpush.bf16.msrb.mxu2 %v2770_v32 }
  0x32   : > { %v849_v61 = vsel %vm3070_vm10, %v2308_v46, %v848_v2  ;;  %v575_v9 = vsel %vm3088_vm11, %v570_v58, %v574_v41  ;;  %v580_v38 = vshll.u32 %v463_v12, 16  ;;  %v344_v5 = vor.u32 %v342_v10, %v341_v16  ;;  %v2747_v27 = vld [vmem:[%s3540_s3 + $0x118] sm:$0xff]  ;;  %v3174_v31 = vld [vmem:[#allocation2 + $0x34] sm:$0x1]  ;;  %v2769_v45 = vld [vmem:[%s3540_s3 + $0x1a8] sm:$0xff] }
  0x33   : > { %v892_v3 = vunpack.c.l.b16 %v849_v61  ;;  %v626_v20 = vunpack.c.l.b16 %v575_v9  ;;  %v514_v21 = vrot.slane %v513_v1, 4  ;;  %v2779_v28 = vld [vmem:[%s3540_s3 + $0x1f8] sm:$0xff]  ;;  %v579_v33 = vrot.slane %v577_v22, 4  ;;  %v3191_v46 = vld [vmem:[#allocation2 + $0x8] sm:$0xf]  ;;  %v2746_v36 = vld [vmem:[%s3540_s3 + $0x110] sm:$0xff] }
  0x34   : > { %788 = vmatpush.bf16.msrb.mxu1 %v2713_v15  ;;  %1337 = vmatpush.bf16.msrb.mxu0 %v2749_v29  ;;  %v334_v15 = vshll.u32 %v3112_v4, 16  ;;  %v337_v4 = vrot.slane %v333_v7, 4  ;;  %v345_v34 = vrot.slane %v341_v16, 4  ;;  %v582_v10 = vrot.slane %v580_v38, 5  ;;  %v464_v39 = vld [vmem:[#allocation2 + $0x38] sm:$0xf] }
  0x35   : > { %v899_v18 = vpack.c.b16 %v892_v3, %v891_v40  ;;  %v631_v29 = vpack.c.b16 %v626_v20, %v625_v63  ;;  %v519_v30 = vsel %vm3088_vm11, %v514_v21, %v518_v60  ;;  %v586_v35 = vshll.u32 %v3174_v31, 16  ;;  %1890 = vmatpush.bf16.msrb.mxu3 %v2779_v28  ;;  %v2710_v40 = vld [vmem:[%s3540_s3 + $0x10] sm:$0xff]  ;;  %1646 = vmatpush.bf16.msrb.mxu2 %v2769_v45  ;;  %v2381_v60 = vld [vmem:[#allocation2 + $0x8] sm:$0xf]  ;;  %v2744_v16 = vld [vmem:[%s3540_s3 + $0x100] sm:$0xff] }
  0x36   : > { %v336_v54 = vor.u32 %v334_v15, %v333_v7  ;;  %v622_v47 = vunpack.c.l.b16 %v519_v30  ;;  %v419_v41 = vsel %vm3020_vm8, %v337_v4, %v418_v17  ;;  %v422_v42 = vsel %vm3007_vm7, %v344_v5, %v421_v25  ;;  %v2709_v61 = vld [vmem:[%s3540_s3 + $0x8] sm:$0xff]  ;;  %v2708_v15 = vld [vmem:[%s3540_s3] sm:$0xff]  ;;  %v2759_v30 = vld [vmem:[%s3540_s3 + $0x178] sm:$0xff] }
  0x37   : > { %963 = vmatmul.bf16.vlgmr.msra.gmra.mxu2 %v899_v18  ;;  %703 = vmatmul.bf16.vlgmr.msra.gmra.mxu1 %v631_v29  ;;  %v425_v43 = vsel %vm3020_vm8, %v345_v34, %v424_v26  ;;  %v583_v50 = vor.u32 %v582_v10, %v579_v33  ;;  %v591_v2 = vshrl.u32 %v464_v39, 16  ;;  %420 = vst [vmem:[#allocation2 + $0x14] sm:$0x1] %v419_v41  ;;  %v588_v52 = vrot.slane %v586_v35, 5  ;;  %v2768_v35 = vld [vmem:[%s3540_s3 + $0x1a0] sm:$0xff] }
  0x38   : > { %789 = vmatpush.bf16.msrb.mxu1 %v2712_v53  ;;  %1338 = vmatpush.bf16.msrb.mxu0 %v2748_v62  ;;  %v416_v37 = vsel %vm3007_vm7, %v336_v54, %v415_v8  ;;  %v629_v48 = vpack.c.b16 %v622_v47, %v621_v11  ;;  %v3193_v49 = vld [vmem:[#allocation2 + $0x3c] sm:$0x1]  ;;  %v594_v53 = vshll.u32 %v464_v39, 16  ;;  %423 = vst [vmem:[#allocation2 + $0x18] sm:$0xf] %v422_v42  ;;  %v2745_v62 = vld [vmem:[%s3540_s3 + $0x108] sm:$0xff] }
  0x39   : > { %417 = vst [vmem:[#allocation2 + $0x10] sm:$0xf] %v416_v37  ;;  %v600_v55 = vshll.u32 %v3193_v49, 16  ;;  %v584_v56 = vrot.slane %v583_v50, 4  ;;  %v593_v57 = vrot.slane %v591_v2, 4  ;;  %v1143_v63 = vshrl.u32 %v3191_v46, 16  ;;  %1647 = vmatpush.bf16.msrb.mxu2 %v2768_v35 }
  0x3a   : > { %693 = vmatmul.bf16.vlgmr.msra.gmra.mxu0 %v629_v48  ;;  %426 = vst [vmem:[#allocation2 + $0x1c] sm:$0x1] %v425_v43  ;;  %v596_v58 = vrot.slane %v594_v53, 5  ;;  %v1146_v8 = vshll.u32 %v3191_v46, 16  ;;  %v2777_v42 = vld [vmem:[%s3540_s3 + $0x1e8] sm:$0xff]  ;;  %v2758_v53 = vld [vmem:[%s3540_s3 + $0x170] sm:$0xff] }
  0x3b   : > { %v589_v1 = vsel %vm3088_vm11, %v584_v56, %v588_v52  ;;  %v602_v7 = vrot.slane %v600_v55, 5  ;;  %v2704_v35 = vld [vmem:[#allocation2 + $0x4] sm:$0xf0]  ;;  %v3337_v0 = vld [vmem:[#allocation2 + $0x34] sm:$0x1] }
  0x3c   : > { %790 = vmatpush.bf16.msrb.mxu1 %v2711_v24  ;;  %1339 = vmatpush.bf16.msrb.mxu0 %v2747_v27  ;;  %v597_v3 = vor.u32 %v596_v58, %v593_v57  ;;  %v2778_v24 = vld [vmem:[%s3540_s3 + $0x1f0] sm:$0xff]  ;;  %v627_v25 = vunpack.c.l.b16 %v589_v1  ;;  %v1148_v52 = vrot.slane %v1146_v8, 5  ;;  %v819_v8 = vld [vmem:[#allocation2 + $0x20] sm:$0xe] }
  0x3d   : > { %1891 = vmatpush.bf16.msrb.mxu3 %v2778_v24 }
  0x3e   : > { %v598_v17 = vrot.slane %v597_v3, 4  ;;  %v483_v20 = vld [vmem:[#allocation2 + $0x14] sm:$0x1]  ;;  %v2767_v3 = vld [vmem:[%s3540_s3 + $0x198] sm:$0xff] }
  0x3f   : > { %v460_v32 = vld [vmem:[#allocation2 + $0x18] sm:$0xf]  ;;  %v530_v38 = vshll.u32 %v483_v20, 16  ;;  %1648 = vmatpush.bf16.msrb.mxu2 %v2767_v3 }
  0x40   : > { %791 = vmatpush.bf16.msrb.mxu1 %v2710_v40  ;;  %1340 = vmatpush.bf16.msrb.mxu0 %v2746_v36  ;;  %v459_v9 = vld [vmem:[#allocation2 + $0x10] sm:$0xf]  ;;  %v818_v54 = vld [vmem:[#allocation2 + $0x18] sm:$0xe]  ;;  %v603_v5 = vsel %vm3088_vm11, %v598_v17, %v602_v7  ;;  %v535_v29 = vshrl.u32 %v460_v32, 16  ;;  %v538_v47 = vshll.u32 %v460_v32, 16 }
  0x41   : > { %v2732_v11 = vld [vmem:[#allocation2 + $0xc] sm:$0xf0]  ;;  %v521_v21 = vshrl.u32 %v459_v9, 16  ;;  %v524_v18 = vshll.u32 %v459_v9, 16  ;;  %v484_v26 = vld [vmem:[#allocation2 + $0x1c] sm:$0x1]  ;;  %v628_v33 = vunpack.c.l.b16 %v603_v5  ;;  %1892 = vmatpush.bf16.msrb.mxu3 %v2777_v42 }
  0x42   : > { %v817_v12 = vld [vmem:[#allocation2 + $0x10] sm:$0xe]  ;;  %v2382_v22 = vor.u32 %v2732_v11, %v2381_v60  ;;  %v532_v34 = vrot.slane %v530_v38, 5  ;;  %v544_v10 = vshll.u32 %v484_v26, 16  ;;  %v537_v39 = vrot.slane %v535_v29, 4 }
  0x43   : > { %v2309_v4 = vrot.slane %v817_v12, 9  ;;  %v523_v27 = vrot.slane %v521_v21, 4  ;;  %v526_v28 = vrot.slane %v524_v18, 5  ;;  %v852_v40 = vrot.slane %v483_v20, 5  ;;  %v1128_v48 = vld [vmem:[#allocation2 + $0x10] sm:$0xf] }
  0x44   : > { %792 = vmatpush.bf16.msrb.mxu1 %v2709_v61  ;;  %1341 = vmatpush.bf16.msrb.mxu0 %v2745_v62  ;;  %v2310_v41 = vrot.slane %v818_v54, 9  ;;  %v632_v43 = vpack.c.b16 %v628_v33, %v627_v25  ;;  %v540_v45 = vrot.slane %v538_v47, 5  ;;  %v856_v46 = vrot.slane %v484_v26, 5  ;;  %v3238_v62 = vld [vmem:[#allocation2 + $0xc] sm:$0x1]  ;;  %v2766_v42 = vld [vmem:[%s3540_s3 + $0x190] sm:$0xff] }
  0x45   : > { %1097 = vmatmul.bf16.vlgmr.msra.gmra.mxu3 %v2382_v22  ;;  %v527_v37 = vor.u32 %v526_v28, %v523_v27  ;;  %v853_v2 = vsel %vm3070_vm10, %v2309_v4, %v852_v40  ;;  %v1145_v36 = vrot.slane %v1143_v63, 4  ;;  %v546_v56 = vrot.slane %v544_v10, 5  ;;  %v820_v9 = vld [vmem:[#allocation2 + $0x28] sm:$0xe]  ;;  %v2385_v18 = vld [vmem:[#allocation2 + $0x18] sm:$0xf]  ;;  %1649 = vmatpush.bf16.msrb.mxu2 %v2766_v42 }
  0x46   : > { %v541_v55 = vor.u32 %v540_v45, %v537_v39  ;;  %v857_v57 = vsel %vm3070_vm10, %v2310_v41, %v856_v46  ;;  %v893_v58 = vunpack.c.l.b16 %v853_v2  ;;  %v1157_v63 = vshrl.u32 %v1128_v48, 16  ;;  %v2757_v20 = vld [vmem:[%s3540_s3 + $0x168] sm:$0xff]  ;;  %v2733_v22 = vld [vmem:[#allocation2 + $0x1c] sm:$0xf0]  ;;  %v1130_v33 = vld [vmem:[#allocation2 + $0x18] sm:$0xf] }
  0x47   : > { %v528_v50 = vrot.slane %v527_v37, 4  ;;  %708 = vmatmul.bf16.gmra.mxu1 %v632_v43  ;;  %v894_v61 = vunpack.c.l.b16 %v857_v57  ;;  %v1160_v1 = vshll.u32 %v1128_v48, 16  ;;  %v1152_v24 = vshll.u32 %v3238_v62, 16  ;;  %v2776_v10 = vld [vmem:[%s3540_s3 + $0x1e0] sm:$0xff]  ;;  %v3276_v45 = vld [vmem:[%s3540_s3 + $0x230] sm:$0xff] }
  0x48   : > { %793 = vmatpush.bf16.msrb.mxu1 %v2708_v15  ;;  %1342 = vmatpush.bf16.msrb.mxu0 %v2744_v16  ;;  %v542_v7 = vrot.slane %v541_v55, 4  ;;  %v3243_v15 = vld [vmem:[#allocation2 + $0x14] sm:$0x1]  ;;  %v1159_v16 = vrot.slane %v1157_v63, 4  ;;  %v1149_v32 = vor.u32 %v1148_v52, %v1145_v36  ;;  %v2311_v38 = vrot.slane %v819_v8, 9 }
  0x49   : > { %v533_v60 = vsel %vm3088_vm11, %v528_v50, %v532_v34  ;;  %v900_v12 = vpack.c.b16 %v894_v61, %v893_v58  ;;  %v1162_v17 = vrot.slane %v1160_v1, 5  ;;  %v860_v54 = vrot.slane %v3115_v6, 5  ;;  %v3260_v6 = vld [vmem:[%s3540_s3 + $0x238] sm:$0xff]  ;;  %v1132_v43 = vld [vmem:[#allocation2 + $0x20] sm:$0xf]  ;;  %1893 = vmatpush.bf16.msrb.mxu3 %v2776_v10  ;;  %v2754_v42 = vld [vmem:[%s3540_s3 + $0x150] sm:$0xff] }
  0x4a   : > { %v623_v11 = vunpack.c.l.b16 %v533_v60  ;;  %v547_v21 = vsel %vm3088_vm11, %v542_v7, %v546_v56  ;;  %v1166_v5 = vshll.u32 %v3243_v15, 16  ;;  %v2312_v26 = vrot.slane %v820_v9, 9  ;;  %v2775_v50 = vld [vmem:[%s3540_s3 + $0x1d8] sm:$0xff]  ;;  %v3290_v63 = vld [vmem:[#allocation2 + $0x24] sm:$0x1] }
  0x4b   : > { %v624_v25 = vunpack.c.l.b16 %v547_v21  ;;  %968 = vmatmul.bf16.gmra.mxu2 %v900_v12  ;;  %v1163_v4 = vor.u32 %v1162_v17, %v1159_v16  ;;  %v864_v27 = vrot.slane %v3127_v19, 5  ;;  %v2386_v29 = vor.u32 %v2733_v22, %v2385_v18  ;;  %v2756_v19 = vld [vmem:[%s3540_s3 + $0x160] sm:$0xff]  ;;  %v3288_v61 = vld [vmem:[#allocation2 + $0x1c] sm:$0x1]  ;;  %v2765_v12 = vld [vmem:[%s3540_s3 + $0x188] sm:$0xff] }
  0x4c   : > { %1509 = vmatpush.bf16.msra.mxu1 %v2759_v30  ;;  %v2261_v30 = vld [vmem:[#allocation2] sm:$0xf]  ;;  %v1150_v34 = vrot.slane %v1149_v32, 4  ;;  %v1154_v47 = vrot.slane %v1152_v24, 5  ;;  %v1168_v39 = vrot.slane %v1166_v5, 5  ;;  %v861_v40 = vsel %vm3070_vm10, %v2311_v38, %v860_v54  ;;  %2064 = vmatpush.bf16.msra.mxu0 %v3260_v6 }
  0x4d   : > { %v630_v28 = vpack.c.b16 %v624_v25, %v623_v11  ;;  %v1164_v37 = vrot.slane %v1163_v4, 4  ;;  %v865_v41 = vsel %vm3070_vm10, %v2312_v26, %v864_v27  ;;  %v1171_v46 = vshrl.u32 %v1130_v33, 16  ;;  %1894 = vmatpush.bf16.msrb.mxu3 %v2775_v50  ;;  %v821_v11 = vld [vmem:[#allocation2 + $0x30] sm:$0xe]  ;;  %1650 = vmatpush.bf16.msrb.mxu2 %v2765_v12  ;;  %v2389_v18 = vld [vmem:[#allocation2 + $0x28] sm:$0xf] }
  0x4e   : > { %v1174_v48 = vshll.u32 %v1130_v33, 16  ;;  %v2803_v2 = vunpack.c.h.bf16 %v2960_v23  ;;  %v2262_v36 = vor.u32 %v2704_v35, %v2261_v30  ;;  %v1155_v52 = vsel %vm3088_vm11, %v1150_v34, %v1154_v47  ;;  %v2734_v22 = vld [vmem:[#allocation2 + $0x2c] sm:$0xf0]  ;;  %v1134_v34 = vld [vmem:[#allocation2 + $0x28] sm:$0xf] }
  0x4f   : > { %698 = vmatmul.bf16.gmra.mxu0 %v630_v28  ;;  %v896_v55 = vunpack.c.l.b16 %v865_v41  ;;  %v1169_v56 = vsel %vm3088_vm11, %v1164_v37, %v1168_v39  ;;  %v1185_v57 = vshrl.u32 %v1132_v43, 16  ;;  %v1188_v58 = vshll.u32 %v1132_v43, 16  ;;  %v2265_v47 = vld [vmem:[#allocation2 + $0x10] sm:$0xf]  ;;  %v2785_v41 = vld [vmem:[%s3540_s3 + $0x228] sm:$0xff] }
  0x50   : > { %1510 = vmatpush.bf16.msra.mxu1 %v2758_v53  ;;  %v895_v53 = vunpack.c.l.b16 %v861_v40  ;;  %v294_v60 = vsub.f32 %v2803_v2, %v2939_v13  ;;  %2065 = vmatpush.bf16.msra.mxu0 %v3276_v45  ;;  %v1173_v23 = vrot.slane %v1171_v46, 4  ;;  %v1176_v1 = vrot.slane %v1174_v48, 5  ;;  %v2755_v13 = vld [vmem:[%s3540_s3 + $0x158] sm:$0xff]  ;;  %v1136_v35 = vld [vmem:[#allocation2 + $0x30] sm:$0xf] }
  0x51   : > { %v1271_v7 = vunpack.c.l.b16 %v1155_v52  ;;  %v1272_v8 = vunpack.c.l.b16 %v1169_v56  ;;  %v1187_v16 = vrot.slane %v1185_v57, 4  ;;  %v1190_v17 = vrot.slane %v1188_v58, 5  ;;  %v454_v2 = vld [vmem:[#allocation2 + $0x44] sm:$0x1]  ;;  %v2773_v58 = vld [vmem:[%s3540_s3 + $0x1c8] sm:$0xff] }
  0x52   : > { %v305_v3 = vmul.f32 %v2944_v14, %v294_v60  ;;  %v901_v9 = vpack.c.b16 %v896_v55, %v895_v53  ;;  %v2764_v14 = vld [vmem:[%s3540_s3 + $0x180] sm:$0xff]  ;;  %v1177_v24 = vor.u32 %v1176_v1, %v1173_v23  ;;  %v1180_v25 = vshll.u32 %v3288_v61, 16 }
  0x53   : > { %v1194_v32 = vshll.u32 %v3290_v63, 16  ;;  %v1279_v54 = vpack.c.b16 %v1272_v8, %v1271_v7  ;;  %v2313_v4 = vrot.slane %v821_v11, 9  ;;  %v868_v5 = vrot.slane %v3174_v31, 5  ;;  %1651 = vmatpush.bf16.msrb.mxu2 %v2764_v14  ;;  %v2784_v56 = vld [vmem:[%s3540_s3 + $0x220] sm:$0xff]  ;;  %v1681_v7 = vld [vmem:[#allocation2 + $0x10] sm:$0xf] }
  0x54   : > { %1511 = vmatpush.bf16.msra.mxu1 %v2757_v20  ;;  %v822_v20 = vld [vmem:[#allocation2 + $0x38] sm:$0xe]  ;;  %v313_v21 = vmax.f32 %v305_v3, 0.0  ;;  %v1191_v27 = vor.u32 %v1190_v17, %v1187_v16  ;;  %v872_v28 = vrot.slane %v3193_v49, 5  ;;  %v2390_v33 = vor.u32 %v2734_v22, %v2389_v18  ;;  %v2774_v49 = vld [vmem:[%s3540_s3 + $0x1d0] sm:$0xff]  ;;  %2066 = vmatpush.bf16.msra.mxu0 %v2785_v41 }
  0x55   : > { %1102 = vmatmul.bf16.gmra.mxu3 %v2386_v29  ;;  %v2314_v26 = vrot.slane %v822_v20, 9  ;;  %v1178_v37 = vrot.slane %v1177_v24, 4  ;;  %v1182_v39 = vrot.slane %v1180_v25, 5  ;;  %v1196_v40 = vrot.slane %v1194_v32, 5  ;;  %v1683_v8 = vld [vmem:[#allocation2 + $0x18] sm:$0xf] }
  0x56   : > { %v321_v38 = vpack.c.bf16 %v313_v21, %v313_v21  ;;  %v869_v31 = vsel %vm3070_vm10, %v2313_v4, %v868_v5  ;;  %v1192_v43 = vrot.slane %v1191_v27, 4  ;;  %v1202_v52 = vshll.u32 %v1134_v34, 16  ;;  %1895 = vmatpush.bf16.msrb.mxu3 %v2774_v49  ;;  %v3335_v11 = vld [vmem:[#allocation2 + $0x2c] sm:$0x1]  ;;  %v2772_v32 = vld [vmem:[%s3540_s3 + $0x1c0] sm:$0xff] }
  0x57   : > { %794 = vmatmul.bf16.vlgmr.msrb.gmra.mxu1 %v2262_v36  ;;  %2834 = vmatpush.bf16.msra.mxu2 %v3260_v6  ;;  %v2705_v6 = vld [vmem:[#allocation2 + $0x14] sm:$0xf0]  ;;  %v873_v46 = vsel %vm3070_vm10, %v2314_v26, %v872_v28  ;;  %v1199_v36 = vshrl.u32 %v1134_v34, 16  ;;  %v1213_v53 = vshrl.u32 %v1136_v35, 16  ;;  %v1216_v55 = vshll.u32 %v1136_v35, 16  ;;  %v2753_v25 = vld [vmem:[%s3540_s3 + $0x148] sm:$0xff] }
  0x58   : > { %1512 = vmatpush.bf16.msra.mxu1 %v2756_v19  ;;  %v379_v29 = vshrl.u32 %v321_v38, 16  ;;  %v382_v30 = vshll.u32 %v321_v38, 16  ;;  %v451_v19 = vld [vmem:[#allocation2 + $0x40] sm:$0xf]  ;;  %v2266_v60 = vor.u32 %v2705_v6, %v2265_v47  ;;  %v897_v23 = vunpack.c.l.b16 %v869_v31  ;;  %2067 = vmatpush.bf16.msra.mxu0 %v2784_v56  ;;  %v3347_v47 = vld [vmem:[#allocation2 + $0x14] sm:$0x1] }
  0x59   : > { %v898_v1 = vunpack.c.l.b16 %v873_v46  ;;  %v1183_v59 = vsel %vm3088_vm11, %v1178_v37, %v1182_v39  ;;  %v1204_v12 = vrot.slane %v1202_v52, 5  ;;  %v1215_v16 = vrot.slane %v1213_v53, 4  ;;  %v2269_v35 = vld [vmem:[#allocation2 + $0x20] sm:$0xf]  ;;  %v2706_v49 = vld [vmem:[#allocation2 + $0x24] sm:$0xf0] }
  0x5a   : > { %v381_v10 = vrot.slane %v379_v29, 7  ;;  %v1218_v17 = vrot.slane %v1216_v55, 5  ;;  %1896 = vmatpush.bf16.msrb.mxu3 %v2773_v58  ;;  %v1698_v20 = vshrl.u32 %v1681_v7, 16  ;;  %v1701_v21 = vshll.u32 %v1681_v7, 16  ;;  %v2783_v46 = vld [vmem:[%s3540_s3 + $0x218] sm:$0xff] }
  0x5b   : > { %973 = vmatmul.bf16.gmra.mxu2 %v901_v9  ;;  %v1197_v9 = vsel %vm3088_vm11, %v1192_v43, %v1196_v40  ;;  %v1715_v14 = vshll.u32 %v1683_v8, 16  ;;  %v1273_v18 = vunpack.c.l.b16 %v1183_v59  ;;  %v902_v24 = vpack.c.b16 %v898_v1, %v897_v23  ;;  %v1685_v58 = vld [vmem:[#allocation2 + $0x20] sm:$0xf]  ;;  %v1687_v7 = vld [vmem:[#allocation2 + $0x28] sm:$0xf] }
  0x5c   : > { %1513 = vmatpush.bf16.msra.mxu1 %v2755_v13  ;;  %v384_v48 = vor.u32 %v382_v30, %v381_v10  ;;  %v385_v50 = vrot.slane %v381_v10, 4  ;;  %2835 = vmatpush.bf16.msra.mxu2 %v3276_v45  ;;  %v1201_v13 = vrot.slane %v1199_v36, 4  ;;  %v1712_v45 = vshrl.u32 %v1683_v8, 16  ;;  %v3349_v10 = vld [vmem:[#allocation2 + $0x1c] sm:$0x1]  ;;  %v2782_v36 = vld [vmem:[%s3540_s3 + $0x210] sm:$0xff] }
  0x5d   : > { %v1274_v22 = vunpack.c.l.b16 %v1197_v9  ;;  %v1208_v38 = vshll.u32 %v3335_v11, 16  ;;  %v1219_v5 = vor.u32 %v1218_v17, %v1215_v16  ;;  %v1222_v26 = vshll.u32 %v3337_v0, 16  ;;  %2068 = vmatpush.bf16.msra.mxu0 %v2783_v46 }
  0x5e   : > { %v452_v57 = vsel %vm3007_vm7, %v384_v48, %v451_v19  ;;  %v455_v3 = vsel %vm3020_vm8, %v385_v50, %v454_v2  ;;  %v1205_v4 = vor.u32 %v1204_v12, %v1201_v13  ;;  %1897 = vmatpush.bf16.msrb.mxu3 %v2772_v32  ;;  %v1700_v28 = vrot.slane %v1698_v20, 4  ;;  %v2752_v48 = vld [vmem:[%s3540_s3 + $0x140] sm:$0xff]  ;;  %v1138_v50 = vld [vmem:[#allocation2 + $0x38] sm:$0xf]  ;;  %v2781_v12 = vld [vmem:[%s3540_s3 + $0x208] sm:$0xff] }
  0x5f   : > { %1343 = vmatmul.bf16.vlgmr.msrb.gmra.mxu0 %v1279_v54  ;;  %453 = vst [vmem:[#allocation2 + $0x40] sm:$0xf] %v452_v57  ;;  %v2393_v54 = vld [vmem:[#allocation2 + $0x38] sm:$0xf]  ;;  %v1703_v29 = vrot.slane %v1701_v21, 5  ;;  %v1714_v30 = vrot.slane %v1712_v45, 4  ;;  %v1280_v34 = vpack.c.b16 %v1274_v22, %v1273_v18  ;;  %v2270_v52 = vor.u32 %v2706_v49, %v2269_v35 }
  0x60   : > { %1514 = vmatpush.bf16.msra.mxu1 %v2754_v42  ;;  %456 = vst [vmem:[#allocation2 + $0x44] sm:$0x1] %v455_v3  ;;  %2836 = vmatpush.bf16.msra.mxu2 %v2785_v41  ;;  %v1210_v19 = vrot.slane %v1208_v38, 5  ;;  %v1206_v39 = vrot.slane %v1205_v4, 4  ;;  %v1220_v40 = vrot.slane %v1219_v5, 4  ;;  %v1224_v31 = vrot.slane %v1222_v26, 5 }
  0x61   : > { %v1704_v41 = vor.u32 %v1703_v29, %v1700_v28  ;;  %v1707_v42 = vshll.u32 %v3347_v47, 16  ;;  %v1721_v43 = vshll.u32 %v3349_v10, 16  ;;  %v2760_v57 = vld [vmem:[#allocation2 + $0x14] sm:$0xf0]  ;;  %v1227_v8 = vshrl.u32 %v1138_v50, 16  ;;  %2069 = vmatpush.bf16.msra.mxu0 %v2782_v36  ;;  %v2780_v26 = vld [vmem:[%s3540_s3 + $0x200] sm:$0xff] }
  0x62   : > { %v1211_v53 = vsel %vm3088_vm11, %v1206_v39, %v1210_v19  ;;  %v1225_v55 = vsel %vm3088_vm11, %v1220_v40, %v1224_v31  ;;  %v1230_v59 = vshll.u32 %v1138_v50, 16  ;;  %v1726_v16 = vshrl.u32 %v1685_v58, 16  ;;  %v3369_v18 = vld [vmem:[#allocation2 + $0x3c] sm:$0x1]  ;;  %v3380_v19 = vld [vmem:[#allocation2 + $0x24] sm:$0x1] }
  0x63   : > { %v1709_v23 = vrot.slane %v1707_v42, 5  ;;  %v1723_v3 = vrot.slane %v1721_v43, 5  ;;  %v1729_v17 = vshll.u32 %v1685_v58, 16  ;;  %v1740_v20 = vshrl.u32 %v1687_v7, 16  ;;  %v3382_v35 = vld [vmem:[#allocation2 + $0x2c] sm:$0x1] }
  0x64   : > { %1515 = vmatpush.bf16.msra.mxu1 %v2753_v25  ;;  %2837 = vmatpush.bf16.msra.mxu2 %v2784_v56  ;;  %v2549_v56 = vld [vmem:[#allocation2 + $0x10] sm:$0xf]  ;;  %v1275_v21 = vunpack.c.l.b16 %v1211_v53  ;;  %v1743_v25 = vshll.u32 %v1687_v7, 16  ;;  %v1229_v38 = vrot.slane %v1227_v8, 4  ;;  %v1236_v40 = vshll.u32 %v3369_v18, 16 }
  0x65   : > { %1107 = vmatmul.bf16.gmra.mxu3 %v2390_v33  ;;  %v1717_v33 = vrot.slane %v1715_v14, 5  ;;  %v2550_v45 = vor.u32 %v2760_v57, %v2549_v56  ;;  %v1276_v14 = vunpack.c.l.b16 %v1225_v55  ;;  %2070 = vmatpush.bf16.msra.mxu0 %v2781_v12  ;;  %v1731_v28 = vrot.slane %v1729_v17, 5  ;;  %v2707_v53 = vld [vmem:[#allocation2 + $0x34] sm:$0xf0]  ;;  %v2553_v8 = vld [vmem:[#allocation2 + $0x20] sm:$0xf] }
  0x66   : > { %v2735_v27 = vld [vmem:[#allocation2 + $0x3c] sm:$0xf0]  ;;  %v1742_v29 = vrot.slane %v1740_v20, 4  ;;  %v1735_v42 = vshll.u32 %v3380_v19, 16  ;;  %v1749_v43 = vshll.u32 %v3382_v35, 16 }
  0x67   : > { %799 = vmatmul.bf16.gmra.mxu1 %v2266_v60  ;;  %v2394_v37 = vor.u32 %v2735_v27, %v2393_v54  ;;  %v1718_v6 = vor.u32 %v1717_v33, %v1714_v30  ;;  %v1140_v2 = vld [vmem:[#allocation2 + $0x40] sm:$0xf]  ;;  %v1705_v60 = vrot.slane %v1704_v41, 4  ;;  %v3375_v32 = vld [vmem:[#allocation2 + $0x44] sm:$0x1]  ;;  %v1232_v54 = vrot.slane %v1230_v59, 5 }
  0x68   : > { %2838 = vmatpush.bf16.msra.mxu2 %v2783_v46  ;;  %1516 = vmatpush.bf16.msra.mxu1 %v2752_v48  ;;  %v1241_v9 = vshrl.u32 %v1140_v2, 16  ;;  %v1244_v13 = vshll.u32 %v1140_v2, 16  ;;  %v1728_v27 = vrot.slane %v1726_v16, 4  ;;  %v1745_v30 = vrot.slane %v1743_v25, 5  ;;  %v2273_v48 = vld [vmem:[#allocation2 + $0x30] sm:$0xf] }
  0x69   : > { %v1719_v1 = vrot.slane %v1718_v6, 4  ;;  %v1710_v22 = vsel %vm3088_vm11, %v1705_v60, %v1709_v23  ;;  %v1233_v39 = vor.u32 %v1232_v54, %v1229_v38  ;;  %v1250_v49 = vshll.u32 %v3375_v32, 16  ;;  %2071 = vmatpush.bf16.msra.mxu0 %v2780_v26  ;;  %v1689_v60 = vld [vmem:[#allocation2 + $0x30] sm:$0xf]  ;;  %v1691_v23 = vld [vmem:[#allocation2 + $0x38] sm:$0xf] }
  0x6a   : > { %v1243_v4 = vrot.slane %v1241_v9, 4  ;;  %v1246_v5 = vrot.slane %v1244_v13, 5  ;;  %v1826_v33 = vunpack.c.l.b16 %v1710_v22  ;;  %v1732_v41 = vor.u32 %v1731_v28, %v1728_v27  ;;  %v2761_v59 = vld [vmem:[#allocation2 + $0x24] sm:$0xf0]  ;;  %v1373_v16 = vld [vmem:[#allocation2 + $0x10] sm:$0xe] }
  0x6b   : > { %978 = vmatmul.bf16.gmra.mxu2 %v902_v24  ;;  %v1724_v24 = vsel %vm3088_vm11, %v1719_v1, %v1723_v3  ;;  %v1746_v6 = vor.u32 %v1745_v30, %v1742_v29  ;;  %v1234_v50 = vrot.slane %v1233_v39, 4  ;;  %v1238_v2 = vrot.slane %v1236_v40, 5  ;;  %v1372_v9 = vld [vmem:[#allocation2 + $0x8] sm:$0xe]  ;;  %v1927_v40 = vld [vmem:[#allocation2 + $0x10] sm:$0xe] }
  0x6c   : > { %2839 = vmatpush.bf16.msra.mxu2 %v2782_v36  ;;  %v1247_v31 = vor.u32 %v1246_v5, %v1243_v4  ;;  %v1733_v55 = vrot.slane %v1732_v41, 4  ;;  %v1737_v56 = vrot.slane %v1735_v42, 5  ;;  %v1751_v58 = vrot.slane %v1749_v43, 5 }
  0x6d   : > { %v1747_v57 = vrot.slane %v1746_v6, 4  ;;  %v2274_v1 = vor.u32 %v2707_v53, %v2273_v48  ;;  %v1239_v3 = vsel %vm3088_vm11, %v1234_v50, %v1238_v2  ;;  %v1754_v17 = vshrl.u32 %v1689_v60, 16 }
  0x6e   : > { %v1248_v36 = vrot.slane %v1247_v31, 4  ;;  %v1738_v13 = vsel %vm3088_vm11, %v1733_v55, %v1737_v56  ;;  %v1757_v20 = vshll.u32 %v1689_v60, 16  ;;  %v1402_v22 = vrot.slane %v3243_v15, 5  ;;  %v1928_v31 = vld [vmem:[#allocation2 + $0x18] sm:$0xe] }
  0x6f   : > { %1348 = vmatmul.bf16.gmra.mxu0 %v1280_v34  ;;  %v1827_v34 = vunpack.c.l.b16 %v1724_v24  ;;  %v1277_v24 = vunpack.c.l.b16 %v1239_v3  ;;  %v2554_v38 = vor.u32 %v2761_v59, %v2553_v8  ;;  %v2475_v54 = vrot.slane %v1372_v9, 9  ;;  %v1695_v60 = vld [vmem:[#allocation2 + $0x48] sm:$0xf]  ;;  %v2557_v3 = vld [vmem:[#allocation2 + $0x30] sm:$0xf] }
  0x70   : > { %2840 = vmatpush.bf16.msra.mxu2 %v2781_v12  ;;  %v1752_v12 = vsel %vm3088_vm11, %v1747_v57, %v1751_v58  ;;  %v2476_v4 = vrot.slane %v1373_v16, 9  ;;  %v1828_v5 = vunpack.c.l.b16 %v1738_v13  ;;  %v1756_v27 = vrot.slane %v1754_v17, 4  ;;  %v1693_v58 = vld [vmem:[#allocation2 + $0x40] sm:$0xf] }
  0x71   : > { %v1834_v46 = vpack.c.b16 %v1827_v34, %v1826_v33  ;;  %v1759_v28 = vrot.slane %v1757_v20, 5  ;;  %v3398_v33 = vld [vmem:[#allocation2 + $0x34] sm:$0x1]  ;;  %v3400_v34 = vld [vmem:[#allocation2 + $0x3c] sm:$0x1]  ;;  %v1953_v48 = vrot.slane %v3347_v47, 5 }
  0x72   : > { %v1403_v15 = vsel %vm3070_vm10, %v2476_v4, %v1402_v22  ;;  %v1763_v41 = vshll.u32 %v3398_v33, 16  ;;  %v1777_v6 = vshll.u32 %v3400_v34, 16  ;;  %v1957_v50 = vrot.slane %v3349_v10, 5  ;;  %v2762_v47 = vld [vmem:[#allocation2 + $0x34] sm:$0xf0] }
  0x73   : > { %v2643_v2 = vrot.slane %v1927_v40, 9  ;;  %v1375_v10 = vld [vmem:[#allocation2 + $0x20] sm:$0xe]  ;;  %v1782_v9 = vshrl.u32 %v1693_v58, 16  ;;  %v1785_v13 = vshll.u32 %v1693_v58, 16  ;;  %v1799_v16 = vshll.u32 %v1695_v60, 16 }
  0x74   : > { %2841 = vmatpush.bf16.msra.mxu2 %v2780_v26  ;;  %v1829_v26 = vunpack.c.l.b16 %v1752_v12  ;;  %v1765_v53 = vrot.slane %v1763_v41, 5  ;;  %v1779_v56 = vrot.slane %v1777_v6, 5  ;;  %v1796_v12 = vshrl.u32 %v1695_v60, 16  ;;  %v1377_v58 = vld [vmem:[#allocation2 + $0x30] sm:$0xe] }
  0x75   : > { %1112 = vmatmul.bf16.gmra.mxu3 %v2394_v37  ;;  %v1281_v37 = vpack.c.b16 %v1276_v14, %v1275_v21  ;;  %v1768_v21 = vshrl.u32 %v1691_v23, 16  ;;  %v1398_v14 = vrot.slane %v3238_v62, 5  ;;  %v2478_v22 = vrot.slane %v1375_v10, 9 }
  0x76   : > { %v1835_v39 = vpack.c.b16 %v1829_v26, %v1828_v5  ;;  %v1784_v4 = vrot.slane %v1782_v9, 4  ;;  %v1787_v5 = vrot.slane %v1785_v13, 5  ;;  %v1798_v26 = vrot.slane %v1796_v12, 4  ;;  %v1933_v13 = vld [vmem:[#allocation2 + $0x40] sm:$0xe] }
  0x77   : > { %804 = vmatmul.bf16.gmra.mxu1 %v2270_v52  ;;  %v1252_v52 = vrot.slane %v1250_v49, 5  ;;  %v1770_v29 = vrot.slane %v1768_v21, 4  ;;  %v1399_v62 = vsel %vm3070_vm10, %v2475_v54, %v1398_v14  ;;  %v1760_v49 = vor.u32 %v1759_v28, %v1756_v27  ;;  %v1929_v54 = vld [vmem:[#allocation2 + $0x20] sm:$0xe]  ;;  %v1934_v12 = vld [vmem:[#allocation2 + $0x48] sm:$0xe] }
  0x78   : > { %v1445_v43 = vunpack.c.l.b16 %v1399_v62  ;;  %v2558_v21 = vor.u32 %v2762_v47, %v2557_v3  ;;  %v1406_v14 = vrot.slane %v3288_v61, 5  ;;  %v1801_v27 = vrot.slane %v1799_v16, 5 }
  0x79   : > { %v1253_v7 = vsel %vm3088_vm11, %v1248_v36, %v1252_v52  ;;  %v2644_v36 = vrot.slane %v1928_v31, 9  ;;  %v1761_v52 = vrot.slane %v1760_v49, 4  ;;  %v1788_v40 = vor.u32 %v1787_v5, %v1784_v4 }
  0x7a   : > { %v1278_v25 = vunpack.c.l.b16 %v1253_v7  ;;  %v1374_v7 = vld [vmem:[#allocation2 + $0x18] sm:$0xe]  ;;  %v1802_v49 = vor.u32 %v1801_v27, %v1798_v26  ;;  %v2480_v10 = vrot.slane %v1377_v58, 9  ;;  %v1973_v5 = vrot.slane %v3400_v34, 5 }
  0x7b   : > { %1652 = vmatmul.bf16.vlgmr.msrb.gmra.mxu2 %v2550_v45  ;;  %v1771_v45 = vshll.u32 %v1691_v23, 16  ;;  %v1954_v23 = vsel %vm3070_vm10, %v2643_v2, %v1953_v48  ;;  %v1766_v8 = vsel %vm3088_vm11, %v1761_v52, %v1765_v53 }
  0x7c   : > { %v2000_v17 = vunpack.c.l.b16 %v1954_v23 }
  0x7d   : > { %v1773_v30 = vrot.slane %v1771_v45, 5  ;;  %v2477_v45 = vrot.slane %v1374_v7, 9  ;;  %v1414_v7 = vrot.slane %v3335_v11, 5  ;;  %v1931_v11 = vld [vmem:[#allocation2 + $0x30] sm:$0xe] }
  0x7f   : > { %1353 = vmatmul.bf16.gmra.mxu0 %v1281_v37  ;;  %v1282_v37 = vpack.c.b16 %v1278_v25, %v1277_v24  ;;  %v1774_v42 = vor.u32 %v1773_v30, %v1770_v29  ;;  %v1410_v24 = vrot.slane %v3290_v63, 5  ;;  %v1830_v25 = vunpack.c.l.b16 %v1766_v8  ;;  %v3420_v29 = vld [vmem:[#allocation2 + $0x44] sm:$0x1]  ;;  %v3422_v30 = vld [vmem:[#allocation2 + $0x4c] sm:$0x1] }
  0x80   : > { %v1930_v63 = vld [vmem:[#allocation2 + $0x28] sm:$0xe]  ;;  %v1791_v31 = vshll.u32 %v3420_v29, 16  ;;  %v1805_v41 = vshll.u32 %v3422_v30, 16  ;;  %v1418_v8 = vrot.slane %v3337_v0, 5 }
  0x81   : > { %v1775_v55 = vrot.slane %v1774_v42, 4  ;;  %v1411_v61 = vsel %vm3070_vm10, %v2478_v22, %v1410_v24  ;;  %v1932_v22 = vld [vmem:[#allocation2 + $0x38] sm:$0xe] }
  0x82   : > { %v1448_v6 = vunpack.c.l.b16 %v1411_v61  ;;  %v1793_v2 = vrot.slane %v1791_v31, 5  ;;  %v1419_v51 = vsel %vm3070_vm10, %v2480_v10, %v1418_v8  ;;  %v2648_v4 = vrot.slane %v1932_v22, 9 }
  0x83   : > { %v1780_v59 = vsel %vm3088_vm11, %v1775_v55, %v1779_v56  ;;  %v2561_v55 = vld [vmem:[#allocation2 + $0x40] sm:$0xf]  ;;  %v2763_v56 = vld [vmem:[#allocation2 + $0x44] sm:$0xf0] }
  0x85   : > { %1898 = vmatmul.bf16.vlgmr.msrb.gmra.mxu3 %v1834_v46  ;;  %v1446_v46 = vunpack.c.l.b16 %v1403_v15  ;;  %v2645_v15 = vrot.slane %v1929_v54, 9  ;;  %v1969_v54 = vrot.slane %v3398_v33, 5  ;;  %v1974_v33 = vsel %vm3070_vm10, %v2648_v4, %v1973_v5 }
  0x87   : > { %809 = vmatmul.bf16.gmra.mxu1 %v2274_v1  ;;  %v1453_v57 = vpack.c.b16 %v1446_v46, %v1445_v43  ;;  %v1958_v1 = vsel %vm3070_vm10, %v2644_v36, %v1957_v50  ;;  %v2646_v43 = vrot.slane %v1930_v63, 9  ;;  %v1965_v46 = vrot.slane %v3382_v35, 5  ;;  %v1378_v63 = vld [vmem:[#allocation2 + $0x38] sm:$0xe] }
  0x88   : > { %v2001_v20 = vunpack.c.l.b16 %v1958_v1  ;;  %v1789_v50 = vrot.slane %v1788_v40, 4  ;;  %v1803_v36 = vrot.slane %v1802_v49, 4  ;;  %v2562_v1 = vor.u32 %v2763_v56, %v2561_v55 }
  0x89   : > { %v1966_v53 = vsel %vm3070_vm10, %v2646_v43, %v1965_v46  ;;  %v2481_v31 = vrot.slane %v1378_v63, 9  ;;  %v1422_v49 = vrot.slane %v3369_v18, 5 }
  0x8a   : > { %v2008_v28 = vpack.c.b16 %v2001_v20, %v2000_v17  ;;  %v2003_v23 = vunpack.c.l.b16 %v1966_v53  ;;  %v1794_v35 = vsel %vm3088_vm11, %v1789_v50, %v1793_v2  ;;  %v1977_v20 = vrot.slane %v3420_v29, 5 }
  0x8b   : > { %1657 = vmatmul.bf16.gmra.mxu2 %v2554_v38  ;;  %v1831_v38 = vunpack.c.l.b16 %v1780_v59  ;;  %v1832_v59 = vunpack.c.l.b16 %v1794_v35 }
  0x8d   : > { %v1836_v62 = vpack.c.b16 %v1831_v38, %v1830_v25  ;;  %v1450_v25 = vunpack.c.l.b16 %v1419_v51  ;;  %v2647_v38 = vrot.slane %v1931_v11, 9 }
  0x8f   : > { %1358 = vmatmul.bf16.gmra.mxu0 %v1282_v37  ;;  %v1407_v37 = vsel %vm3070_vm10, %v2477_v45, %v1406_v14  ;;  %v2649_v45 = vrot.slane %v1933_v13, 9  ;;  %v2650_v14 = vrot.slane %v1934_v12, 9  ;;  %v1970_v61 = vsel %vm3070_vm10, %v2647_v38, %v1969_v54 }
  0x90   : > { %v1447_v42 = vunpack.c.l.b16 %v1407_v37  ;;  %v2004_v34 = vunpack.c.l.b16 %v1970_v61 }
  0x91   : > { %v1978_v26 = vsel %vm3070_vm10, %v2649_v45, %v1977_v20 }
  0x92   : > { %v1454_v52 = vpack.c.b16 %v1448_v6, %v1447_v42  ;;  %v2006_v29 = vunpack.c.l.b16 %v1978_v26  ;;  %v1426_v42 = vrot.slane %v3375_v32, 5 }
  0x95   : > { %1903 = vmatmul.bf16.gmra.mxu3 %v1835_v39  ;;  %v1961_v39 = vrot.slane %v3380_v19, 5  ;;  %v1807_v19 = vrot.slane %v1805_v41, 5 }
  0x97   : > { %1517 = vmatmul.bf16.vlgmr.msra.gmra.mxu1 %v1453_v57  ;;  %v1962_v48 = vsel %vm3070_vm10, %v2645_v15, %v1961_v39  ;;  %v1376_v57 = vld [vmem:[#allocation2 + $0x28] sm:$0xe]  ;;  %v1808_v3 = vsel %vm3088_vm11, %v1803_v36, %v1807_v19  ;;  %v2005_v15 = vunpack.c.l.b16 %v1974_v33 }
  0x98   : > { %v2002_v60 = vunpack.c.l.b16 %v1962_v48  ;;  %v2479_v47 = vrot.slane %v1376_v57, 9  ;;  %v1833_v9 = vunpack.c.l.b16 %v1808_v3  ;;  %v1423_v48 = vsel %vm3070_vm10, %v2481_v31, %v1422_v49 }
  0x99   : > { %v2010_v43 = vpack.c.b16 %v2005_v15, %v2004_v34  ;;  %v1451_v2 = vunpack.c.l.b16 %v1423_v48 }
  0x9a   : > { %v2009_v16 = vpack.c.b16 %v2003_v23, %v2002_v60  ;;  %v1415_v17 = vsel %vm3070_vm10, %v2479_v47, %v1414_v7  ;;  %v1837_v0 = vpack.c.b16 %v1833_v9, %v1832_v59 }
  0x9b   : > { %1662 = vmatmul.bf16.gmra.mxu2 %v2558_v21  ;;  %v1981_v21 = vrot.slane %v3422_v30, 5  ;;  %v1449_v24 = vunpack.c.l.b16 %v1415_v17 }
  0x9d   : > { %v1982_v27 = vsel %vm3070_vm10, %v2650_v14, %v1981_v21 }
  0x9e   : > { %v2007_v30 = vunpack.c.l.b16 %v1982_v27 }
  0x9f   : > { %2072 = vmatmul.bf16.vlgmr.msra.gmra.mxu0 %v2008_v28  ;;  %v1455_v28 = vpack.c.b16 %v1450_v25, %v1449_v24 }
  0xa0   : > { %v2011_v39 = vpack.c.b16 %v2007_v30, %v2006_v29 }
  0xa5   : > { %1908 = vmatmul.bf16.gmra.mxu3 %v1836_v62  ;;  %v1379_v62 = vld [vmem:[#allocation2 + $0x40] sm:$0xe] }
  0xa6   : > { %v2482_v41 = vrot.slane %v1379_v62, 9 }
  0xa7   : > { %1522 = vmatmul.bf16.gmra.mxu1 %v1454_v52 }
  0xa8   : > { %v1427_v50 = vsel %vm3070_vm10, %v2482_v41, %v1426_v42 }
  0xa9   : > { %v1452_v36 = vunpack.c.l.b16 %v1427_v50 }
  0xab   : > { %1667 = vmatmul.bf16.gmra.mxu2 %v2562_v1  ;;  %v1456_v52 = vpack.c.b16 %v1452_v36, %v1451_v2 }
  0xaf   : > { %2077 = vmatmul.bf16.gmra.mxu0 %v2009_v16 }
  0xb4   : > { %v704_v37 = vpop.f32.mrf.mxu1 }
  0xb5   : > { %1913 = vmatmul.bf16.gmra.mxu3 %v1837_v0 }
  0xb7   : > { %1527 = vmatmul.bf16.gmra.mxu1 %v1455_v28  ;;  %v694_v40 = vpop.f32.mrf.mxu0 }
  0xba   : > { %v964_v6 = vpop.f32.mrf.mxu2 }
  0xbb   : > { %2087 = vmatmul.bf16.vlgmr.msra.gmra.mxu2 %v2011_v39 }
  0xbc   : > { %v706_v46 = vpop.f32.mrf.mxu1 }
  0xbf   : > { %2082 = vmatmul.bf16.gmra.mxu0 %v2010_v43  ;;  %v696_v19 = vpop.f32.mrf.mxu0 }
  0xc2   : > { %v966_v53 = vpop.f32.mrf.mxu2 }
  0xc4   : > { %v709_v18 = vpop.f32.mrf.mxu1 }
  0xc7   : > { %1532 = vmatmul.bf16.gmra.mxu1 %v1456_v52  ;;  %v2805_v52 = vld [vmem:[%s3499_s17] sm:$0xff]  }
  0xc8   : > { %v1098_v55 = vpop.f32.mrf.mxu3 }
  0xcc   : > { %v699_v32 = vpop.f32.mrf.mxu0  ;;  %v711_v56 = vpop.f32.mrf.mxu1 }
  0xce   : > { %v969_v58 = vpop.f32.mrf.mxu2 }
  0xd0   : > { %v1100_v57 = vpop.f32.mrf.mxu3 }
  0xd4   : > { %v701_v60 = vpop.f32.mrf.mxu0  ;;  %v795_v23 = vpop.f32.mrf.mxu1 }
  0xd5   : > { %v796_v1 = vadd.f32 %v795_v23, %v694_v40 }
  0xd6   : > { %v971_v44 = vpop.f32.mrf.mxu2 }
  0xd7   : > { %v984_v3 = vadd.f32 %v964_v6, %v796_v1 }
  0xd8   : > { %v3464_v35 = vpop.f32.mrf.mxu3 }
  0xd9   : > { %v1118_v41 = vadd.f32 %v1098_v55, %v984_v3  ;;  %v2806_v55 = vunpack.c.l.bf16 %v2805_v52 }
  0xdc   : > { %v1344_v47 = vpop.f32.mrf.mxu0  ;;  %v797_v7 = vpop.f32.mrf.mxu1 }
  0xdd   : > { %v798_v10 = vadd.f32 %v797_v7, %v696_v19  ;;  %v1364_v6 = vadd.f32 %v1344_v47, %v1118_v41 }
  0xde   : > { %v974_v59 = vpop.f32.mrf.mxu2 }
  0xdf   : > { %v985_v9 = vadd.f32 %v966_v53, %v798_v10  ;;  %v2807_v10 = vunpack.c.h.bf16 %v2805_v52 }
  0xe0   : > { %v3466_v8 = vpop.f32.mrf.mxu3 }
  0xe1   : > { %v1119_v36 = vadd.f32 %v1100_v57, %v985_v9 }
  0xe4   : > { %v1346_v13 = vpop.f32.mrf.mxu0  ;;  %v800_v12 = vpop.f32.mrf.mxu1 }
  0xe5   : > { %v801_v16 = vadd.f32 %v800_v12, %v699_v32 }
  0xe6   : > { %v976_v51 = vpop.f32.mrf.mxu2 }
  0xe7   : > { %v986_v20 = vadd.f32 %v969_v58, %v801_v16 }
  0xe8   : > { %v3468_v17 = vpop.f32.mrf.mxu3 }
  0xe9   : > { %v1120_v1 = vadd.f32 %v3464_v35, %v986_v20  ;;  %v2823_v35 = vld [vmem:[%s3499_s17 + $0x8] sm:$0xff]  }
  0xec   : > { %v1349_v21 = vpop.f32.mrf.mxu0  ;;  %v802_v11 = vpop.f32.mrf.mxu1 }
  0xed   : > { %v803_v45 = vadd.f32 %v802_v11, %v701_v60  ;;  %v1366_v7 = vadd.f32 %v1349_v21, %v1120_v1 }
  0xee   : > { %v979_v0 = vpop.f32.mrf.mxu2 }
  0xef   : > { %v987_v22 = vadd.f32 %v971_v44, %v803_v45 }
  0xf0   : > { %v3470_v14 = vpop.f32.mrf.mxu3 }
  0xf1   : > { %v1121_v16 = vadd.f32 %v3466_v8, %v987_v22 }
  0xf4   : > { %v3472_v24 = vpop.f32.mrf.mxu0  ;;  %v805_v25 = vpop.f32.mrf.mxu1 }
  0xf5   : > { %v806_v38 = vadd.f32 %v805_v25, %v704_v37  ;;  %v1367_v25 = vadd.f32 %v3472_v24, %v1121_v16 }
  0xf6   : > { %v981_v4 = vpop.f32.mrf.mxu2 }
  0xf7   : > { %v3476_v5 = vadd.f32 %v974_v59, %v806_v38  ;;  %v2810_v38 = vunpack.c.l.bf16 %v2823_v35 }
  0xf8   : > { %v3474_v54 = vpop.f32.mrf.mxu3 }
  0xfc   : > { %v3478_v26 = vpop.f32.mrf.mxu0  ;;  %v807_v27 = vpop.f32.mrf.mxu1 }
  0xfd   : > { %v808_v28 = vadd.f32 %v807_v27, %v706_v46 }
  0xfe   : > { %v1653_v29 = vpop.f32.mrf.mxu2 }
  0xff   : > { %v3480_v30 = vadd.f32 %v976_v51, %v808_v28 }
 0x100   : > { %v3482_v61 = vpop.f32.mrf.mxu3 }
 0x104   : > { %v3484_v33 = vpop.f32.mrf.mxu0  ;;  %v810_v63 = vpop.f32.mrf.mxu1 }
 0x105   : > { %v811_v62 = vadd.f32 %v810_v63, %v709_v18  ;;  %v1365_v18 = vadd.f32 %v1346_v13, %v1119_v36 }
 0x106   : > { %v1655_v37 = vpop.f32.mrf.mxu2 }
 0x107   : > { %v3486_v34 = vadd.f32 %v979_v0, %v811_v62 }
 0x108   : > { %v1899_v15 = vpop.f32.mrf.mxu3 }
 0x10c   : > { %v3488_v39 = vpop.f32.mrf.mxu0  ;;  %v812_v40 = vpop.f32.mrf.mxu1 }
 0x10d   : > { %v813_v31 = vadd.f32 %v812_v40, %v711_v56  ;;  %v2811_v40 = vunpack.c.h.bf16 %v2823_v35 }
 0x10e   : > { %v1658_v49 = vpop.f32.mrf.mxu2 }
 0x10f   : > { %v3490_v42 = vadd.f32 %v981_v4, %v813_v31 }
 0x110   : > { %v1901_v43 = vpop.f32.mrf.mxu3 }
 0x114   : > { %v3492_v46 = vpop.f32.mrf.mxu0  ;;  %v1518_v48 = vpop.f32.mrf.mxu1 }
 0x115   : > { %v1538_v50 = vadd.f32 %v1518_v48, %v1364_v6  ;;  %v1123_v6 = vadd.f32 %v3470_v14, %v3480_v30 }
 0x116   : > { %v1660_v2 = vpop.f32.mrf.mxu2 }
 0x117   : > { %v1673_v19 = vadd.f32 %v1653_v29, %v1538_v50  ;;  %v1122_v29 = vadd.f32 %v3468_v17, %v3476_v5  ;;  %v2824_v5 = vld [vmem:[%s3499_s17 + $0x10] sm:$0xff]   ;;  %v1369_v50 = vadd.f32 %v3484_v33, %v1123_v6 }
 0x118   : > { %v1904_v23 = vpop.f32.mrf.mxu3  ;;  %v2814_v36 = vunpack.c.l.bf16 %v2824_v5 }
 0x119   : > { %v1919_v53 = vadd.f32 %v1899_v15, %v1673_v19 }
 0x11c   : > { %v2073_v32 = vpop.f32.mrf.mxu0  ;;  %v1520_v56 = vpop.f32.mrf.mxu1 }
 0x11d   : > { %v2093_v58 = vadd.f32 %v2073_v32, %v1919_v53  ;;  %v1539_v60 = vadd.f32 %v1520_v56, %v1365_v18 }
 0x11e   : > { %v1663_v3 = vpop.f32.mrf.mxu2 }
 0x11f   : > { %v2117_v57 = vadd.f32 %v2806_v55, %v2093_v58  ;;  %v1674_v44 = vadd.f32 %v1655_v37, %v1539_v60  ;;  %v1368_v37 = vadd.f32 %v3478_v26, %v1122_v29  ;;  %v1124_v55 = vadd.f32 %v3474_v54, %v3486_v34 }
 0x120   : > { %v1906_v45 = vpop.f32.mrf.mxu3  ;;  %v2815_v58 = vunpack.c.h.bf16 %v2824_v5 }
 0x121   : > { %2125 = vst [vmem:[%s3506_s23] sm:$0xff] %v2117_v57  ;;  %v1920_v47 = vadd.f32 %v1901_v43, %v1674_v44  ;;  %v1370_v56 = vadd.f32 %v3488_v39, %v1124_v55  ;;  %v2825_v44 = vld [vmem:[%s3499_s17 + $0x18] sm:$0xff]  }
 0x124   : > { %v2075_v59 = vpop.f32.mrf.mxu0  ;;  %v1523_v9 = vpop.f32.mrf.mxu1 }
 0x125   : > { %v2094_v13 = vadd.f32 %v2075_v59, %v1920_v47  ;;  %v1540_v12 = vadd.f32 %v1523_v9, %v1366_v7 }
 0x126   : > { %v1665_v20 = vpop.f32.mrf.mxu2 }
 0x127   : > { %v2118_v51 = vadd.f32 %v2807_v10, %v2094_v13  ;;  %v1675_v11 = vadd.f32 %v1658_v49, %v1540_v12  ;;  %v2818_v10 = vunpack.c.l.bf16 %v2825_v44 }
 0x128   : > { %v1909_v63 = vpop.f32.mrf.mxu3 }
 0x129   : > { %2126 = vst [vmem:[%s3506_s23 + $0x8] sm:$0xff] %v2118_v51  ;;  %v1921_v0 = vadd.f32 %v1904_v23, %v1675_v11 }
 0x12c   : > { %v2078_v4 = vpop.f32.mrf.mxu0  ;;  %v1525_v21 = vpop.f32.mrf.mxu1 }
 0x12d   : > { %v2095_v27 = vadd.f32 %v2078_v4, %v1921_v0  ;;  %v1541_v28 = vadd.f32 %v1525_v21, %v1367_v25 }
 0x12e   : > { %v1668_v15 = vpop.f32.mrf.mxu2 }
 0x12f   : > { %v2119_v8 = vadd.f32 %v2810_v38, %v2095_v27  ;;  %v1676_v22 = vadd.f32 %v1660_v2, %v1541_v28 }
 0x130   : > { %v1911_v2 = vpop.f32.mrf.mxu3 }
 0x131   : > { %2127 = vst [vmem:[%s3506_s23 + $0x10] sm:$0xff] %v2119_v8  ;;  %v1922_v62 = vadd.f32 %v1906_v45, %v1676_v22  ;;  %v2819_v45 = vunpack.c.h.bf16 %v2825_v44 }
 0x134   : > { %v2080_v24 = vpop.f32.mrf.mxu0  ;;  %v1528_v31 = vpop.f32.mrf.mxu1 }
 0x135   : > { %v2096_v49 = vadd.f32 %v2080_v24, %v1922_v62  ;;  %v1542_v41 = vadd.f32 %v1528_v31, %v1368_v37 }
 0x136   : > { %v1670_v18 = vpop.f32.mrf.mxu2 }
 0x137   : > { %v2120_v43 = vadd.f32 %v2811_v40, %v2096_v49  ;;  %v1677_v17 = vadd.f32 %v1663_v3, %v1542_v41  ;;  %v1125_v3 = vadd.f32 %v3482_v61, %v3490_v42 }
 0x138   : > { %v1914_v57 = vpop.f32.mrf.mxu3 }
 0x139   : > { %2128 = vst [vmem:[%s3506_s23 + $0x18] sm:$0xff] %v2120_v43  ;;  %v1923_v48 = vadd.f32 %v1909_v63, %v1677_v17  ;;  %v1371_v39 = vadd.f32 %v3492_v46, %v1125_v3 }
 0x13c   : > { %v2083_v26 = vpop.f32.mrf.mxu0  ;;  %v1530_v19 = vpop.f32.mrf.mxu1 }
 0x13d   : > { %v2097_v52 = vadd.f32 %v2083_v26, %v1923_v48  ;;  %v1543_v53 = vadd.f32 %v1530_v19, %v1369_v50 }
 0x13e   : > { %v2088_v34 = vpop.f32.mrf.mxu2 }
 0x13f   : > { %v2121_v14 = vadd.f32 %v2814_v36, %v2097_v52  ;;  %v1678_v30 = vadd.f32 %v1665_v20, %v1543_v53 }
 0x140   : > { %v1916_v51 = vpop.f32.mrf.mxu3 }
 0x141   : > { %2129 = vst [vmem:[%s3506_s23 + $0x20] sm:$0xff] %v2121_v14  ;;  %v1924_v32 = vadd.f32 %v1911_v2, %v1678_v30 }
 0x144   : > { %v2085_v33 = vpop.f32.mrf.mxu0  ;;  %v1533_v60 = vpop.f32.mrf.mxu1 }
 0x145   : > { %v2098_v23 = vadd.f32 %v2085_v33, %v1924_v32  ;;  %v1544_v1 = vadd.f32 %v1533_v60, %v1370_v56 }
 0x146   : > { %v2090_v35 = vpop.f32.mrf.mxu2 }
 0x147   : > { %v2122_v47 = vadd.f32 %v2815_v58, %v2098_v23  ;;  %v1679_v54 = vadd.f32 %v1668_v15, %v1544_v1 }
 0x149   : > { %2130 = vst [vmem:[%s3506_s23 + $0x28] sm:$0xff] %v2122_v47  ;;  %v1925_v7 = vadd.f32 %v1914_v57, %v1679_v54 }
 0x14b   : > { %v2099_v59 = vadd.f32 %v2088_v34, %v1925_v7 }
 0x14c   : > { %v1535_v9 = vpop.f32.mrf.mxu1 }
 0x14d   : > { %v2123_v13 = vadd.f32 %v2818_v10, %v2099_v59  ;;  %v1545_v12 = vadd.f32 %v1535_v9, %v1371_v39 }
 0x14f   : > { %2131 = vst [vmem:[%s3506_s23 + $0x30] sm:$0xff] %v2123_v13  ;;  %v1680_v16 = vadd.f32 %v1670_v18, %v1545_v12 }
 0x151   : > { %v1926_v11 = vadd.f32 %v1916_v51, %v1680_v16 }
 0x153   : > { %v2100_v61 = vadd.f32 %v2090_v35, %v1926_v11 }
 0x155   : > { %v2124_v42 = vadd.f32 %v2819_v45, %v2100_v61 }
 0x157   : > { %2132 = vst [vmem:[%s3506_s23 + $0x38] sm:$0xff] %v2124_v42 }
 0x158 PF: > { %s15_s18 = sadd.s32 1, %s2859_s18  }
 0x159   : > { %p12_p4 = scmp.ge.s32.totalorder %s15_s18, 4  }
 0x15b   :  { %14 = sbr.rel (!%p12_p4) target bundleno = 1 (0x1), region = 83 }

// kernel: downsample_block_forward.4
= control target key start
LH: loop header
LB: loop body
LE: loop exit
PB: predicated region body
PF: predicated region fallthrough
CT: control target
= control target key end

     0   :  { %s4072_s30 = smov 0   ;;  %s5288_s0 = inlined_call_operand.vmem [shape: bf16[2,9,9,128], index: 0, kind: input, shape index: {}]   ;;  %s5289_s1 = inlined_call_operand.vmem [shape: bf16[2,9,9,128], index: 1, kind: input, shape index: {}]   ;;  %s5290_s2 = inlined_call_operand.vmem [shape: bf16[2,9,9,128], index: 2, kind: input, shape index: {}]   ;;  %s5291_s3 = inlined_call_operand.vmem [shape: bf16[2,9,9,128], index: 3, kind: input, shape index: {}]   ;;  %s5292_s4 = inlined_call_operand.vmem [shape: f32[1,1,128], index: 4, kind: input, shape index: {}]   ;;  %s5293_s5 = inlined_call_operand.vmem [shape: f32[1,1,128], index: 5, kind: input, shape index: {}]   ;;  %s5294_s6 = inlined_call_operand.vmem [shape: bf16[9,128,128], index: 6, kind: input, shape index: {}]   ;;  %s5295_s7 = inlined_call_operand.vmem [shape: bf16[2,8,8,128], index: 7, kind: output, shape index: {0}]   ;;  %s5296_s8 = inlined_call_operand.vmem [shape: bf16[2,8,8,128], index: 8, kind: output, shape index: {1}]   ;;  %s5297_s9 = inlined_call_operand.vmem [shape: f32[2,2,128], index: 9, kind: output, shape index: {2}]  }
   0x1 LB: > { %s3277_s10 = sadd.s32 4294967295, %s4019_s30   ;;  %p3281_p0 = scmp.ge.s32.totalorder %s4019_s30, 1  ;;  %s4019_s30 = sphi %s4072_s30, %s20_s30  }
   0x2   : > { %p322_p1 = scmp.lt.s32.totalorder %s4019_s30, 3 }
   0x4   : > { %p323_p2 = pnand %p3281_p0, %p322_p1 }
   0x6   : > { %326 = sbr.rel (%p323_p2) target bundleno = 386 (0x182), region = 48 }
   0xb   : > { %v3858_v0 = vld [vmem:[%s5294_s6 + $0xb8] sm:$0xff]  ;;  %p382_p3 = scmp.lt.s32.totalorder %s3277_s10, 1  ;;  %v3857_v2 = vld [vmem:[%s5294_s6 + $0xb0] sm:$0xff]  ;;  %v3856_v5 = vld [vmem:[%s5294_s6 + $0xa8] sm:$0xff]  ;;  %vm534_vm0 = vcmask 1040384   ;;  %vm683_vm6 = vcmask 1046528  }
   0xc   : > { %v3870_v1 = vld [vmem:[%s5294_s6 + $0x1b8] sm:$0xff]  ;;  %3981 = vmatpush.bf16.msra.mxu1 %v3858_v0  ;;  %928 = vmatpush.bf16.msra.mxu0 %v3858_v0  ;;  %v3869_v3 = vld [vmem:[%s5294_s6 + $0x1b0] sm:$0xff]  ;;  %v3868_v7 = vld [vmem:[%s5294_s6 + $0x1a8] sm:$0xff]  ;;  %vm535_vm1 = vsmask.f32 256 }
   0xd   : > { %s5305_s10 = smov (!%p382_p3, %s3277_s10), 1  ;;  %1181 = vmatpush.bf16.msra.mxu2 %v3870_v1  ;;  %v3878_v4 = vld [vmem:[%s5294_s6 + $0x238] sm:$0xff]  ;;  %v3877_v6 = vld [vmem:[%s5294_s6 + $0x230] sm:$0xff]  ;;  %v4118_v8 = vld [vmem:[%s5292_s4] ss:$0 sm:$0xff] }
   0xe   : > { %s4098_s21 = smul.u32 72, %s5305_s10  ;;  %1515 = vmatpush.bf16.msra.mxu3 %v3878_v4  ;;  %v4127_v16 = vld [vmem:[%s5293_s5] ss:$0 sm:$0xff]  ;;  %v3876_v18 = vld [vmem:[%s5294_s6 + $0x228] sm:$0xff]  ;;  %v553_v38 = vld [vmem:[#allocation2 + $0x24] sm:$0x1] }
   0xf   : > { %v3855_v17 = vld [vmem:[%s5294_s6 + $0xa0] sm:$0xff]  ;;  %v3854_v42 = vld [vmem:[%s5294_s6 + $0x98] sm:$0xff]  ;;  %v557_v46 = vld [vmem:[#allocation2 + $0x2c] sm:$0x1]  ;;  %vm732_vm3 = vsmask.f32 3328 }
  0x10   : > { %3982 = vmatpush.bf16.msra.mxu1 %v3857_v2  ;;  %929 = vmatpush.bf16.msra.mxu0 %v3857_v2  ;;  %s4113_s11 = scalar_lea.vmem %s5288_s0, %s4098_s21  ;;  %v3867_v28 = vld [vmem:[%s5294_s6 + $0x1a0] sm:$0xff]  ;;  %v3866_v48 = vld [vmem:[%s5294_s6 + $0x198] sm:$0xff]  ;;  %vm4170_vm2 = vmand %vm534_vm0, %vm535_vm1  ;;  %s4210_s22 = scalar_lea.vmem %s5289_s1, %s4098_s21  ;;  %vm733_vm4 = vsmask.f32 7440 }
  0x11   : > { %1182 = vmatpush.bf16.msra.mxu2 %v3869_v3  ;;  %v427_v9 = vld [vmem:[%s4113_s11 + $0x20] sm:$0xf]  ;;  %v428_v10 = vld [vmem:[%s4113_s11 + $0x24] sm:$0x1]  ;;  %v429_v11 = vld [vmem:[%s4113_s11 + $0x28] sm:$0xf]  ;;  %s4236_s15 = scalar_lea.vmem %s5290_s2, %s4098_s21  ;;  %s4692_s29 = scalar_lea.vmem %s5291_s3, %s4098_s21 }
  0x12   : > { %v430_v12 = vld [vmem:[%s4113_s11 + $0x2c] sm:$0x1]  ;;  %v445_v13 = vunpack.c.l.bf16 %v427_v9  ;;  %v446_v14 = vunpack.c.l.bf16 %v428_v10  ;;  %v447_v15 = vunpack.c.l.bf16 %v429_v11  ;;  %1516 = vmatpush.bf16.msra.mxu3 %v3877_v6  ;;  %v419_v20 = vld [vmem:[%s4113_s11] sm:$0xf]  ;;  %v420_v24 = vld [vmem:[%s4113_s11 + $0x4] sm:$0x1] }
  0x13   : > { %v448_v19 = vunpack.c.l.bf16 %v430_v12  ;;  %v421_v25 = vld [vmem:[%s4113_s11 + $0x8] sm:$0xf]  ;;  %v422_v26 = vld [vmem:[%s4113_s11 + $0xc] sm:$0x1]  ;;  %v437_v27 = vunpack.c.l.bf16 %v419_v20  ;;  %v438_v30 = vunpack.c.l.bf16 %v420_v24  ;;  %v423_v53 = vld [vmem:[%s4113_s11 + $0x10] sm:$0xf] }
  0x14   : > { %3983 = vmatpush.bf16.msra.mxu1 %v3856_v5  ;;  %930 = vmatpush.bf16.msra.mxu0 %v3856_v5  ;;  %v466_v21 = vsub.f32 %v445_v13, %v4118_v8  ;;  %v467_v22 = vsub.f32 %v446_v14, %v4118_v8  ;;  %v468_v23 = vsub.f32 %v447_v15, %v4118_v8  ;;  %v439_v31 = vunpack.c.l.bf16 %v421_v25  ;;  %v431_v54 = vld [vmem:[%s4113_s11 + $0x30] sm:$0xf]  ;;  %v432_v59 = vld [vmem:[%s4113_s11 + $0x34] sm:$0x1]  ;;  %v433_v60 = vld [vmem:[%s4113_s11 + $0x38] sm:$0xf] }
  0x15   : > { %1183 = vmatpush.bf16.msra.mxu2 %v3868_v7  ;;  %v469_v29 = vsub.f32 %v448_v19, %v4118_v8  ;;  %v440_v32 = vunpack.c.l.bf16 %v422_v26  ;;  %v458_v36 = vsub.f32 %v437_v27, %v4118_v8  ;;  %v459_v39 = vsub.f32 %v438_v30, %v4118_v8  ;;  %v434_v2 = vld [vmem:[%s4113_s11 + $0x3c] sm:$0x1]  ;;  %v3853_v3 = vld [vmem:[%s5294_s6 + $0x90] sm:$0xff]  ;;  %v3875_v5 = vld [vmem:[%s5294_s6 + $0x220] sm:$0xff]  ;;  %s3290_s26 = sshll.u32 %s5305_s10, 1 }
  0x16   : > { %v487_v33 = vmul.f32 %v4127_v16, %v466_v21  ;;  %v488_v34 = vmul.f32 %v4127_v16, %v467_v22  ;;  %v489_v35 = vmul.f32 %v4127_v16, %v468_v23  ;;  %1517 = vmatpush.bf16.msra.mxu3 %v3876_v18  ;;  %v460_v40 = vsub.f32 %v439_v31, %v4118_v8  ;;  %v537_v7 = vld [vmem:[#allocation2 + $0x4] sm:$0x1]  ;;  %v3865_v11 = vld [vmem:[%s5294_s6 + $0x190] sm:$0xff]  ;;  %v541_v15 = vld [vmem:[#allocation2 + $0xc] sm:$0x1]  ;;  %s415_s12 = scalar_lea.vmem %s5297_s9, %s3290_s26 }
  0x17   : > { %v490_v37 = vmul.f32 %v4127_v16, %v469_v29  ;;  %v461_v41 = vsub.f32 %v440_v32, %v4118_v8  ;;  %v479_v47 = vmul.f32 %v4127_v16, %v458_v36  ;;  %v480_v50 = vmul.f32 %v4127_v16, %v459_v39  ;;  %v424_v25 = vld [vmem:[%s4113_s11 + $0x14] sm:$0x1]  ;;  %v425_v26 = vld [vmem:[%s4113_s11 + $0x18] sm:$0xf]  ;;  %v3852_v27 = vld [vmem:[%s5294_s6 + $0x88] sm:$0xff] }
  0x18   : > { %3984 = vmatpush.bf16.msra.mxu1 %v3855_v17  ;;  %931 = vmatpush.bf16.msra.mxu0 %v3855_v17  ;;  %v505_v43 = vmax.f32 %v487_v33, 0.0  ;;  %v506_v44 = vmax.f32 %v488_v34, 0.0  ;;  %v507_v45 = vmax.f32 %v489_v35, 0.0  ;;  %v481_v51 = vmul.f32 %v4127_v16, %v460_v40  ;;  %v426_v31 = vld [vmem:[%s4113_s11 + $0x1c] sm:$0x1]  ;;  %v3864_v32 = vld [vmem:[%s5294_s6 + $0x188] sm:$0xff]  ;;  %vm4304_vm5 = vmor %vm732_vm3, %vm733_vm4 }
  0x19   : > { %1184 = vmatpush.bf16.msra.mxu2 %v3867_v28  ;;  %v508_v49 = vmax.f32 %v490_v37, 0.0  ;;  %v482_v52 = vmul.f32 %v4127_v16, %v461_v41  ;;  %v497_v58 = vmax.f32 %v479_v47, 0.0  ;;  %v498_v63 = vmax.f32 %v480_v50, 0.0  ;;  %v3874_v33 = vld [vmem:[%s5294_s6 + $0x218] sm:$0xff]  ;;  %v3851_v37 = vld [vmem:[%s5294_s6 + $0x80] sm:$0xff] }
  0x1a   : > { %v523_v55 = vpack.c.bf16 %v505_v43, %v505_v43  ;;  %v524_v56 = vpack.c.bf16 %v506_v44, %v506_v44  ;;  %v525_v57 = vpack.c.bf16 %v507_v45, %v507_v45  ;;  %v499_v0 = vmax.f32 %v481_v51, 0.0  ;;  %1518 = vmatpush.bf16.msra.mxu3 %v3875_v5  ;;  %v3850_v43 = vld [vmem:[%s5294_s6 + $0x38] sm:$0xff]  ;;  %v561_v5 = vld [vmem:[#allocation2 + $0x34] sm:$0x1] }
  0x1b   : > { %v526_v61 = vpack.c.bf16 %v508_v49, %v508_v49  ;;  %v500_v1 = vmax.f32 %v482_v52, 0.0  ;;  %v515_v6 = vpack.c.bf16 %v497_v58, %v497_v58  ;;  %v441_v9 = vunpack.c.l.bf16 %v423_v53 }
  0x1c   : > { %3985 = vmatpush.bf16.msra.mxu1 %v3854_v42  ;;  %932 = vmatpush.bf16.msra.mxu0 %v3854_v42  ;;  %552 = vst [vmem:[#allocation2 + $0x20] sm:$0xf] %v523_v55  ;;  %v554_v4 = vsel %vm4170_vm2, %v524_v56, %v553_v38  ;;  %v449_v10 = vunpack.c.l.bf16 %v431_v54  ;;  %v516_v13 = vpack.c.bf16 %v498_v63, %v498_v63  ;;  %v450_v17 = vunpack.c.l.bf16 %v432_v59  ;;  %v1553_v38 = vld [vmem:[%s4210_s22 + $0x4] sm:$0x1]  ;;  %v3873_v56 = vld [vmem:[%s5294_s6 + $0x210] sm:$0xff] }
  0x1d   : > { %1185 = vmatpush.bf16.msra.mxu2 %v3866_v48  ;;  %555 = vst [vmem:[#allocation2 + $0x24] sm:$0x1] %v554_v4  ;;  %v558_v12 = vsel %vm4170_vm2, %v526_v61, %v557_v46  ;;  %v517_v14 = vpack.c.bf16 %v499_v0, %v499_v0  ;;  %v518_v18 = vpack.c.bf16 %v500_v1, %v500_v1  ;;  %v451_v20 = vunpack.c.l.bf16 %v433_v60  ;;  %v3863_v54 = vld [vmem:[%s5294_s6 + $0x180] sm:$0xff]  ;;  %v3890_v61 = vld [vmem:[%s5294_s6 + $0x78] sm:$0xff] }
  0x1e   : > { %556 = vst [vmem:[#allocation2 + $0x28] sm:$0xf] %v525_v57  ;;  %v462_v19 = vsub.f32 %v441_v9, %v4118_v8  ;;  %v452_v21 = vunpack.c.l.bf16 %v434_v2  ;;  %v538_v22 = vsel %vm4170_vm2, %v516_v13, %v537_v7  ;;  %v470_v23 = vsub.f32 %v449_v10, %v4118_v8  ;;  %1519 = vmatpush.bf16.msra.mxu3 %v3874_v33  ;;  %v2045_v60 = vld [vmem:[%s4236_s15 + $0x4] sm:$0x1]  ;;  %v3849_v2 = vld [vmem:[%s5294_s6 + $0x30] sm:$0xff] }
  0x1f   : > { %559 = vst [vmem:[#allocation2 + $0x2c] sm:$0x1] %v558_v12  ;;  %v471_v24 = vsub.f32 %v450_v17, %v4118_v8  ;;  %v542_v28 = vsel %vm4170_vm2, %v518_v18, %v541_v15  ;;  %v472_v30 = vsub.f32 %v451_v20, %v4118_v8  ;;  %v442_v40 = vunpack.c.l.bf16 %v424_v25  ;;  %v3889_v10 = vld [vmem:[%s5294_s6 + $0x70] sm:$0xff]  ;;  %v3872_v17 = vld [vmem:[%s5294_s6 + $0x208] sm:$0xff] }
  0x20   : > { %3986 = vmatpush.bf16.msra.mxu1 %v3853_v3  ;;  %933 = vmatpush.bf16.msra.mxu0 %v3853_v3  ;;  %533 = vst [vmem:[#allocation2] sm:$0xf] %v515_v6  ;;  %v483_v29 = vmul.f32 %v4127_v16, %v462_v19  ;;  %v473_v34 = vsub.f32 %v452_v21, %v4118_v8  ;;  %v443_v41 = vunpack.c.l.bf16 %v425_v26  ;;  %v1571_v44 = vunpack.c.l.bf16 %v1553_v38  ;;  %v3848_v26 = vld [vmem:[%s5294_s6 + $0x28] sm:$0xff] }
  0x21   : > { %1186 = vmatpush.bf16.msra.mxu2 %v3865_v11  ;;  %539 = vst [vmem:[#allocation2 + $0x4] sm:$0x1] %v538_v22  ;;  %v491_v35 = vmul.f32 %v4127_v16, %v470_v23  ;;  %v492_v36 = vmul.f32 %v4127_v16, %v471_v24  ;;  %v444_v46 = vunpack.c.l.bf16 %v426_v31  ;;  %v4021_v49 = vmov 0   ;;  %v3888_v38 = vld [vmem:[%s5294_s6 + $0x68] sm:$0xff] }
  0x22   : > { %540 = vst [vmem:[#allocation2 + $0x8] sm:$0xf] %v517_v14  ;;  %v501_v39 = vmax.f32 %v483_v29, 0.0  ;;  %v493_v51 = vmul.f32 %v4127_v16, %v472_v30  ;;  %v1589_v55 = vsub.f32 %v1571_v44, %v4118_v8  ;;  %v494_v57 = vmul.f32 %v4127_v16, %v473_v34  ;;  %1520 = vmatpush.bf16.msra.mxu3 %v3873_v56  ;;  %v565_v34 = vld [vmem:[#allocation2 + $0x3c] sm:$0x1] }
  0x23   : > { %v588_v42 = vld [vmem:[#allocation2 + $0x20] sm:$0x1]  ;;  %543 = vst [vmem:[#allocation2 + $0xc] sm:$0x1] %v542_v28  ;;  %v509_v45 = vmax.f32 %v491_v35, 0.0  ;;  %v510_v52 = vmax.f32 %v492_v36, 0.0  ;;  %v463_v63 = vsub.f32 %v442_v40, %v4118_v8  ;;  %v464_v0 = vsub.f32 %v443_v41, %v4118_v8 }
  0x24   : > { %3987 = vmatpush.bf16.msra.mxu1 %v3852_v27  ;;  %934 = vmatpush.bf16.msra.mxu0 %v3852_v27  ;;  %v589_v47 = vsel %vm4170_vm2, 0, %v588_v42  ;;  %v728_v48 = vld [vmem:[#allocation2 + $0x24] sm:$0x1]  ;;  %572 = vst [vmem:[#allocation2] sm:$0xf] %v4021_v49  ;;  %v519_v50 = vpack.c.bf16 %v501_v39, %v501_v39  ;;  %v1607_v3 = vmul.f32 %v4127_v16, %v1589_v55  ;;  %v2063_v9 = vunpack.c.l.bf16 %v2045_v60 }
  0x25   : > { %590 = vst [vmem:[#allocation2 + $0x20] sm:$0x1] %v589_v47  ;;  %v591_v53 = vld [vmem:[#allocation2 + $0x28] sm:$0x1]  ;;  %1187 = vmatpush.bf16.msra.mxu2 %v3864_v32  ;;  %v801_v1 = vshll.u32 %v728_v48, 16  ;;  %v528_v4 = vpack.c.bf16 %v510_v52, %v510_v52  ;;  %v465_v6 = vsub.f32 %v444_v46, %v4118_v8  ;;  %v511_v11 = vmax.f32 %v493_v51, 0.0 }
  0x26   : > { %v592_v58 = vsel %vm4170_vm2, 0, %v591_v53  ;;  %v729_v59 = vld [vmem:[#allocation2 + $0x2c] sm:$0x1]  ;;  %544 = vst [vmem:[#allocation2 + $0x10] sm:$0xf] %v519_v50  ;;  %v527_v12 = vpack.c.bf16 %v509_v45, %v509_v45  ;;  %v512_v18 = vmax.f32 %v494_v57, 0.0  ;;  %v484_v22 = vmul.f32 %v4127_v16, %v463_v63  ;;  %1521 = vmatpush.bf16.msra.mxu3 %v3872_v17 }
  0x27   : > { %593 = vst [vmem:[#allocation2 + $0x28] sm:$0x1] %v592_v58  ;;  %v815_v13 = vshll.u32 %v729_v59, 16  ;;  %v1625_v21 = vmax.f32 %v1607_v3, 0.0  ;;  %v4268_v23 = vmul.f32 %v4127_v16, %v464_v0  ;;  %v4270_v24 = vrot.slane %v801_v1, 5  ;;  %v3847_v50 = vld [vmem:[%s5294_s6 + $0x20] sm:$0xff] }
  0x28   : > { %3988 = vmatpush.bf16.msra.mxu1 %v3851_v37  ;;  %935 = vmatpush.bf16.msra.mxu0 %v3851_v37  ;;  %v573_v7 = vld [vmem:[#allocation2 + $0x4] sm:$0x1]  ;;  %v562_v27 = vsel %vm4170_vm2, %v528_v4, %v561_v5  ;;  %v486_v28 = vmul.f32 %v4127_v16, %v465_v6  ;;  %v2081_v32 = vsub.f32 %v2063_v9, %v4118_v8  ;;  %v502_v42 = vmax.f32 %v484_v22, 0.0  ;;  %v545_v63 = vld [vmem:[#allocation2 + $0x14] sm:$0x1] }
  0x29   : > { %1188 = vmatpush.bf16.msra.mxu2 %v3863_v54  ;;  %v574_v14 = vsel %vm4170_vm2, 0, %v573_v7  ;;  %v579_v15 = vld [vmem:[#allocation2 + $0x8] sm:$0x1]  ;;  %v529_v33 = vpack.c.bf16 %v511_v11, %v511_v11  ;;  %560 = vst [vmem:[#allocation2 + $0x30] sm:$0xf] %v527_v12  ;;  %v4281_v37 = vrot.slane %v815_v13, 5  ;;  %v530_v39 = vpack.c.bf16 %v512_v18, %v512_v18 }
  0x2a   : > { %575 = vst [vmem:[#allocation2 + $0x4] sm:$0x1] %v574_v14  ;;  %v580_v19 = vsel %vm4170_vm2, 0, %v579_v15  ;;  %v725_v20 = vld [vmem:[#allocation2 + $0xc] sm:$0x1]  ;;  %v1643_v41 = vpack.c.bf16 %v1625_v21, %v1625_v21  ;;  %v4293_v52 = vmul.f32 %v4127_v16, %v2081_v32  ;;  %v3871_v54 = vld [vmem:[%s5294_s6 + $0x200] sm:$0xff]  ;;  %v520_v5 = vpack.c.bf16 %v502_v42, %v502_v42 }
  0x2b   : > { %v576_v25 = vld [vmem:[#allocation2] sm:$0x1]  ;;  %581 = vst [vmem:[#allocation2 + $0x8] sm:$0x1] %v580_v19  ;;  %v759_v31 = vshll.u32 %v725_v20, 16  ;;  %v504_v55 = vmax.f32 %v486_v28, 0.0  ;;  %1522 = vmatpush.bf16.msra.mxu3 %v3871_v54 }
  0x2c   : > { %1029 = vmatpush.bf16.msrb.mxu1 %v3850_v43  ;;  %1848 = vmatpush.bf16.msrb.mxu0 %v3890_v61  ;;  %v631_v29 = vld [vmem:[#allocation2 + $0x20] sm:$0xf]  ;;  %v577_v30 = vsel %vm4170_vm2, 0, %v576_v25  ;;  %563 = vst [vmem:[#allocation2 + $0x34] sm:$0x1] %v562_v27  ;;  %v503_v43 = vmax.f32 %v4268_v23, 0.0  ;;  %v566_v61 = vsel %vm4170_vm2, %v530_v39, %v565_v34 }
  0x2d   : > { %v792_v35 = vshrl.u32 %v631_v29, 16  ;;  %v795_v36 = vshll.u32 %v631_v29, 16  ;;  %578 = vst [vmem:[#allocation2] sm:$0x1] %v577_v30  ;;  %v582_v48 = vld [vmem:[#allocation2 + $0x10] sm:$0x1]  ;;  %v522_v17 = vpack.c.bf16 %v504_v55, %v504_v55  ;;  %v546_v30 = vsel %vm4170_vm2, %v520_v5, %v545_v63 }
  0x2e   : > { %v632_v40 = vld [vmem:[#allocation2 + $0x28] sm:$0xf]  ;;  %v4290_v51 = vrot.slane %v759_v31, 5  ;;  %v583_v53 = vsel %vm4170_vm2, 0, %v582_v48  ;;  %564 = vst [vmem:[#allocation2 + $0x38] sm:$0xf] %v529_v33  ;;  %v521_v15 = vpack.c.bf16 %v503_v43, %v503_v43 }
  0x2f   : > { %v794_v44 = vrot.slane %v792_v35, 4  ;;  %v797_v45 = vrot.slane %v795_v36, 5  ;;  %v806_v46 = vshrl.u32 %v632_v40, 16  ;;  %v809_v47 = vshll.u32 %v632_v40, 16  ;;  %584 = vst [vmem:[#allocation2 + $0x10] sm:$0x1] %v583_v53 }
  0x30   : > { %1030 = vmatpush.bf16.msrb.mxu1 %v3849_v2  ;;  %1849 = vmatpush.bf16.msrb.mxu0 %v3889_v10  ;;  %v3887_v4 = vld [vmem:[%s5294_s6 + $0x60] sm:$0xff]  ;;  %v2117_v13 = vmax.f32 %v4293_v52, 0.0  ;;  %v3846_v14 = vld [vmem:[%s5294_s6 + $0x18] sm:$0xff]  ;;  %567 = vst [vmem:[#allocation2 + $0x3c] sm:$0x1] %v566_v61  ;;  %v3845_v35 = vld [vmem:[%s5294_s6 + $0x10] sm:$0xff] }
  0x31   : > { %v798_v56 = vor.u32 %v797_v45, %v794_v44  ;;  %v808_v57 = vrot.slane %v806_v46, 4  ;;  %v811_v58 = vrot.slane %v809_v47, 5  ;;  %v724_v59 = vld [vmem:[#allocation2 + $0x4] sm:$0x1]  ;;  %v3914_v23 = vld [vmem:[%s5294_s6 + $0xf8] sm:$0xff] }
  0x32   : > { %v1661_v60 = vld [vmem:[#allocation2 + $0x4] sm:$0x1]  ;;  %v628_v1 = vld [vmem:[#allocation2 + $0x8] sm:$0xf]  ;;  %v745_v2 = vshll.u32 %v724_v59, 16  ;;  %2341 = vmatpush.bf16.msrb.mxu2 %v3914_v23 }
  0x33   : > { %v1662_v3 = vsel %vm4170_vm2, %v1643_v41, %v1661_v60  ;;  %v799_v6 = vrot.slane %v798_v56, 4  ;;  %v812_v7 = vor.u32 %v811_v58, %v808_v57  ;;  %v750_v9 = vshrl.u32 %v628_v1, 16  ;;  %v3413_v22 = vld [vmem:[#allocation2 + $0x8] sm:$0xf]  ;;  %v594_v28 = vld [vmem:[#allocation2 + $0x30] sm:$0x1] }
  0x34   : > { %1031 = vmatpush.bf16.msrb.mxu1 %v3848_v26  ;;  %1850 = vmatpush.bf16.msrb.mxu0 %v3888_v38  ;;  %v753_v10 = vshll.u32 %v628_v1, 16  ;;  %1663 = vst [vmem:[#allocation2 + $0x4] sm:$0x1] %v1662_v3  ;;  %v627_v11 = vld [vmem:[#allocation2] sm:$0xf]  ;;  %v747_v12 = vrot.slane %v745_v2, 5 }
  0x35   : > { %v804_v18 = vsel %vm4304_vm5, %v799_v6, %v4270_v24  ;;  %v813_v19 = vrot.slane %v812_v7, 4  ;;  %v736_v20 = vshrl.u32 %v627_v11, 16  ;;  %v739_v21 = vshll.u32 %v627_v11, 16  ;;  %v730_v29 = vld [vmem:[#allocation2 + $0x34] sm:$0x1]  ;;  %v3886_v6 = vld [vmem:[%s5294_s6 + $0x58] sm:$0xff] }
  0x36   : > { %v868_v25 = vunpack.c.l.b16 %v804_v18  ;;  %v752_v26 = vrot.slane %v750_v9, 4  ;;  %v755_v27 = vrot.slane %v753_v10, 5  ;;  %v595_v33 = vsel %vm4170_vm2, 0, %v594_v28  ;;  %v597_v34 = vld [vmem:[#allocation2 + $0x38] sm:$0x1] }
  0x37   : > { %v818_v24 = vsel %vm4304_vm5, %v813_v19, %v4281_v37  ;;  %v738_v31 = vrot.slane %v736_v20, 4  ;;  %v741_v32 = vrot.slane %v739_v21, 5  ;;  %596 = vst [vmem:[#allocation2 + $0x30] sm:$0x1] %v595_v33  ;;  %v598_v39 = vsel %vm4170_vm2, 0, %v597_v34 }
  0x38   : > { %1032 = vmatpush.bf16.msrb.mxu1 %v3847_v50  ;;  %1851 = vmatpush.bf16.msrb.mxu0 %v3887_v4  ;;  %v869_v36 = vunpack.c.l.b16 %v818_v24  ;;  %v756_v38 = vor.u32 %v755_v27, %v752_v26  ;;  %v829_v40 = vshll.u32 %v730_v29, 16  ;;  %v549_v41 = vld [vmem:[#allocation2 + $0x1c] sm:$0x1]  ;;  %v3859_v42 = vld [vmem:[#allocation2 + $0xc] sm:$0xf0] }
  0x39   : > { %v742_v37 = vor.u32 %v741_v32, %v738_v31  ;;  %599 = vst [vmem:[#allocation2 + $0x38] sm:$0x1] %v598_v39  ;;  %v629_v43 = vld [vmem:[#allocation2 + $0x10] sm:$0xf]  ;;  %v3414_v47 = vor.u32 %v3859_v42, %v3413_v22  ;;  %v550_v48 = vsel %vm4170_vm2, %v522_v17, %v549_v41  ;;  %v731_v57 = vld [vmem:[#allocation2 + $0x3c] sm:$0x1] }
  0x3a   : > { %v874_v44 = vpack.c.b16 %v869_v36, %v868_v25  ;;  %v757_v45 = vrot.slane %v756_v38, 4  ;;  %547 = vst [vmem:[#allocation2 + $0x14] sm:$0x1] %v546_v30  ;;  %v764_v54 = vshrl.u32 %v629_v43, 16  ;;  %v767_v55 = vshll.u32 %v629_v43, 16 }
  0x3b   : > { %v1697_v46 = vld [vmem:[#allocation2 + $0x4] sm:$0x1]  ;;  %v743_v50 = vrot.slane %v742_v37, 4  ;;  %548 = vst [vmem:[#allocation2 + $0x18] sm:$0xf] %v521_v15  ;;  %1189 = vmatmul.bf16.vlgmr.msra.gmra.mxu2 %v3414_v47  ;;  %v843_v61 = vshll.u32 %v731_v57, 16 }
  0x3c   : > { %1033 = vmatpush.bf16.msrb.mxu1 %v3846_v14  ;;  %v1698_v53 = vsel %vm4170_vm2, 0, %v1697_v46  ;;  %v762_v56 = vsel %vm4304_vm5, %v757_v45, %v4290_v51  ;;  %v1306_v58 = vld [vmem:[#allocation2 + $0x8] sm:$0xf]  ;;  %551 = vst [vmem:[#allocation2 + $0x1c] sm:$0x1] %v550_v48  ;;  %v766_v63 = vrot.slane %v764_v54, 4  ;;  %1852 = vmatpush.bf16.msrb.mxu0 %v3886_v6  ;;  %v2135_v46 = vpack.c.bf16 %v2117_v13, %v2117_v13 }
  0x3d   : > { %946 = vmatmul.bf16.vlgmr.msra.gmra.mxu1 %v874_v44  ;;  %1699 = vst [vmem:[#allocation2 + $0x4] sm:$0x1] %v1698_v53  ;;  %v748_v59 = vsel %vm4304_vm5, %v743_v50, %v747_v12  ;;  %v865_v60 = vunpack.c.l.b16 %v762_v56  ;;  %v1307_v1 = vld [vmem:[#allocation2 + $0xc] sm:$0x1]  ;;  %v4344_v3 = vrot.slane %v829_v40, 5  ;;  %v769_v4 = vrot.slane %v767_v55, 5 }
  0x3e   : > { %v864_v2 = vunpack.c.l.b16 %v748_v59  ;;  %v1308_v5 = vld [vmem:[#allocation2 + $0x10] sm:$0xf]  ;;  %v1323_v51 = vshrl.u32 %v1306_v58, 16  ;;  %v4349_v9 = vrot.slane %v843_v61, 5  ;;  %v1326_v10 = vshll.u32 %v1306_v58, 16  ;;  %v3844_v45 = vld [vmem:[%s5294_s6 + $0x8] sm:$0xff] }
  0x3f   : > { %v633_v7 = vld [vmem:[#allocation2 + $0x30] sm:$0xf]  ;;  %v1332_v11 = vshll.u32 %v1307_v1, 16  ;;  %v1337_v12 = vshrl.u32 %v1308_v5, 16  ;;  %v770_v19 = vor.u32 %v769_v4, %v766_v63  ;;  %v1555_v20 = vld [vmem:[%s4210_s22 + $0xc] sm:$0x1] }
  0x40   : > { %1034 = vmatpush.bf16.msrb.mxu1 %v3845_v35  ;;  %v872_v14 = vpack.c.b16 %v865_v60, %v864_v2  ;;  %v634_v15 = vld [vmem:[#allocation2 + $0x38] sm:$0xf]  ;;  %v820_v17 = vshrl.u32 %v633_v7, 16  ;;  %v823_v18 = vshll.u32 %v633_v7, 16  ;;  %v1340_v25 = vshll.u32 %v1308_v5, 16  ;;  %v3913_v54 = vld [vmem:[%s5294_s6 + $0xf0] sm:$0xff] }
  0x41   : > { %v834_v21 = vshrl.u32 %v634_v15, 16  ;;  %v837_v22 = vshll.u32 %v634_v15, 16  ;;  %v726_v23 = vld [vmem:[#allocation2 + $0x14] sm:$0x1]  ;;  %v1573_v26 = vunpack.c.l.bf16 %v1555_v20  ;;  %v4352_v30 = vrot.slane %v770_v19, 4  ;;  %2342 = vmatpush.bf16.msrb.mxu2 %v3913_v54  ;;  %v3922_v6 = vld [vmem:[%s5294_s6 + $0x178] sm:$0xff] }
  0x42   : > { %936 = vmatmul.bf16.vlgmr.msra.gmra.mxu0 %v872_v14  ;;  %v822_v27 = vrot.slane %v820_v17, 4  ;;  %v825_v28 = vrot.slane %v823_v18, 5  ;;  %v585_v29 = vld [vmem:[#allocation2 + $0x18] sm:$0x1]  ;;  %v773_v24 = vshll.u32 %v726_v23, 16  ;;  %v1325_v36 = vrot.slane %v1323_v51, 4  ;;  %2675 = vmatpush.bf16.msrb.mxu3 %v3922_v6 }
  0x43   : > { %v836_v32 = vrot.slane %v834_v21, 4  ;;  %v839_v33 = vrot.slane %v837_v22, 5  ;;  %v586_v34 = vsel %vm4170_vm2, 0, %v585_v29  ;;  %v1309_v35 = vld [vmem:[#allocation2 + $0x14] sm:$0x1]  ;;  %v1328_v43 = vrot.slane %v1326_v10, 5 }
  0x44   : > { %v1700_v31 = vld [vmem:[#allocation2 + $0x4] sm:$0x1]  ;;  %v826_v39 = vor.u32 %v825_v28, %v822_v27  ;;  %587 = vst [vmem:[#allocation2 + $0x18] sm:$0x1] %v586_v34  ;;  %v4358_v40 = vld [vmem:[#allocation2 + $0x1c] sm:$0x1]  ;;  %v1591_v44 = vsub.f32 %v1573_v26, %v4118_v8  ;;  %1035 = vmatpush.bf16.msrb.mxu1 %v3844_v45 }
  0x45   : > { %v1701_v38 = vsel %vm4170_vm2, 0, %v1700_v31  ;;  %v4360_v41 = vrot.slane %v773_v24, 5  ;;  %v840_v37 = vor.u32 %v839_v33, %v836_v32  ;;  %v787_v42 = vshll.u32 %v4358_v40, 16  ;;  %v1557_v53 = vld [vmem:[%s4210_s22 + $0x14] sm:$0x1]  ;;  %v3902_v14 = vld [vmem:[%s5294_s6 + $0x1f8] sm:$0xff] }
  0x46   : > { %1702 = vst [vmem:[#allocation2 + $0x4] sm:$0x1] %v1701_v38  ;;  %v827_v47 = vrot.slane %v826_v39, 4  ;;  %v1339_v48 = vrot.slane %v1337_v12, 4  ;;  %v1342_v50 = vrot.slane %v1340_v25, 5  ;;  %v1329_v57 = vor.u32 %v1328_v43, %v1325_v36  ;;  %v3885_v1 = vld [vmem:[%s5294_s6 + $0x50] sm:$0xff] }
  0x47   : > { %v841_v55 = vrot.slane %v840_v37, 4  ;;  %v776_v56 = vsel %vm4304_vm5, %v4352_v30, %v4360_v41  ;;  %v1334_v52 = vrot.slane %v1332_v11, 5  ;;  %v1346_v59 = vshll.u32 %v1309_v35, 16  ;;  %v2047_v61 = vld [vmem:[%s4236_s15 + $0xc] sm:$0x1]  ;;  %1853 = vmatpush.bf16.msrb.mxu0 %v3885_v1 }
  0x48   : > { %v832_v13 = vsel %vm4304_vm5, %v827_v47, %v4344_v3  ;;  %v1343_v58 = vor.u32 %v1342_v50, %v1339_v48  ;;  %v1575_v60 = vunpack.c.l.bf16 %v1557_v53  ;;  %v2049_v63 = vld [vmem:[%s4236_s15 + $0x14] sm:$0x1]  ;;  %v1330_v5 = vrot.slane %v1329_v57, 4  ;;  %v3843_v3 = vld [vmem:[%s5294_s6] sm:$0xff]  ;;  %v3912_v22 = vld [vmem:[%s5294_s6 + $0xe8] sm:$0xff] }
  0x49   : > { %v846_v2 = vsel %vm4304_vm5, %v841_v55, %v4349_v9  ;;  %v870_v4 = vunpack.c.l.b16 %v832_v13  ;;  %v1609_v51 = vmul.f32 %v4127_v16, %v1591_v44  ;;  %v1348_v11 = vrot.slane %v1346_v59, 5  ;;  %v3884_v9 = vld [vmem:[%s5294_s6 + $0x48] sm:$0xff]  ;;  %v3860_v21 = vld [vmem:[#allocation2 + $0x1c] sm:$0xf0]  ;;  %1036 = vmatpush.bf16.msrb.mxu1 %v3843_v3  ;;  %2343 = vmatpush.bf16.msrb.mxu2 %v3912_v22  ;;  %v1669_v57 = vld [vmem:[#allocation2 + $0x14] sm:$0x1] }
  0x4a   : > { %v871_v7 = vunpack.c.l.b16 %v846_v2  ;;  %v1344_v10 = vrot.slane %v1343_v58, 4  ;;  %v1593_v12 = vsub.f32 %v1575_v60, %v4118_v8  ;;  %v1335_v17 = vsel %vm4304_vm5, %v1330_v5, %v1334_v52  ;;  %v1665_v34 = vld [vmem:[#allocation2 + $0xc] sm:$0x1]  ;;  %v1552_v35 = vld [vmem:[%s4210_s22] sm:$0xf] }
  0x4b   : > { %v630_v15 = vld [vmem:[#allocation2 + $0x18] sm:$0xf]  ;;  %v1627_v18 = vmax.f32 %v1609_v51, 0.0  ;;  %v2065_v19 = vunpack.c.l.bf16 %v2047_v61  ;;  %v2067_v20 = vunpack.c.l.bf16 %v2049_v63  ;;  %v1451_v31 = vunpack.c.l.b16 %v1335_v17  ;;  %v1554_v36 = vld [vmem:[%s4210_s22 + $0x8] sm:$0xf]  ;;  %1854 = vmatpush.bf16.msrb.mxu0 %v3884_v9  ;;  %v3883_v44 = vld [vmem:[%s5294_s6 + $0x40] sm:$0xff] }
  0x4c   : > { %v875_v25 = vpack.c.b16 %v871_v7, %v870_v4  ;;  %v778_v26 = vshrl.u32 %v630_v15, 16  ;;  %v781_v27 = vshll.u32 %v630_v15, 16  ;;  %v1349_v28 = vsel %vm4304_vm5, %v1344_v10, %v1348_v11  ;;  %v3417_v29 = vld [vmem:[#allocation2 + $0x18] sm:$0xf]  ;;  %v4430_v59 = vld [vmem:[#allocation2] sm:$0xf] }
  0x4d   : > { %v2153_v23 = vld [vmem:[#allocation2 + $0x4] sm:$0x1]  ;;  %2007 = vmatpush.bf16.msra.mxu1 %v3902_v14  ;;  %v1452_v32 = vunpack.c.l.b16 %v1349_v28  ;;  %v1611_v33 = vmul.f32 %v4127_v16, %v1593_v12  ;;  %v1645_v37 = vpack.c.bf16 %v1627_v18, %v1627_v18  ;;  %v2083_v43 = vsub.f32 %v2065_v19, %v4118_v8  ;;  %v1310_v50 = vld [vmem:[#allocation2 + $0x18] sm:$0xf]  ;;  %v4437_v63 = vld [vmem:[#allocation2 + $0x4] sm:$0xf0] }
  0x4e   : > { %v2154_v24 = vsel %vm4170_vm2, %v2135_v46, %v2153_v23  ;;  %951 = vmatmul.bf16.gmra.mxu1 %v875_v25  ;;  %v780_v38 = vrot.slane %v778_v26, 4  ;;  %v783_v39 = vrot.slane %v781_v27, 5  ;;  %v2085_v47 = vsub.f32 %v2067_v20, %v4118_v8  ;;  %v1311_v6 = vld [vmem:[#allocation2 + $0x1c] sm:$0x1]  ;;  %v1312_v30 = vld [vmem:[#allocation2 + $0x20] sm:$0xf] }
  0x4f   : > { %2155 = vst [vmem:[#allocation2 + $0x4] sm:$0x1] %v2154_v24  ;;  %v1459_v45 = vpack.c.b16 %v1452_v32, %v1451_v31  ;;  %v1629_v46 = vmax.f32 %v1611_v33, 0.0  ;;  %v3418_v48 = vor.u32 %v3860_v21, %v3417_v29  ;;  %v789_v54 = vrot.slane %v787_v42, 5  ;;  %1855 = vmatpush.bf16.msrb.mxu0 %v3883_v44  ;;  %v1313_v41 = vld [vmem:[#allocation2 + $0x24] sm:$0x1] }
  0x50   : > { %v784_v53 = vor.u32 %v783_v39, %v780_v38  ;;  %v1666_v55 = vsel %vm4170_vm2, %v1645_v37, %v1665_v34  ;;  %v4425_v52 = vmul.f32 %v4127_v16, %v2083_v43  ;;  %v4428_v58 = vmul.f32 %v4127_v16, %v2085_v47  ;;  %v1559_v17 = vld [vmem:[%s4210_s22 + $0x1c] sm:$0x1]  ;;  %v1561_v18 = vld [vmem:[%s4210_s22 + $0x24] sm:$0x1]  ;;  %v2044_v31 = vld [vmem:[%s4236_s15] sm:$0xf] }
  0x51   : > { %1523 = vmatmul.bf16.vlgmr.msra.gmra.mxu3 %v1459_v45  ;;  %v1647_v13 = vpack.c.bf16 %v1629_v46, %v1629_v46  ;;  %1667 = vst [vmem:[#allocation2 + $0xc] sm:$0x1] %v1666_v55  ;;  %1194 = vmatmul.bf16.gmra.mxu2 %v3418_v48  ;;  %v1570_v60 = vunpack.c.l.bf16 %v1552_v35  ;;  %v1572_v61 = vunpack.c.l.bf16 %v1554_v36  ;;  %v866_v42 = vunpack.c.l.b16 %v776_v56  ;;  %v2051_v23 = vld [vmem:[%s4236_s15 + $0x1c] sm:$0x1]  ;;  %v2053_v25 = vld [vmem:[%s4236_s15 + $0x24] sm:$0x1] }
  0x52   : > { %v785_v40 = vrot.slane %v784_v53, 4  ;;  %v1351_v1 = vshrl.u32 %v1310_v50, 16  ;;  %v1354_v2 = vshll.u32 %v1310_v50, 16  ;;  %v3342_v5 = vor.u32 %v4437_v63, %v4430_v59  ;;  %v3911_v26 = vld [vmem:[%s5294_s6 + $0xe0] sm:$0xff]  ;;  %v3921_v44 = vld [vmem:[%s5294_s6 + $0x170] sm:$0xff] }
  0x53   : > { %v1670_v4 = vsel %vm4170_vm2, %v1647_v13, %v1669_v57  ;;  %v1588_v51 = vsub.f32 %v1570_v60, %v4118_v8  ;;  %v1590_v3 = vsub.f32 %v1572_v61, %v4118_v8  ;;  %v2119_v7 = vmax.f32 %v4425_v52, 0.0  ;;  %2344 = vmatpush.bf16.msrb.mxu2 %v3911_v26  ;;  %v3901_v45 = vld [vmem:[%s5294_s6 + $0x1f0] sm:$0xff]  ;;  %v2046_v53 = vld [vmem:[%s4236_s15 + $0x8] sm:$0xf]  ;;  %2676 = vmatpush.bf16.msrb.mxu3 %v3921_v44  ;;  %v4508_v59 = vld [vmem:[%s5293_s5] ss:$0 sm:$0xff] }
  0x54   : > { %v790_v56 = vsel %vm4304_vm5, %v785_v40, %v789_v54  ;;  %1671 = vst [vmem:[#allocation2 + $0x14] sm:$0x1] %v1670_v4  ;;  %v1353_v10 = vrot.slane %v1351_v1, 4  ;;  %v1356_v11 = vrot.slane %v1354_v2, 5  ;;  %v2121_v9 = vmax.f32 %v4428_v58, 0.0  ;;  %v3920_v54 = vld [vmem:[%s5294_s6 + $0x168] sm:$0xff]  ;;  %2008 = vmatpush.bf16.msra.mxu1 %v3901_v45 }
  0x55   : > { %v867_v12 = vunpack.c.l.b16 %v790_v56  ;;  %v1606_v14 = vmul.f32 %v4127_v16, %v1588_v51  ;;  %v1608_v15 = vmul.f32 %v4127_v16, %v1590_v3  ;;  %v1360_v20 = vshll.u32 %v1311_v6, 16  ;;  %v3900_v61 = vld [vmem:[%s5294_s6 + $0x1e8] sm:$0xff]  ;;  %v3910_v40 = vld [vmem:[%s5294_s6 + $0xd8] sm:$0xff]  ;;  %v1316_v58 = vld [vmem:[#allocation2 + $0x30] sm:$0xf] }
  0x56   : > { %v1357_v19 = vor.u32 %v1356_v11, %v1353_v10  ;;  %v1365_v21 = vshrl.u32 %v1312_v30, 16  ;;  %v1368_v22 = vshll.u32 %v1312_v30, 16  ;;  %v1374_v24 = vshll.u32 %v1313_v41, 16  ;;  %v4486_v51 = vld [vmem:[%s5294_s6 + $0x138] sm:$0xff]  ;;  %v4492_v41 = vld [vmem:[%s5292_s4] ss:$0 sm:$0xff] }
  0x57   : > { %v873_v27 = vpack.c.b16 %v867_v12, %v866_v42  ;;  %v1624_v28 = vmax.f32 %v1606_v14, 0.0  ;;  %v1626_v29 = vmax.f32 %v1608_v15, 0.0  ;;  %v1362_v34 = vrot.slane %v1360_v20, 5  ;;  %v3861_v10 = vld [vmem:[#allocation2 + $0x2c] sm:$0xf0]  ;;  %2345 = vmatpush.bf16.msrb.mxu2 %v3910_v40  ;;  %2677 = vmatpush.bf16.msrb.mxu3 %v3920_v54 }
  0x58   : > { %v1703_v32 = vld [vmem:[#allocation2 + $0xc] sm:$0x1]  ;;  %v1358_v33 = vrot.slane %v1357_v19, 4  ;;  %v1367_v35 = vrot.slane %v1365_v21, 4  ;;  %v1370_v36 = vrot.slane %v1368_v22, 5  ;;  %v1376_v43 = vrot.slane %v1374_v24, 5  ;;  %2009 = vmatpush.bf16.msra.mxu1 %v3900_v61  ;;  %3008 = vmatpush.bf16.msra.mxu0 %v4486_v51 }
  0x59   : > { %941 = vmatmul.bf16.gmra.mxu0 %v873_v27  ;;  %v1704_v38 = vsel %vm4170_vm2, 0, %v1703_v32  ;;  %v1642_v39 = vpack.c.bf16 %v1624_v28, %v1624_v28  ;;  %v1644_v37 = vpack.c.bf16 %v1626_v29, %v1626_v29  ;;  %v1577_v48 = vunpack.c.l.bf16 %v1559_v17  ;;  %v1556_v14 = vld [vmem:[%s4210_s22 + $0x10] sm:$0xf]  ;;  %v1673_v17 = vld [vmem:[#allocation2 + $0x1c] sm:$0x1] }
  0x5a   : > { %1705 = vst [vmem:[#allocation2 + $0xc] sm:$0x1] %v1704_v38  ;;  %v1363_v46 = vsel %vm4304_vm5, %v1358_v33, %v1362_v34  ;;  %v1371_v47 = vor.u32 %v1370_v36, %v1367_v35  ;;  %v1579_v50 = vunpack.c.l.bf16 %v1561_v18  ;;  %v2137_v57 = vpack.c.bf16 %v2119_v7, %v2119_v7  ;;  %v3421_v7 = vld [vmem:[#allocation2 + $0x28] sm:$0xf]  ;;  %v1677_v18 = vld [vmem:[#allocation2 + $0x24] sm:$0x1] }
  0x5b   : > { %v1706_v55 = vld [vmem:[#allocation2 + $0x14] sm:$0x1]  ;;  %1660 = vst [vmem:[#allocation2] sm:$0xf] %v1642_v39  ;;  %v2069_v52 = vunpack.c.l.bf16 %v2051_v23  ;;  %v2071_v13 = vunpack.c.l.bf16 %v2053_v25  ;;  %v2062_v60 = vunpack.c.l.bf16 %v2044_v31  ;;  %v1595_v2 = vsub.f32 %v1577_v48, %v4118_v8  ;;  %v4515_v23 = vld [vmem:[#allocation2 + $0x10] sm:$0xf] }
  0x5c   : > { %v1707_v42 = vsel %vm4170_vm2, 0, %v1706_v55  ;;  %1664 = vst [vmem:[#allocation2 + $0x8] sm:$0xf] %v1644_v37  ;;  %v1372_v1 = vrot.slane %v1371_v47, 4  ;;  %v1597_v4 = vsub.f32 %v1579_v50, %v4118_v8  ;;  %v1453_v3 = vunpack.c.l.b16 %v1363_v46  ;;  %v1558_v25 = vld [vmem:[%s4210_s22 + $0x18] sm:$0xf] }
  0x5d   : > { %1708 = vst [vmem:[#allocation2 + $0x14] sm:$0x1] %v1707_v42  ;;  %v2087_v6 = vsub.f32 %v2069_v52, %v4118_v8  ;;  %v2064_v30 = vunpack.c.l.bf16 %v2046_v53  ;;  %v2080_v56 = vsub.f32 %v2062_v60, %v4492_v41  ;;  %v1613_v11 = vmul.f32 %v4127_v16, %v1595_v2  ;;  %v4523_v24 = vld [vmem:[#allocation2 + $0x14] sm:$0xf0]  ;;  %v1314_v32 = vld [vmem:[#allocation2 + $0x28] sm:$0xf] }
  0x5e   : > { %1037 = vmatmul.bf16.vlgmr.msrb.gmra.mxu1 %v3342_v5  ;;  %1696 = vst [vmem:[#allocation2] sm:$0xf] %v4021_v49  ;;  %v1377_v8 = vsel %vm4304_vm5, %v1372_v1, %v1376_v43  ;;  %v1615_v12 = vmul.f32 %v4127_v16, %v1597_v4  ;;  %v2089_v19 = vsub.f32 %v2071_v13, %v4492_v41  ;;  %v1574_v31 = vunpack.c.l.bf16 %v1556_v14  ;;  %v1315_v38 = vld [vmem:[#allocation2 + $0x2c] sm:$0x1]  ;;  %v1317_v45 = vld [vmem:[#allocation2 + $0x34] sm:$0x1] }
  0x5f   : > { %v1454_v15 = vunpack.c.l.b16 %v1377_v8  ;;  %v4511_v63 = vmul.f32 %v4508_v59, %v2087_v6  ;;  %v2082_v5 = vsub.f32 %v2064_v30, %v4492_v41  ;;  %v1631_v16 = vmax.f32 %v1613_v11, 0.0  ;;  %v1563_v54 = vld [vmem:[%s4210_s22 + $0x2c] sm:$0x1]  ;;  %v3919_v55 = vld [vmem:[%s5294_s6 + $0x160] sm:$0xff]  ;;  %v1565_v40 = vld [vmem:[%s4210_s22 + $0x34] sm:$0x1] }
  0x60   : > { %v1633_v20 = vmax.f32 %v1615_v12, 0.0  ;;  %v2098_v21 = vmul.f32 %v4508_v59, %v2080_v56  ;;  %v3422_v22 = vor.u32 %v3861_v10, %v3421_v7  ;;  %v2139_v26 = vpack.c.bf16 %v2121_v9, %v2121_v9  ;;  %v2055_v6 = vld [vmem:[%s4236_s15 + $0x2c] sm:$0x1]  ;;  %2678 = vmatpush.bf16.msrb.mxu3 %v3919_v55  ;;  %v2057_v8 = vld [vmem:[%s4236_s15 + $0x34] sm:$0x1] }
  0x61   : > { %v2157_v27 = vld [vmem:[#allocation2 + $0xc] sm:$0x1]  ;;  %v1460_v28 = vpack.c.b16 %v1454_v15, %v1453_v3  ;;  %v2100_v29 = vmul.f32 %v4508_v59, %v2082_v5  ;;  %v1649_v34 = vpack.c.bf16 %v1631_v16, %v1631_v16  ;;  %v4528_v9 = vmul.f32 %v4508_v59, %v2089_v19 }
  0x62   : > { %v2158_v33 = vsel %vm4170_vm2, %v2137_v57, %v2157_v27  ;;  %v1651_v35 = vpack.c.bf16 %v1633_v20, %v1633_v20  ;;  %v2116_v36 = vmax.f32 %v2098_v21, 0.0  ;;  %1199 = vmatmul.bf16.gmra.mxu2 %v3422_v22  ;;  %v2123_v39 = vmax.f32 %v4511_v63, 0.0  ;;  %v3899_v63 = vld [vmem:[%s5294_s6 + $0x1e0] sm:$0xff] }
  0x63   : > { %2159 = vst [vmem:[#allocation2 + $0xc] sm:$0x1] %v2158_v33  ;;  %1528 = vmatmul.bf16.gmra.mxu3 %v1460_v28  ;;  %v3879_v37 = vld [vmem:[#allocation2 + $0x4] sm:$0xf0]  ;;  %v3346_v43 = vor.u32 %v4523_v24, %v4515_v23  ;;  %v1576_v44 = vunpack.c.l.bf16 %v1558_v25  ;;  %v1674_v47 = vsel %vm4170_vm2, %v1649_v34, %v1673_v17  ;;  %v2118_v50 = vmax.f32 %v2100_v29, 0.0  ;;  %2010 = vmatpush.bf16.msra.mxu1 %v3899_v63 }
  0x64   : > { %v2161_v46 = vld [vmem:[#allocation2 + $0x14] sm:$0x1]  ;;  %v1678_v48 = vsel %vm4170_vm2, %v1651_v35, %v1677_v18  ;;  %v2134_v53 = vpack.c.bf16 %v2116_v36, %v2116_v36  ;;  %1675 = vst [vmem:[#allocation2 + $0x1c] sm:$0x1] %v1674_v47  ;;  %v1592_v13 = vsub.f32 %v1574_v31, %v4492_v41  ;;  %v1379_v61 = vshrl.u32 %v1314_v32, 16 }
  0x65   : > { %v2162_v57 = vsel %vm4170_vm2, %v2139_v26, %v2161_v46  ;;  %v3541_v52 = vld [vmem:[#allocation2] sm:$0xf]  ;;  %v1594_v60 = vsub.f32 %v1576_v44, %v4492_v41  ;;  %v4546_v1 = vld [vmem:[#allocation2 + $0x8] sm:$0xf]  ;;  %v2136_v2 = vpack.c.bf16 %v2118_v50, %v2118_v50  ;;  %v1382_v4 = vshll.u32 %v1314_v32, 16 }
  0x66   : > { %2163 = vst [vmem:[#allocation2 + $0x14] sm:$0x1] %v2162_v57  ;;  %v3542_v42 = vor.u32 %v3879_v37, %v3541_v52  ;;  %v1388_v3 = vshll.u32 %v1315_v38, 16  ;;  %v1610_v30 = vmul.f32 %v4508_v59, %v1592_v13  ;;  %v1381_v7 = vrot.slane %v1379_v61, 4  ;;  %v2048_v28 = vld [vmem:[%s4236_s15 + $0x10] sm:$0xf] }
  0x67   : > { %1679 = vst [vmem:[#allocation2 + $0x24] sm:$0x1] %v1678_v48  ;;  %v1612_v56 = vmul.f32 %v4508_v59, %v1594_v60  ;;  %v1393_v10 = vshrl.u32 %v1316_v58, 16  ;;  %v1384_v11 = vrot.slane %v1382_v4, 5  ;;  %v1396_v14 = vshll.u32 %v1316_v58, 16 }
  0x68   : > { %2152 = vst [vmem:[#allocation2] sm:$0xf] %v2134_v53  ;;  %v1390_v12 = vrot.slane %v1388_v3, 5  ;;  %v1402_v15 = vshll.u32 %v1317_v45, 16  ;;  %v1628_v17 = vmax.f32 %v1610_v30, 0.0  ;;  %v1581_v5 = vunpack.c.l.bf16 %v1563_v54 }
  0x69   : > { %1856 = vmatmul.bf16.vlgmr.msrb.gmra.mxu0 %v3542_v42  ;;  %2156 = vst [vmem:[#allocation2 + $0x8] sm:$0xf] %v2136_v2  ;;  %v1630_v18 = vmax.f32 %v1612_v56, 0.0  ;;  %v1395_v19 = vrot.slane %v1393_v10, 4  ;;  %v1385_v16 = vor.u32 %v1384_v11, %v1381_v7  ;;  %v1398_v20 = vrot.slane %v1396_v14, 5 }
  0x6a   : > { %v1404_v21 = vrot.slane %v1402_v15, 5  ;;  %v1583_v22 = vunpack.c.l.bf16 %v1565_v40  ;;  %v1646_v23 = vpack.c.bf16 %v1628_v17, %v1628_v17  ;;  %v1599_v26 = vsub.f32 %v1581_v5, %v4492_v41  ;;  %v2050_v38 = vld [vmem:[%s4236_s15 + $0x18] sm:$0xf]  ;;  %v1681_v46 = vld [vmem:[#allocation2 + $0x2c] sm:$0x1]  ;;  %v3909_v17 = vld [vmem:[%s5294_s6 + $0xd0] sm:$0xff] }
  0x6b   : > { %v1648_v25 = vpack.c.bf16 %v1630_v18, %v1630_v18  ;;  %v2073_v27 = vunpack.c.l.bf16 %v2055_v6  ;;  %v1709_v29 = vld [vmem:[#allocation2 + $0x1c] sm:$0x1]  ;;  %v1386_v24 = vrot.slane %v1385_v16, 4  ;;  %v1399_v31 = vor.u32 %v1398_v20, %v1395_v19  ;;  %v435_v48 = vld [vmem:[%s4113_s11 + $0x40] sm:$0xf]  ;;  %v4600_v18 = vld [vmem:[%s5294_s6 + $0x130] sm:$0xff]  ;;  %2346 = vmatpush.bf16.msrb.mxu2 %v3909_v17 }
  0x6c   : > { %v1601_v32 = vsub.f32 %v1583_v22, %v4492_v41  ;;  %v2075_v33 = vunpack.c.l.bf16 %v2057_v8  ;;  %v1710_v34 = vsel %vm4170_vm2, 0, %v1709_v29  ;;  %v2125_v35 = vmax.f32 %v4528_v9, 0.0  ;;  %1668 = vst [vmem:[#allocation2 + $0x10] sm:$0xf] %v1646_v23  ;;  %v4573_v40 = vld [vmem:[%s4210_s22 + $0x20] sm:$0xf]  ;;  %3009 = vmatpush.bf16.msra.mxu0 %v4600_v18 }
  0x6d   : > { %v1617_v36 = vmul.f32 %v4508_v59, %v1599_v26  ;;  %1711 = vst [vmem:[#allocation2 + $0x1c] sm:$0x1] %v1710_v34  ;;  %v1391_v37 = vsel %vm4304_vm5, %v1386_v24, %v1390_v12  ;;  %v1400_v44 = vrot.slane %v1399_v31, 4  ;;  %v2066_v47 = vunpack.c.l.bf16 %v2048_v28  ;;  %v1562_v6 = vld [vmem:[%s4210_s22 + $0x28] sm:$0xf]  ;;  %v3918_v19 = vld [vmem:[%s5294_s6 + $0x158] sm:$0xff] }
  0x6e   : > { %v1712_v58 = vld [vmem:[#allocation2 + $0x24] sm:$0x1]  ;;  %1042 = vmatmul.bf16.gmra.mxu1 %v3346_v43  ;;  %v1619_v45 = vmul.f32 %v4508_v59, %v1601_v32  ;;  %1672 = vst [vmem:[#allocation2 + $0x18] sm:$0xf] %v1648_v25  ;;  %v1455_v53 = vunpack.c.l.b16 %v1391_v37  ;;  %v1685_v43 = vld [vmem:[#allocation2 + $0x34] sm:$0x1]  ;;  %v2091_v55 = vsub.f32 %v2073_v27, %v4492_v41  ;;  %v2093_v61 = vsub.f32 %v2075_v33, %v4492_v41 }
  0x6f   : > { %v1713_v9 = vsel %vm4170_vm2, 0, %v1712_v58  ;;  %v2193_v50 = vld [vmem:[#allocation2] sm:$0x1]  ;;  %v1635_v54 = vmax.f32 %v1617_v36, 0.0  ;;  %v1405_v13 = vsel %vm4304_vm5, %v1400_v44, %v1404_v21  ;;  %v2141_v42 = vpack.c.bf16 %v2123_v39, %v2123_v39  ;;  %v4582_v30 = vld [vmem:[%s4113_s11 + $0x44] sm:$0x1]  ;;  %2679 = vmatpush.bf16.msrb.mxu3 %v3918_v19 }
  0x70   : > { %1714 = vst [vmem:[#allocation2 + $0x24] sm:$0x1] %v1713_v9  ;;  %v2194_v57 = vsel %vm4170_vm2, 0, %v2193_v50  ;;  %v2196_v52 = vld [vmem:[#allocation2 + $0x8] sm:$0x1]  ;;  %v1637_v60 = vmax.f32 %v1619_v45, 0.0  ;;  %v1456_v4 = vunpack.c.l.b16 %v1405_v13  ;;  %v2143_v56 = vpack.c.bf16 %v2125_v35, %v2125_v35 }
  0x71   : > { %2195 = vst [vmem:[#allocation2] sm:$0x1] %v2194_v57  ;;  %v2197_v2 = vsel %vm4170_vm2, 0, %v2196_v52  ;;  %v1653_v3 = vpack.c.bf16 %v1635_v54, %v1635_v54  ;;  %v2068_v10 = vunpack.c.l.bf16 %v2050_v38  ;;  %v2084_v8 = vsub.f32 %v2066_v47, %v4492_v41  ;;  %v1568_v11 = vld [vmem:[%s4210_s22 + $0x40] sm:$0xf]  ;;  %v3898_v35 = vld [vmem:[%s5294_s6 + $0x1d8] sm:$0xff] }
  0x72   : > { %2198 = vst [vmem:[#allocation2 + $0x8] sm:$0x1] %v2197_v2  ;;  %v1655_v7 = vpack.c.bf16 %v1637_v60, %v1637_v60  ;;  %v1461_v39 = vpack.c.b16 %v1456_v4, %v1455_v53  ;;  %v4592_v14 = vmul.f32 %v4508_v59, %v2091_v55  ;;  %v453_v15 = vunpack.c.l.bf16 %v435_v48  ;;  %v3349_v34 = vld [vmem:[#allocation2 + $0x20] sm:$0xf]  ;;  %v3841_v50 = vld [vmem:[#allocation2 + $0x24] sm:$0xf0]  ;;  %2011 = vmatpush.bf16.msra.mxu1 %v3898_v35 }
  0x73   : > { %v1682_v12 = vsel %vm4170_vm2, %v1653_v3, %v1681_v46  ;;  %v4608_v16 = vmul.f32 %v4508_v59, %v2093_v61  ;;  %v3545_v20 = vld [vmem:[#allocation2 + $0x10] sm:$0xf]  ;;  %v2086_v21 = vsub.f32 %v2068_v10, %v4492_v41  ;;  %v2102_v22 = vmul.f32 %v4508_v59, %v2084_v8  ;;  %v3908_v53 = vld [vmem:[%s5294_s6 + $0xc8] sm:$0xff]  ;;  %v1318_v13 = vld [vmem:[#allocation2 + $0x38] sm:$0xf] }
  0x74   : > { %1683 = vst [vmem:[#allocation2 + $0x2c] sm:$0x1] %v1682_v12  ;;  %v1686_v5 = vsel %vm4170_vm2, %v1655_v7, %v1685_v43  ;;  %v2165_v23 = vld [vmem:[#allocation2 + $0x1c] sm:$0x1]  ;;  %1533 = vmatmul.bf16.gmra.mxu3 %v1461_v39  ;;  %v4612_v25 = vld [vmem:[#allocation2 + $0xc] sm:$0xf0]  ;;  %v474_v26 = vsub.f32 %v453_v15, %v4492_v41  ;;  %v1586_v27 = vunpack.c.l.bf16 %v1568_v11  ;;  %v1578_v28 = vunpack.c.l.bf16 %v4573_v40  ;;  %2347 = vmatpush.bf16.msrb.mxu2 %v3908_v53 }
  0x75   : > { %1687 = vst [vmem:[#allocation2 + $0x34] sm:$0x1] %v1686_v5  ;;  %v1580_v29 = vunpack.c.l.bf16 %v1562_v6  ;;  %v2166_v24 = vsel %vm4170_vm2, %v2141_v42, %v2165_v23  ;;  %v3880_v31 = vld [vmem:[#allocation2 + $0x14] sm:$0xf0]  ;;  %v2104_v32 = vmul.f32 %v4508_v59, %v2086_v21  ;;  %v2120_v33 = vmax.f32 %v2102_v22, 0.0  ;;  %v4637_v54 = vld [vmem:[%s5294_s6 + $0x128] sm:$0xff] }
  0x76   : > { %v454_v36 = vunpack.c.l.bf16 %v4582_v30  ;;  %2167 = vst [vmem:[#allocation2 + $0x1c] sm:$0x1] %v2166_v24  ;;  %v3546_v58 = vor.u32 %v3880_v31, %v3545_v20  ;;  %v4624_v37 = vld [vmem:[#allocation2 + $0x18] sm:$0xf]  ;;  %v495_v44 = vmul.f32 %v4508_v59, %v474_v26  ;;  %v1604_v45 = vsub.f32 %v1586_v27, %v4492_v41  ;;  %v3907_v40 = vld [vmem:[%s5294_s6 + $0xc0] sm:$0xff]  ;;  %3010 = vmatpush.bf16.msra.mxu0 %v4637_v54 }
  0x77   : > { %v2169_v38 = vld [vmem:[#allocation2 + $0x24] sm:$0x1]  ;;  %v2127_v47 = vmax.f32 %v4592_v14, 0.0  ;;  %v2122_v48 = vmax.f32 %v2104_v32, 0.0  ;;  %v2138_v9 = vpack.c.bf16 %v2120_v33, %v2120_v33  ;;  %v3350_v55 = vor.u32 %v3841_v50, %v3349_v34  ;;  %v1567_v23 = vld [vmem:[%s4210_s22 + $0x3c] sm:$0x1] }
  0x78   : > { %v2170_v46 = vsel %vm4170_vm2, %v2143_v56, %v2169_v38  ;;  %v513_v43 = vmax.f32 %v495_v44, 0.0  ;;  %v1596_v57 = vsub.f32 %v1578_v28, %v4492_v41  ;;  %v1598_v52 = vsub.f32 %v1580_v29, %v4492_v41  ;;  %v1564_v56 = vld [vmem:[%s4210_s22 + $0x30] sm:$0xf]  ;;  %2348 = vmatpush.bf16.msrb.mxu2 %v3907_v40  ;;  %v569_v5 = vld [vmem:[#allocation2 + $0x44] sm:$0x1] }
  0x79   : > { %2171 = vst [vmem:[#allocation2 + $0x24] sm:$0x1] %v2170_v46  ;;  %1861 = vmatmul.bf16.gmra.mxu0 %v3546_v58  ;;  %v2140_v60 = vpack.c.bf16 %v2122_v48, %v2122_v48  ;;  %v4642_v61 = vmul.f32 %v4508_v59, %v1604_v45  ;;  %v475_v42 = vsub.f32 %v454_v36, %v4492_v41  ;;  %v1407_v30 = vshrl.u32 %v1318_v13, 16  ;;  %v1569_v26 = vld [vmem:[%s4210_s22 + $0x44] sm:$0x1]  ;;  %v3917_v50 = vld [vmem:[%s5294_s6 + $0x150] sm:$0xff] }
  0x7a   : > { %2160 = vst [vmem:[#allocation2 + $0x10] sm:$0xf] %v2138_v9  ;;  %v531_v4 = vpack.c.bf16 %v513_v43, %v513_v43  ;;  %v1614_v3 = vmul.f32 %v4508_v59, %v1596_v57  ;;  %v1616_v6 = vmul.f32 %v4508_v59, %v1598_v52  ;;  %v1410_v11 = vshll.u32 %v1318_v13, 16  ;;  %v1319_v27 = vld [vmem:[#allocation2 + $0x3c] sm:$0x1]  ;;  %2680 = vmatpush.bf16.msrb.mxu3 %v3917_v50 }
  0x7b   : > { %v1715_v2 = vld [vmem:[#allocation2 + $0x2c] sm:$0x1]  ;;  %2164 = vst [vmem:[#allocation2 + $0x18] sm:$0xf] %v2140_v60  ;;  %v496_v8 = vmul.f32 %v4508_v59, %v475_v42  ;;  %v1582_v63 = vunpack.c.l.bf16 %v1564_v56  ;;  %v2129_v12 = vmax.f32 %v4608_v16, 0.0  ;;  %v1640_v17 = vmax.f32 %v4642_v61, 0.0 }
  0x7c   : > { %v1716_v7 = vsel %vm4170_vm2, 0, %v1715_v2  ;;  %v1718_v10 = vld [vmem:[#allocation2 + $0x34] sm:$0x1]  ;;  %v1632_v14 = vmax.f32 %v1614_v3, 0.0  ;;  %v1634_v15 = vmax.f32 %v1616_v6, 0.0  ;;  %3989 = vmatpush.bf16.msra.mxu2 %v4486_v51  ;;  %v1409_v28 = vrot.slane %v1407_v30, 4 }
  0x7d   : > { %1717 = vst [vmem:[#allocation2 + $0x2c] sm:$0x1] %v1716_v7  ;;  %v1719_v39 = vsel %vm4170_vm2, 0, %v1718_v10  ;;  %v514_v19 = vmax.f32 %v496_v8, 0.0  ;;  %v1600_v20 = vsub.f32 %v1582_v63, %v4492_v41  ;;  %v1412_v29 = vrot.slane %v1410_v11, 5  ;;  %v3931_v61 = vld [vmem:[%s5294_s6 + $0x120] sm:$0xff] }
  0x7e   : > { %1720 = vst [vmem:[#allocation2 + $0x34] sm:$0x1] %v1719_v39  ;;  %1047 = vmatmul.bf16.gmra.mxu1 %v3350_v55  ;;  %v1650_v21 = vpack.c.bf16 %v1632_v14, %v1632_v14  ;;  %v1652_v22 = vpack.c.bf16 %v1634_v15, %v1634_v15  ;;  %v1585_v24 = vunpack.c.l.bf16 %v1567_v23  ;;  %v2059_v31 = vld [vmem:[%s4236_s15 + $0x3c] sm:$0x1]  ;;  %v2145_v32 = vpack.c.bf16 %v2127_v47, %v2127_v47  ;;  %v2061_v36 = vld [vmem:[%s4236_s15 + $0x44] sm:$0x1] }
  0x7f   : > { %568 = vst [vmem:[#allocation2 + $0x40] sm:$0xf] %v531_v4  ;;  %v532_v16 = vpack.c.bf16 %v514_v19, %v514_v19  ;;  %v2147_v33 = vpack.c.bf16 %v2129_v12, %v2129_v12  ;;  %v1587_v35 = vunpack.c.l.bf16 %v1569_v26  ;;  %v1618_v38 = vmul.f32 %v4508_v59, %v1600_v20  ;;  %v1689_v42 = vld [vmem:[#allocation2 + $0x3c] sm:$0x1]  ;;  %v2054_v8 = vld [vmem:[%s4236_s15 + $0x28] sm:$0xf]  ;;  %3011 = vmatpush.bf16.msra.mxu0 %v3931_v61 }
  0x80   : > { %1676 = vst [vmem:[#allocation2 + $0x20] sm:$0xf] %v1650_v21  ;;  %v1603_v44 = vsub.f32 %v1585_v24, %v4492_v41  ;;  %v2077_v45 = vunpack.c.l.bf16 %v2059_v31  ;;  %v1416_v47 = vshll.u32 %v1319_v27, 16  ;;  %v2079_v9 = vunpack.c.l.bf16 %v2061_v36  ;;  %3990 = vmatpush.bf16.msra.mxu2 %v4600_v18  ;;  %v2052_v18 = vld [vmem:[%s4236_s15 + $0x20] sm:$0xf]  ;;  %v3916_v14 = vld [vmem:[%s5294_s6 + $0x148] sm:$0xff] }
  0x81   : > { %v2199_v34 = vld [vmem:[#allocation2 + $0x10] sm:$0x1]  ;;  %1680 = vst [vmem:[#allocation2 + $0x28] sm:$0xf] %v1652_v22  ;;  %v570_v51 = vsel %vm4170_vm2, %v532_v16, %v569_v5  ;;  %v1605_v48 = vsub.f32 %v1587_v35, %v4492_v41  ;;  %v1636_v57 = vmax.f32 %v1618_v38, 0.0  ;;  %v1413_v60 = vor.u32 %v1412_v29, %v1409_v28  ;;  %2681 = vmatpush.bf16.msrb.mxu3 %v3916_v14 }
  0x82   : > { %v2200_v58 = vsel %vm4170_vm2, 0, %v2199_v34  ;;  %v2202_v46 = vld [vmem:[#allocation2 + $0x18] sm:$0x1]  ;;  %571 = vst [vmem:[#allocation2 + $0x44] sm:$0x1] %v570_v51  ;;  %v1621_v55 = vmul.f32 %v4508_v59, %v1603_v44  ;;  %v2095_v6 = vsub.f32 %v2077_v45, %v4492_v41  ;;  %v2070_v30 = vunpack.c.l.bf16 %v2052_v18 }
  0x83   : > { %2201 = vst [vmem:[#allocation2 + $0x10] sm:$0x1] %v2200_v58  ;;  %v2203_v43 = vsel %vm4170_vm2, 0, %v2202_v46  ;;  %v1623_v40 = vmul.f32 %v4508_v59, %v1605_v48  ;;  %v2097_v10 = vsub.f32 %v2079_v9, %v4492_v41  ;;  %v2729_v63 = vld [vmem:[%s4692_s29 + $0x44] sm:$0x1]  ;;  %v2072_v39 = vunpack.c.l.bf16 %v2054_v8  ;;  %v3930_v18 = vld [vmem:[%s5294_s6 + $0x118] sm:$0xff] }
  0x84   : > { %v2173_v53 = vld [vmem:[#allocation2 + $0x2c] sm:$0x1]  ;;  %2204 = vst [vmem:[#allocation2 + $0x18] sm:$0x1] %v2203_v43  ;;  %v1639_v3 = vmax.f32 %v1621_v55, 0.0  ;;  %3991 = vmatpush.bf16.msra.mxu2 %v4637_v54  ;;  %v2088_v12 = vsub.f32 %v2070_v30, %v4492_v41  ;;  %v1654_v15 = vpack.c.bf16 %v1636_v57, %v1636_v57  ;;  %v4702_v19 = vrot.slane %v1413_v60, 4  ;;  %3012 = vmatpush.bf16.msra.mxu0 %v3930_v18 }
  0x85   : > { %v2174_v52 = vsel %vm4170_vm2, %v2145_v32, %v2173_v53  ;;  %v2177_v13 = vld [vmem:[#allocation2 + $0x34] sm:$0x1]  ;;  %v1641_v7 = vmax.f32 %v1623_v40, 0.0  ;;  %v4704_v5 = vrot.slane %v1416_v47, 5  ;;  %v2747_v21 = vunpack.c.l.bf16 %v2729_v63  ;;  %v3353_v28 = vld [vmem:[#allocation2 + $0x30] sm:$0xf] }
  0x86   : > { %2175 = vst [vmem:[#allocation2 + $0x2c] sm:$0x1] %v2174_v52  ;;  %v2178_v2 = vsel %vm4170_vm2, %v2147_v33, %v2177_v13  ;;  %v600_v4 = vld [vmem:[#allocation2 + $0x40] sm:$0x1]  ;;  %v1657_v11 = vpack.c.bf16 %v1639_v3, %v1639_v3  ;;  %v4709_v26 = vmul.f32 %v4508_v59, %v2095_v6  ;;  %v2090_v27 = vsub.f32 %v2072_v39, %v4492_v41  ;;  %v3842_v29 = vld [vmem:[#allocation2 + $0x34] sm:$0xf0] }
  0x87   : > { %2179 = vst [vmem:[#allocation2 + $0x34] sm:$0x1] %v2178_v2  ;;  %v601_v56 = vsel %vm4170_vm2, 0, %v600_v4  ;;  %v1659_v20 = vpack.c.bf16 %v1641_v7, %v1641_v7  ;;  %v3549_v22 = vld [vmem:[#allocation2 + $0x20] sm:$0xf]  ;;  %v1658_v31 = vpack.c.bf16 %v1640_v17, %v1640_v17  ;;  %v2115_v34 = vmul.f32 %v4508_v59, %v2097_v10  ;;  %v3897_v47 = vld [vmem:[%s5294_s6 + $0x1d0] sm:$0xff] }
  0x88   : > { %602 = vst [vmem:[#allocation2 + $0x40] sm:$0x1] %v601_v56  ;;  %v3881_v23 = vld [vmem:[#allocation2 + $0x24] sm:$0xf0]  ;;  %v1690_v54 = vsel %vm4170_vm2, %v1657_v11, %v1689_v42  ;;  %v3425_v24 = vld [vmem:[#allocation2 + $0x38] sm:$0xf]  ;;  %v2765_v35 = vsub.f32 %v2747_v21, %v4492_v41  ;;  %v2106_v36 = vmul.f32 %v4508_v59, %v2088_v12  ;;  %v2108_v58 = vmul.f32 %v4508_v59, %v2090_v27 }
  0x89   : > { %v3550_v16 = vor.u32 %v3881_v23, %v3549_v22  ;;  %v1321_v32 = vld [vmem:[#allocation2 + $0x44] sm:$0x1]  ;;  %1691 = vst [vmem:[#allocation2 + $0x3c] sm:$0x1] %v1690_v54  ;;  %v3354_v17 = vor.u32 %v3842_v29, %v3353_v28  ;;  %v1566_v51 = vld [vmem:[%s4210_s22 + $0x38] sm:$0xf]  ;;  %v1419_v13 = vsel %vm4304_vm5, %v4702_v19, %v4704_v5  ;;  %2012 = vmatpush.bf16.msra.mxu1 %v3897_v47 }
  0x8a   : > { %v1693_v33 = vld [vmem:[#allocation2 + $0x44] sm:$0x1]  ;;  %1684 = vst [vmem:[#allocation2 + $0x30] sm:$0xf] %v1654_v15  ;;  %v1430_v44 = vshll.u32 %v1321_v32, 16  ;;  %v4726_v45 = vmul.f32 %v4508_v59, %v2765_v35  ;;  %v2124_v46 = vmax.f32 %v2106_v36, 0.0  ;;  %v1584_v48 = vunpack.c.l.bf16 %v1566_v51  ;;  %3992 = vmatpush.bf16.msra.mxu2 %v3931_v61 }
  0x8b   : > { %v1694_v38 = vsel %vm4170_vm2, %v1659_v20, %v1693_v33  ;;  %1866 = vmatmul.bf16.gmra.mxu0 %v3550_v16  ;;  %v3915_v9 = vld [vmem:[%s5294_s6 + $0x140] sm:$0xff]  ;;  %v2131_v50 = vmax.f32 %v4709_v26, 0.0  ;;  %v4737_v43 = vld [vmem:[#allocation2 + $0x28] sm:$0xf]  ;;  %v2126_v55 = vmax.f32 %v2108_v58, 0.0  ;;  %v2133_v60 = vmax.f32 %v2115_v34, 0.0 }
  0x8c   : > { %1695 = vst [vmem:[#allocation2 + $0x44] sm:$0x1] %v1694_v38  ;;  %v4735_v53 = vld [vmem:[#allocation2 + $0x1c] sm:$0xf0]  ;;  %v2142_v40 = vpack.c.bf16 %v2124_v46, %v2124_v46  ;;  %v1602_v42 = vsub.f32 %v1584_v48, %v4492_v41  ;;  %2682 = vmatpush.bf16.msrb.mxu3 %v3915_v9  ;;  %v1432_v56 = vrot.slane %v1430_v44, 5  ;;  %v2801_v7 = vmax.f32 %v4726_v45, 0.0 }
  0x8d   : > { %v2144_v6 = vpack.c.bf16 %v2126_v55, %v2126_v55  ;;  %v2466_v30 = vld [vmem:[#allocation2] sm:$0xf]  ;;  %v3896_v8 = vld [vmem:[%s5294_s6 + $0x1c8] sm:$0xff]  ;;  %v2467_v19 = vld [vmem:[#allocation2 + $0x4] sm:$0x1]  ;;  %v1457_v21 = vunpack.c.l.b16 %v1419_v13  ;;  %v2149_v23 = vpack.c.bf16 %v2131_v50, %v2131_v50  ;;  %v4754_v54 = vpack.c.bf16 %v2133_v60, %v2133_v60 }
  0x8e   : > { %1052 = vmatmul.bf16.gmra.mxu1 %v3354_v17  ;;  %2168 = vst [vmem:[#allocation2 + $0x20] sm:$0xf] %v2142_v40  ;;  %v1620_v10 = vmul.f32 %v4508_v59, %v1602_v42  ;;  %v2483_v11 = vshrl.u32 %v2466_v30, 16  ;;  %v2468_v5 = vld [vmem:[#allocation2 + $0x8] sm:$0xf]  ;;  %3993 = vmatpush.bf16.msra.mxu2 %v3930_v18  ;;  %v2486_v34 = vshll.u32 %v2466_v30, 16 }
  0x8f   : > { %v3862_v57 = vld [vmem:[#allocation2 + $0x3c] sm:$0xf0]  ;;  %2172 = vst [vmem:[#allocation2 + $0x28] sm:$0xf] %v2144_v6  ;;  %2013 = vmatpush.bf16.msra.mxu1 %v3896_v8  ;;  %v2056_v26 = vld [vmem:[%s4236_s15 + $0x30] sm:$0xf] }
  0x90   : > { %v1320_v52 = vld [vmem:[#allocation2 + $0x40] sm:$0xf]  ;;  %v3426_v2 = vor.u32 %v3862_v57, %v3425_v24  ;;  %v1721_v12 = vld [vmem:[#allocation2 + $0x3c] sm:$0x1]  ;;  %v1638_v15 = vmax.f32 %v1620_v10, 0.0  ;;  %v2074_v29 = vunpack.c.l.bf16 %v2056_v26  ;;  %v2492_v35 = vshll.u32 %v2467_v19, 16 }
  0x91   : > { %1692 = vst [vmem:[#allocation2 + $0x40] sm:$0xf] %v1658_v31  ;;  %v1421_v4 = vshrl.u32 %v1320_v52, 16  ;;  %v1424_v3 = vshll.u32 %v1320_v52, 16  ;;  %v1722_v14 = vsel %vm4170_vm2, 0, %v1721_v12  ;;  %v2485_v31 = vrot.slane %v2483_v11, 4 }
  0x92   : > { %1204 = vmatmul.bf16.gmra.mxu2 %v3426_v2  ;;  %1723 = vst [vmem:[#allocation2 + $0x3c] sm:$0x1] %v1722_v14  ;;  %v1656_v27 = vpack.c.bf16 %v1638_v15, %v1638_v15  ;;  %v2058_v28 = vld [vmem:[%s4236_s15 + $0x38] sm:$0xf]  ;;  %v2469_v24 = vld [vmem:[#allocation2 + $0xc] sm:$0x1]  ;;  %v2092_v38 = vsub.f32 %v2074_v29, %v4492_v41 }
  0x93   : > { %v1423_v63 = vrot.slane %v1421_v4, 4  ;;  %v1426_v39 = vrot.slane %v1424_v3, 5  ;;  %v1724_v22 = vld [vmem:[#allocation2 + $0x44] sm:$0x1]  ;;  %v2076_v33 = vunpack.c.l.bf16 %v2058_v28  ;;  %v2497_v58 = vshrl.u32 %v2468_v5, 16  ;;  %v3929_v51 = vld [vmem:[%s5294_s6 + $0x110] sm:$0xff] }
  0x94   : > { %v1725_v16 = vsel %vm4170_vm2, 0, %v1724_v22  ;;  %v3895_v36 = vld [vmem:[%s5294_s6 + $0x1c0] sm:$0xff]  ;;  %1688 = vst [vmem:[#allocation2 + $0x38] sm:$0xf] %v1656_v27  ;;  %v2500_v61 = vshll.u32 %v2468_v5, 16  ;;  %v2506_v17 = vshll.u32 %v2469_v24, 16  ;;  %v2110_v60 = vmul.f32 %v4508_v59, %v2092_v38  ;;  %3013 = vmatpush.bf16.msra.mxu0 %v3929_v51  ;;  %3994 = vmatpush.bf16.msra.mxu2 %v3929_v51 }
  0x95   : > { %v1427_v20 = vor.u32 %v1426_v39, %v1423_v63  ;;  %1726 = vst [vmem:[#allocation2 + $0x44] sm:$0x1] %v1725_v16  ;;  %v2205_v46 = vld [vmem:[#allocation2 + $0x20] sm:$0x1]  ;;  %v2094_v47 = vsub.f32 %v2076_v33, %v4492_v41  ;;  %v2488_v48 = vrot.slane %v2486_v34, 5  ;;  %v2494_v9 = vrot.slane %v2492_v35, 5  ;;  %2014 = vmatpush.bf16.msra.mxu1 %v3895_v36 }
  0x96   : > { %v2206_v55 = vsel %vm4170_vm2, 0, %v2205_v46  ;;  %v2208_v57 = vld [vmem:[#allocation2 + $0x28] sm:$0x1]  ;;  %v3677_v52 = vld [vmem:[#allocation2] sm:$0xf]  ;;  %v2499_v40 = vrot.slane %v2497_v58, 4 }
  0x97   : > { %v1428_v32 = vrot.slane %v1427_v20, 4  ;;  %v3903_v13 = vld [vmem:[#allocation2 + $0x4] sm:$0xf0]  ;;  %2207 = vst [vmem:[#allocation2 + $0x20] sm:$0x1] %v2206_v55  ;;  %v2209_v42 = vsel %vm4170_vm2, 0, %v2208_v57  ;;  %v2112_v2 = vmul.f32 %v4508_v59, %v2094_v47  ;;  %v2489_v4 = vor.u32 %v2488_v48, %v2485_v31 }
  0x98   : > { %v3553_v18 = vld [vmem:[#allocation2 + $0x30] sm:$0xf]  ;;  %v2502_v3 = vrot.slane %v2500_v61, 5  ;;  %v3928_v6 = vld [vmem:[%s5294_s6 + $0x108] sm:$0xff]  ;;  %2210 = vst [vmem:[#allocation2 + $0x28] sm:$0x1] %v2209_v42  ;;  %v3614_v20 = vor.u32 %v4612_v25, %v4546_v1 }
  0x99   : > { %v1433_v44 = vsel %vm4304_vm5, %v1428_v32, %v1432_v56  ;;  %v2181_v56 = vld [vmem:[#allocation2 + $0x3c] sm:$0x1]  ;;  %v2128_v10 = vmax.f32 %v2110_v60, 0.0  ;;  %v2508_v8 = vrot.slane %v2506_v17, 5  ;;  %v2130_v63 = vmax.f32 %v2112_v2, 0.0  ;;  %v3927_v14 = vld [vmem:[%s5294_s6 + $0x100] sm:$0xff]  ;;  %3014 = vmatpush.bf16.msra.mxu0 %v3928_v6  ;;  %3995 = vmatpush.bf16.msra.mxu2 %v3928_v6 }
  0x9a   : > { %v1458_v50 = vunpack.c.l.b16 %v1433_v44  ;;  %v2182_v11 = vsel %vm4170_vm2, %v2149_v23, %v2181_v56  ;;  %v2490_v39 = vrot.slane %v2489_v4, 4  ;;  %v2503_v12 = vor.u32 %v2502_v3, %v2499_v40  ;;  %v2470_v15 = vld [vmem:[#allocation2 + $0x10] sm:$0xf]  ;;  %v2472_v1 = vld [vmem:[#allocation2 + $0x18] sm:$0xf] }
  0x9b   : > { %2183 = vst [vmem:[#allocation2 + $0x3c] sm:$0x1] %v2182_v11  ;;  %v2146_v5 = vpack.c.bf16 %v2128_v10, %v2128_v10  ;;  %v3678_v23 = vor.u32 %v3903_v13, %v3677_v52  ;;  %v3882_v26 = vld [vmem:[#allocation2 + $0x34] sm:$0xf0]  ;;  %v4789_v16 = vld [vmem:[#allocation2 + $0x2c] sm:$0xf0]  ;;  %v2148_v28 = vpack.c.bf16 %v2130_v63, %v2130_v63  ;;  %v4801_v44 = vpack.c.bf16 %v2801_v7, %v2801_v7 }
  0x9c   : > { %v1462_v30 = vpack.c.b16 %v1458_v50, %v1457_v21  ;;  %v2185_v19 = vld [vmem:[#allocation2 + $0x44] sm:$0x1]  ;;  %v2471_v21 = vld [vmem:[#allocation2 + $0x14] sm:$0x1]  ;;  %v4791_v27 = vld [vmem:[#allocation2 + $0x38] sm:$0xf]  ;;  %v3554_v29 = vor.u32 %v3882_v26, %v3553_v18  ;;  %v2495_v24 = vsel %vm4304_vm5, %v2490_v39, %v2494_v9 }
  0x9d   : > { %v2186_v22 = vsel %vm4170_vm2, %v4754_v54, %v2185_v19  ;;  %v2504_v31 = vrot.slane %v2503_v12, 4  ;;  %v2511_v25 = vshrl.u32 %v2470_v15, 16  ;;  %2176 = vst [vmem:[#allocation2 + $0x30] sm:$0xf] %v2146_v5  ;;  %v2473_v54 = vld [vmem:[#allocation2 + $0x1c] sm:$0x1]  ;;  %v2611_v58 = vunpack.c.l.b16 %v2495_v24  ;;  %3015 = vmatpush.bf16.msra.mxu0 %v3927_v14  ;;  %3996 = vmatpush.bf16.msra.mxu2 %v3927_v14 }
  0x9e   : > { %1538 = vmatmul.bf16.gmra.mxu3 %v1462_v30  ;;  %2187 = vst [vmem:[#allocation2 + $0x44] sm:$0x1] %v2186_v22  ;;  %2015 = vmatmul.bf16.vlgmr.msra.gmra.mxu1 %v3614_v20  ;;  %v2514_v32 = vshll.u32 %v2470_v15, 16  ;;  %v2520_v33 = vshll.u32 %v2471_v21, 16  ;;  %v2525_v36 = vshrl.u32 %v2472_v1, 16  ;;  %v2528_v38 = vshll.u32 %v2472_v1, 16 }
  0x9f   : > { %1871 = vmatmul.bf16.gmra.mxu0 %v3554_v29  ;;  %2180 = vst [vmem:[#allocation2 + $0x38] sm:$0xf] %v2148_v28  ;;  %v2509_v34 = vsel %vm4304_vm5, %v2504_v31, %v2508_v8  ;;  %v2513_v35 = vrot.slane %v2511_v25, 4  ;;  %v2712_v51 = vld [vmem:[%s4692_s29] sm:$0xf]  ;;  %v2534_v57 = vshll.u32 %v2473_v54, 16 }
  0xa0   : > { %v2612_v61 = vunpack.c.l.b16 %v2509_v34  ;;  %v2516_v17 = vrot.slane %v2514_v32, 5  ;;  %v2713_v46 = vld [vmem:[%s4692_s29 + $0x4] sm:$0x1]  ;;  %v2715_v47 = vld [vmem:[%s4692_s29 + $0xc] sm:$0x1]  ;;  %v4805_v48 = vrot.slane %v2520_v33, 5  ;;  %v2730_v18 = vunpack.c.l.bf16 %v2712_v51 }
  0xa1   : > { %v2731_v9 = vunpack.c.l.bf16 %v2713_v46  ;;  %v2733_v50 = vunpack.c.l.bf16 %v2715_v47  ;;  %v2717_v52 = vld [vmem:[%s4692_s29 + $0x14] sm:$0x1]  ;;  %v2719_v13 = vld [vmem:[%s4692_s29 + $0x1c] sm:$0x1]  ;;  %v2527_v60 = vrot.slane %v2525_v36, 4  ;;  %v2530_v40 = vrot.slane %v2528_v38, 5 }
  0xa2   : > { %2349 = vmatmul.bf16.vlgmr.msrb.gmra.mxu2 %v3678_v23  ;;  %v2517_v55 = vor.u32 %v2516_v17, %v2513_v35  ;;  %v2735_v42 = vunpack.c.l.bf16 %v2717_v52  ;;  %v2619_v2 = vpack.c.b16 %v2612_v61, %v2611_v58  ;;  %v4811_v3 = vld [vmem:[#allocation2 + $0x10] sm:$0xf]  ;;  %v2737_v6 = vunpack.c.l.bf16 %v2719_v13  ;;  %v2714_v30 = vld [vmem:[%s4692_s29 + $0x8] sm:$0xf]  ;;  %v4816_v8 = vld [vmem:[#allocation2 + $0x14] sm:$0xf0] }
  0xa3   : > { %v2749_v7 = vsub.f32 %v2731_v9, %v4492_v41  ;;  %v2751_v4 = vsub.f32 %v2733_v50, %v4492_v41  ;;  %v2531_v11 = vor.u32 %v2530_v40, %v2527_v60  ;;  %v2732_v39 = vunpack.c.l.bf16 %v2714_v30  ;;  %v2474_v31 = vld [vmem:[#allocation2 + $0x20] sm:$0xf]  ;;  %v2821_v1 = vld [vmem:[#allocation2 + $0x4] sm:$0x1]  ;;  %v2825_v25 = vld [vmem:[#allocation2 + $0xc] sm:$0x1] }
  0xa4   : > { %v2211_v10 = vld [vmem:[#allocation2 + $0x30] sm:$0x1]  ;;  %v2753_v63 = vsub.f32 %v2735_v42, %v4492_v41  ;;  %v4823_v5 = vrot.slane %v2517_v55, 4  ;;  %v4829_v22 = vrot.slane %v2534_v57, 5  ;;  %v2755_v23 = vsub.f32 %v2737_v6, %v4492_v41  ;;  %v2829_v61 = vld [vmem:[#allocation2 + $0x14] sm:$0x1] }
  0xa5   : > { %v2190_v45 = vld [vmem:[#allocation2 + $0x44] sm:$0x1]  ;;  %v2212_v12 = vsel %vm4170_vm2, 0, %v2211_v10  ;;  %v2767_v15 = vmul.f32 %v4508_v59, %v2749_v7  ;;  %v2769_v19 = vmul.f32 %v4508_v59, %v2751_v4  ;;  %v4827_v21 = vrot.slane %v2531_v11, 4  ;;  %v2833_v17 = vld [vmem:[#allocation2 + $0x1c] sm:$0x1] }
  0xa6   : > { %v2191_v56 = vsel %vm4170_vm2, 0, %v2190_v45  ;;  %v2214_v14 = vld [vmem:[#allocation2 + $0x38] sm:$0x1]  ;;  %2213 = vst [vmem:[#allocation2 + $0x30] sm:$0x1] %v2212_v12  ;;  %v2771_v29 = vmul.f32 %v4508_v59, %v2753_v63  ;;  %v2748_v24 = vsub.f32 %v2730_v18, %v4492_v41  ;;  %v3682_v54 = vor.u32 %v4816_v8, %v4811_v3 }
  0xa7   : > { %2192 = vst [vmem:[#allocation2 + $0x44] sm:$0x1] %v2191_v56  ;;  %v2215_v20 = vsel %vm4170_vm2, 0, %v2214_v14  ;;  %v2785_v26 = vmax.f32 %v2767_v15, 0.0  ;;  %v2787_v28 = vmax.f32 %v2769_v19, 0.0  ;;  %v2773_v32 = vmul.f32 %v4508_v59, %v2755_v23 }
  0xa8   : > { %2216 = vst [vmem:[#allocation2 + $0x38] sm:$0x1] %v2215_v20  ;;  %v2750_v33 = vsub.f32 %v2732_v39, %v4492_v41  ;;  %v3618_v34 = vor.u32 %v4735_v53, %v4624_v37  ;;  %v2523_v38 = vsel %vm4304_vm5, %v4823_v5, %v4805_v48  ;;  %v2789_v58 = vmax.f32 %v2771_v29, 0.0  ;;  %v2475_v47 = vld [vmem:[#allocation2 + $0x24] sm:$0x1] }
  0xa9   : > { %v2803_v35 = vpack.c.bf16 %v2785_v26, %v2785_v26  ;;  %v2805_v36 = vpack.c.bf16 %v2787_v28, %v2787_v28  ;;  %v2791_v51 = vmax.f32 %v2773_v32, 0.0  ;;  %v2766_v46 = vmul.f32 %v4508_v59, %v2748_v24  ;;  %v2721_v37 = vld [vmem:[%s4692_s29 + $0x24] sm:$0x1]  ;;  %v2476_v57 = vld [vmem:[#allocation2 + $0x28] sm:$0xf] }
  0xaa   : > { %v2768_v41 = vmul.f32 %v4508_v59, %v2750_v33  ;;  %v2539_v9 = vshrl.u32 %v2474_v31, 16  ;;  %v2537_v48 = vsel %vm4304_vm5, %v4827_v21, %v4829_v22  ;;  %v2807_v55 = vpack.c.bf16 %v2789_v58, %v2789_v58  ;;  %v2477_v52 = vld [vmem:[#allocation2 + $0x2c] sm:$0x1]  ;;  %v2716_v13 = vld [vmem:[%s4692_s29 + $0x10] sm:$0xf] }
  0xab   : > { %v2822_v53 = vsel %vm4170_vm2, %v2803_v35, %v2821_v1  ;;  %v2826_v50 = vsel %vm4170_vm2, %v2805_v36, %v2825_v25  ;;  %v2809_v60 = vpack.c.bf16 %v2791_v51, %v2791_v51  ;;  %v2784_v40 = vmax.f32 %v2766_v46, 0.0  ;;  %v2723_v3 = vld [vmem:[%s4692_s29 + $0x2c] sm:$0x1]  ;;  %v2718_v8 = vld [vmem:[%s4692_s29 + $0x18] sm:$0xf] }
  0xac   : > { %2823 = vst [vmem:[#allocation2 + $0x4] sm:$0x1] %v2822_v53  ;;  %v2786_v42 = vmax.f32 %v2768_v41, 0.0  ;;  %v2739_v18 = vunpack.c.l.bf16 %v2721_v37  ;;  %v2541_v7 = vrot.slane %v2539_v9, 4  ;;  %v2542_v4 = vshll.u32 %v2474_v31, 16 }
  0xad   : > { %2827 = vst [vmem:[#allocation2 + $0xc] sm:$0x1] %v2826_v50  ;;  %v2834_v6 = vsel %vm4170_vm2, %v2809_v60, %v2833_v17  ;;  %v2802_v30 = vpack.c.bf16 %v2784_v40, %v2784_v40  ;;  %v2548_v10 = vshll.u32 %v2475_v47, 16  ;;  %v2553_v63 = vshrl.u32 %v2476_v57, 16  ;;  %v4870_v15 = vld [vmem:[%s5292_s4] ss:$0 sm:$0xff] }
  0xae   : > { %2683 = vmatmul.bf16.vlgmr.msrb.gmra.mxu3 %v2619_v2  ;;  %v2853_v59 = vld [vmem:[#allocation2 + $0x44] sm:$0x1]  ;;  %2020 = vmatmul.bf16.gmra.mxu1 %v3618_v34  ;;  %v2830_v2 = vsel %vm4170_vm2, %v2807_v55, %v2829_v61  ;;  %v2804_v56 = vpack.c.bf16 %v2786_v42, %v2786_v42  ;;  %v2544_v11 = vrot.slane %v2542_v4, 5  ;;  %v2562_v39 = vshll.u32 %v2477_v52, 16  ;;  %2835 = vst [vmem:[#allocation2 + $0x1c] sm:$0x1] %v2834_v6 }
  0xaf   : > { %v2854_v45 = vsel %vm4170_vm2, %v4801_v44, %v2853_v59  ;;  %2831 = vst [vmem:[#allocation2 + $0x14] sm:$0x1] %v2830_v2  ;;  %v2556_v44 = vshll.u32 %v2476_v57, 16  ;;  %v4865_v12 = vunpack.c.l.b16 %v2523_v38  ;;  %v2741_v14 = vunpack.c.l.bf16 %v2723_v3  ;;  %v4877_v28 = vld [vmem:[%s5293_s5] ss:$0 sm:$0xff] }
  0xb0   : > { %2855 = vst [vmem:[#allocation2 + $0x44] sm:$0x1] %v2854_v45  ;;  %v2757_v19 = vsub.f32 %v2739_v18, %v4870_v15  ;;  %v2734_v5 = vunpack.c.l.bf16 %v2716_v13  ;;  %v2614_v20 = vunpack.c.l.b16 %v2537_v48  ;;  %v2545_v21 = vor.u32 %v2544_v11, %v2541_v7  ;;  %v2837_v34 = vld [vmem:[#allocation2 + $0x24] sm:$0x1]  ;;  %v4885_v17 = vld [vmem:[#allocation2 + $0x30] sm:$0xf] }
  0xb1   : > { %2820 = vst [vmem:[#allocation2] sm:$0xf] %v2802_v30  ;;  %v2555_v22 = vrot.slane %v2553_v63, 4  ;;  %v2558_v23 = vrot.slane %v2556_v44, 5  ;;  %v2759_v26 = vsub.f32 %v2741_v14, %v4870_v15  ;;  %v2736_v24 = vunpack.c.l.bf16 %v2718_v8  ;;  %v2720_v51 = vld [vmem:[%s4692_s29 + $0x20] sm:$0xf] }
  0xb2   : > { %2354 = vmatmul.bf16.gmra.mxu2 %v3682_v54  ;;  %2824 = vst [vmem:[#allocation2 + $0x8] sm:$0xf] %v2804_v56  ;;  %v2775_v29 = vmul.f32 %v4877_v28, %v2757_v19  ;;  %v2752_v31 = vsub.f32 %v2734_v5, %v4870_v15  ;;  %v2546_v25 = vrot.slane %v2545_v21, 4  ;;  %v2550_v54 = vrot.slane %v2548_v10, 5  ;;  %v2841_v9 = vld [vmem:[#allocation2 + $0x2c] sm:$0x1] }
  0xb3   : > { %v2860_v1 = vld [vmem:[#allocation2 + $0x4] sm:$0x1]  ;;  %v2559_v32 = vor.u32 %v2558_v23, %v2555_v22  ;;  %v2564_v33 = vrot.slane %v2562_v39, 5  ;;  %v2777_v38 = vmul.f32 %v4877_v28, %v2759_v26  ;;  %v2754_v61 = vsub.f32 %v2736_v24, %v4870_v15  ;;  %v3685_v55 = vld [vmem:[#allocation2 + $0x20] sm:$0xf] }
  0xb4   : > { %v2861_v35 = vsel %vm4170_vm2, 0, %v2860_v1  ;;  %v2863_v36 = vld [vmem:[#allocation2 + $0xc] sm:$0x1]  ;;  %v2793_v58 = vmax.f32 %v2775_v29, 0.0  ;;  %v2770_v37 = vmul.f32 %v4877_v28, %v2752_v31  ;;  %v2620_v50 = vpack.c.b16 %v2614_v20, %v4865_v12  ;;  %v3905_v57 = vld [vmem:[#allocation2 + $0x24] sm:$0xf0] }
  0xb5   : > { %2862 = vst [vmem:[#allocation2 + $0x4] sm:$0x1] %v2861_v35  ;;  %v2864_v41 = vsel %vm4170_vm2, 0, %v2863_v36  ;;  %v2560_v47 = vrot.slane %v2559_v32, 4  ;;  %v2795_v52 = vmax.f32 %v2777_v38, 0.0  ;;  %v2772_v42 = vmul.f32 %v4877_v28, %v2754_v61 }
  0xb6   : > { %2865 = vst [vmem:[#allocation2 + $0xc] sm:$0x1] %v2864_v41  ;;  %v2866_v48 = vld [vmem:[#allocation2 + $0x14] sm:$0x1]  ;;  %v2811_v13 = vpack.c.bf16 %v2793_v58, %v2793_v58  ;;  %v2869_v40 = vld [vmem:[#allocation2 + $0x1c] sm:$0x1]  ;;  %v3622_v45 = vor.u32 %v4789_v16, %v4737_v43  ;;  %v2551_v3 = vsel %vm4304_vm5, %v2546_v25, %v2550_v54  ;;  %v2738_v11 = vunpack.c.l.bf16 %v2720_v51 }
  0xb7   : > { %v2857_v46 = vld [vmem:[#allocation2 + $0x44] sm:$0x1]  ;;  %v2867_v60 = vsel %vm4170_vm2, 0, %v2866_v48  ;;  %v2788_v18 = vmax.f32 %v2770_v37, 0.0  ;;  %v4901_v2 = vld [vmem:[#allocation2 + $0x38] sm:$0xf]  ;;  %v2813_v6 = vpack.c.bf16 %v2795_v52, %v2795_v52  ;;  %v2565_v44 = vsel %vm4304_vm5, %v2560_v47, %v2564_v33 }
  0xb8   : > { %v2858_v53 = vsel %vm4170_vm2, 0, %v2857_v46  ;;  %2868 = vst [vmem:[#allocation2 + $0x14] sm:$0x1] %v2867_v60  ;;  %v2870_v7 = vsel %vm4170_vm2, 0, %v2869_v40  ;;  %v3789_v4 = vld [vmem:[#allocation2] sm:$0xf]  ;;  %v2838_v30 = vsel %vm4170_vm2, %v2811_v13, %v2837_v34  ;;  %v3686_v19 = vor.u32 %v3905_v57, %v3685_v55 }
  0xb9   : > { %2859 = vst [vmem:[#allocation2 + $0x44] sm:$0x1] %v2858_v53  ;;  %v2722_v56 = vld [vmem:[%s4692_s29 + $0x28] sm:$0xf]  ;;  %v2790_v8 = vmax.f32 %v2772_v42, 0.0  ;;  %v2806_v43 = vpack.c.bf16 %v2788_v18, %v2788_v18  ;;  %v2567_v16 = vshrl.u32 %v4885_v17, 16  ;;  %v2842_v39 = vsel %vm4170_vm2, %v2813_v6, %v2841_v9 }
  0xba   : > { %v4894_v59 = vpop.f32.mrf.mxu1  ;;  %2871 = vst [vmem:[#allocation2 + $0x1c] sm:$0x1] %v2870_v7  ;;  %v3923_v10 = vld [vmem:[#allocation2 + $0x4] sm:$0xf0]  ;;  %v2570_v12 = vshll.u32 %v4885_v17, 16  ;;  %v4919_v21 = vunpack.c.l.b16 %v2551_v3  ;;  %v2581_v23 = vshrl.u32 %v4901_v2, 16  ;;  %v4924_v29 = vunpack.c.l.b16 %v2565_v44 }
  0xbb   : > { %v3790_v63 = vor.u32 %v3923_v10, %v3789_v4  ;;  %2839 = vst [vmem:[#allocation2 + $0x24] sm:$0x1] %v2838_v30  ;;  %v2725_v14 = vld [vmem:[%s4692_s29 + $0x34] sm:$0x1]  ;;  %v2808_v5 = vpack.c.bf16 %v2790_v8, %v2790_v8  ;;  %v4921_v22 = vld [vmem:[#allocation2 + $0x3c] sm:$0x1]  ;;  %v2740_v1 = vunpack.c.l.bf16 %v2722_v56  ;;  %v2756_v25 = vsub.f32 %v2738_v11, %v4870_v15 }
  0xbc   : > { %2843 = vst [vmem:[#allocation2 + $0x2c] sm:$0x1] %v2842_v39  ;;  %v4917_v20 = vld [vmem:[#allocation2 + $0x34] sm:$0x1]  ;;  %v2743_v26 = vunpack.c.l.bf16 %v2725_v14  ;;  %v4926_v24 = vrot.slane %v2567_v16, 4  ;;  %v4932_v33 = vrot.slane %v2570_v12, 5  ;;  %v2621_v8 = vpack.c.b16 %v4924_v29, %v4919_v21 }
  0xbd   : > { %3016 = vmatmul.bf16.vlgmr.msra.gmra.mxu0 %v3790_v63  ;;  %2828 = vst [vmem:[#allocation2 + $0x10] sm:$0xf] %v2806_v43  ;;  %v2727_v31 = vld [vmem:[%s4692_s29 + $0x3c] sm:$0x1]  ;;  %v2576_v34 = vshll.u32 %v4917_v20, 16  ;;  %v2584_v35 = vshll.u32 %v4901_v2, 16  ;;  %v2758_v17 = vsub.f32 %v2740_v1, %v4870_v15  ;;  %v2774_v51 = vmul.f32 %v4877_v28, %v2756_v25 }
  0xbe   : > { %2688 = vmatmul.bf16.gmra.mxu3 %v2620_v50  ;;  %2025 = vmatmul.bf16.gmra.mxu1 %v3622_v45  ;;  %2832 = vst [vmem:[#allocation2 + $0x18] sm:$0xf] %v2808_v5  ;;  %v2745_v36 = vunpack.c.l.bf16 %v2727_v31  ;;  %v2761_v61 = vsub.f32 %v2743_v26, %v4870_v15  ;;  %v2724_v46 = vld [vmem:[%s4692_s29 + $0x30] sm:$0xf]  ;;  %v2583_v41 = vrot.slane %v2581_v23, 4  ;;  %v2590_v47 = vshll.u32 %v4921_v22, 16 }
  0xbf   : > { %v4938_v58 = vpop.f32.mrf.mxu0  ;;  %v2726_v37 = vld [vmem:[%s4692_s29 + $0x38] sm:$0xf]  ;;  %v2742_v53 = vunpack.c.l.bf16 %v2724_v46  ;;  %v2776_v55 = vmul.f32 %v4877_v28, %v2758_v17  ;;  %v2792_v57 = vmax.f32 %v2774_v51, 0.0  ;;  %v2586_v40 = vrot.slane %v2584_v35, 5  ;;  %v2845_v18 = vld [vmem:[#allocation2 + $0x34] sm:$0x1] }
  0xc0   : > { %v2884_v54 = vld [vmem:[#allocation2 + $0x44] sm:$0x1]  ;;  %v2763_v9 = vsub.f32 %v2745_v36, %v4870_v15  ;;  %v2779_v48 = vmul.f32 %v4877_v28, %v2761_v61  ;;  %v2744_v52 = vunpack.c.l.bf16 %v2726_v37  ;;  %v2849_v7 = vld [vmem:[#allocation2 + $0x3c] sm:$0x1]  ;;  %v3894_v3 = vld [vmem:[#allocation2 + $0x3c] sm:$0xf0]  ;;  %v2573_v12 = vor.u32 %v4932_v33, %v4926_v24 }
  0xc1   : > { %v2885_v38 = vsel %vm4170_vm2, 0, %v2884_v54  ;;  %v2810_v4 = vpack.c.bf16 %v2792_v57, %v2792_v57  ;;  %v2794_v30 = vmax.f32 %v2776_v55, 0.0  ;;  %v2760_v56 = vsub.f32 %v2742_v53, %v4870_v15  ;;  %v2060_v10 = vld [vmem:[%s4236_s15 + $0x40] sm:$0xf]  ;;  %v3689_v44 = vld [vmem:[#allocation2 + $0x30] sm:$0xf] }
  0xc2   : > { %v4930_v32 = vpop.f32.mrf.mxu1  ;;  %2359 = vmatmul.bf16.gmra.mxu2 %v3686_v19  ;;  %2886 = vst [vmem:[#allocation2 + $0x44] sm:$0x1] %v2885_v38  ;;  %v2872_v50 = vld [vmem:[#allocation2 + $0x24] sm:$0x1]  ;;  %v2781_v42 = vmul.f32 %v4877_v28, %v2763_v9  ;;  %v2797_v2 = vmax.f32 %v2779_v48, 0.0  ;;  %v2762_v63 = vsub.f32 %v2744_v52, %v4870_v15  ;;  %v2587_v22 = vor.u32 %v2586_v40, %v2583_v41  ;;  %v1190_v52 = vpop.f32.mrf.mxu2 }
  0xc3   : > { %v2873_v13 = vsel %vm4170_vm2, 0, %v2872_v50  ;;  %v2875_v60 = vld [vmem:[#allocation2 + $0x2c] sm:$0x1]  ;;  %2836 = vst [vmem:[#allocation2 + $0x20] sm:$0xf] %v2810_v4  ;;  %v2812_v19 = vpack.c.bf16 %v2794_v30, %v2794_v30  ;;  %v2778_v5 = vmul.f32 %v4877_v28, %v2760_v56  ;;  %v2078_v26 = vunpack.c.l.bf16 %v2060_v10 }
  0xc4   : > { %2874 = vst [vmem:[#allocation2 + $0x24] sm:$0x1] %v2873_v13  ;;  %v2876_v45 = vsel %vm4170_vm2, 0, %v2875_v60  ;;  %v2799_v6 = vmax.f32 %v2781_v42, 0.0  ;;  %v3793_v43 = vld [vmem:[#allocation2 + $0x10] sm:$0xf]  ;;  %v2815_v11 = vpack.c.bf16 %v2797_v2, %v2797_v2  ;;  %v2780_v23 = vmul.f32 %v4877_v28, %v2762_v63 }
  0xc5   : > { %2877 = vst [vmem:[#allocation2 + $0x2c] sm:$0x1] %v2876_v45  ;;  %v3924_v16 = vld [vmem:[#allocation2 + $0x14] sm:$0xf0]  ;;  %v2728_v29 = vld [vmem:[%s4692_s29 + $0x40] sm:$0xf]  ;;  %v3626_v24 = vor.u32 %v3894_v3, %v4791_v27  ;;  %v2096_v38 = vsub.f32 %v2078_v26, %v4870_v15 }
  0xc6   : > { %v3906_v39 = vld [vmem:[#allocation2 + $0x34] sm:$0xf0]  ;;  %v2817_v14 = vpack.c.bf16 %v2799_v6, %v2799_v6  ;;  %v2846_v21 = vsel %vm4170_vm2, %v2815_v11, %v2845_v18  ;;  %v3794_v31 = vor.u32 %v3924_v16, %v3793_v43  ;;  %v2796_v25 = vmax.f32 %v2778_v5, 0.0  ;;  %2840 = vst [vmem:[#allocation2 + $0x28] sm:$0xf] %v2812_v19 }
  0xc7   : > { %2847 = vst [vmem:[#allocation2 + $0x34] sm:$0x1] %v2846_v21  ;;  %v3690_v33 = vor.u32 %v3906_v39, %v3689_v44  ;;  %v2798_v35 = vmax.f32 %v2780_v23, 0.0  ;;  %v939_v36 = vpop.f32.mrf.mxu0  ;;  %v2578_v61 = vrot.slane %v2576_v34, 5  ;;  %v2592_v17 = vrot.slane %v2590_v47, 5 }
  0xc8   : > { %v2850_v1 = vsel %vm4170_vm2, %v2817_v14, %v2849_v7  ;;  %v2814_v51 = vpack.c.bf16 %v2796_v25, %v2796_v25  ;;  %v2746_v46 = vunpack.c.l.bf16 %v2728_v29  ;;  %v2574_v41 = vrot.slane %v2573_v12, 4 }
  0xc9   : > { %2851 = vst [vmem:[#allocation2 + $0x3c] sm:$0x1] %v2850_v1  ;;  %v2588_v9 = vrot.slane %v2587_v22, 4  ;;  %v2816_v37 = vpack.c.bf16 %v2798_v35, %v2798_v35  ;;  %v2114_v53 = vmul.f32 %v4877_v28, %v2096_v38 }
  0xca   : > { %2844 = vst [vmem:[#allocation2 + $0x30] sm:$0xf] %v2814_v51  ;;  %v2764_v50 = vsub.f32 %v2746_v46, %v4870_v15  ;;  %v2579_v20 = vsel %vm4304_vm5, %v2574_v41, %v2578_v61  ;;  %v3797_v45 = vld [vmem:[#allocation2 + $0x20] sm:$0xf]  ;;  %v1192_v43 = vpop.f32.mrf.mxu2 }
  0xcb   : > { %v4968_v54 = vpop.f32.mrf.mxu1  ;;  %2848 = vst [vmem:[#allocation2 + $0x38] sm:$0xf] %v2816_v37  ;;  %v2132_v27 = vmax.f32 %v2114_v53, 0.0  ;;  %v2593_v34 = vsel %vm4304_vm5, %v2588_v9, %v2592_v17  ;;  %v2617_v60 = vunpack.c.l.b16 %v2579_v20 }
  0xcc   : > { %v2618_v40 = vunpack.c.l.b16 %v2593_v34  ;;  %v2782_v42 = vmul.f32 %v4877_v28, %v2764_v50 }
  0xcd   : > { %3021 = vmatmul.bf16.gmra.mxu0 %v3794_v31  ;;  %v2150_v48 = vpack.c.bf16 %v2132_v27, %v2132_v27  ;;  %v3925_v2 = vld [vmem:[#allocation2 + $0x24] sm:$0xf0] }
  0xce   : > { %2693 = vmatmul.bf16.gmra.mxu3 %v2621_v8  ;;  %2030 = vmatmul.bf16.gmra.mxu1 %v3626_v24  ;;  %v2878_v47 = vld [vmem:[#allocation2 + $0x34] sm:$0x1]  ;;  %v2622_v7 = vpack.c.b16 %v2618_v40, %v2617_v60  ;;  %v2800_v4 = vmax.f32 %v2782_v42, 0.0  ;;  %v3798_v3 = vor.u32 %v3925_v2, %v3797_v45 }
  0xcf   : > { %v2879_v55 = vsel %vm4170_vm2, 0, %v2878_v47  ;;  %2184 = vst [vmem:[#allocation2 + $0x40] sm:$0xf] %v2150_v48 }
  0xd0   : > { %v2881_v57 = vld [vmem:[#allocation2 + $0x3c] sm:$0x1]  ;;  %2880 = vst [vmem:[#allocation2 + $0x34] sm:$0x1] %v2879_v55  ;;  %v2818_v8 = vpack.c.bf16 %v2800_v4, %v2800_v4 }
  0xd1   : > { %v2882_v15 = vsel %vm4170_vm2, 0, %v2881_v57  ;;  %2189 = vst [vmem:[#allocation2 + $0x40] sm:$0xf] %v4021_v49  ;;  %v3801_v6 = vld [vmem:[#allocation2 + $0x30] sm:$0xf] }
  0xd2   : > { %2364 = vmatmul.bf16.gmra.mxu2 %v3690_v33  ;;  %2883 = vst [vmem:[#allocation2 + $0x3c] sm:$0x1] %v2882_v15  ;;  %v3926_v30 = vld [vmem:[#allocation2 + $0x34] sm:$0xf0] }
  0xd3   : > { %v4982_v13 = vpop.f32.mrf.mxu1  ;;  %v3802_v16 = vor.u32 %v3926_v30, %v3801_v6 }
  0xd4   : > { %v1524_v0 = vpop.f32.mrf.mxu3  ;;  %v1195_v22 = vpop.f32.mrf.mxu2 }
  0xd6   : > { %v942_v18 = vpop.f32.mrf.mxu0 }
  0xd8   : > { %v2217_v28 = vld [vmem:[#allocation2 + $0x40] sm:$0x1] }
  0xd9   : > { %v2218_v44 = vsel %vm4170_vm2, 0, %v2217_v28 }
  0xda   : > { %2219 = vst [vmem:[#allocation2 + $0x40] sm:$0x1] %v2218_v44  ;;  %v5021_v44 = vld [vmem:[%s4113_s11 + $0x20] sm:$0xf] }
  0xdb   : > { %v1038_v56 = vpop.f32.mrf.mxu1  ;;  %2852 = vst [vmem:[#allocation2 + $0x40] sm:$0xf] %v2818_v8  ;;  %v5005_v8 = vld [vmem:[%s4113_s11] sm:$0xf] }
  0xdc   : > { %v1039_v10 = vadd.f32 %v1038_v56, %v4938_v58  ;;  %v1526_v39 = vpop.f32.mrf.mxu3  ;;  %2856 = vst [vmem:[#allocation2 + $0x40] sm:$0xf] %v4021_v49  ;;  %v1197_v33 = vpop.f32.mrf.mxu2 }
  0xdd   : > { %3026 = vmatmul.bf16.gmra.mxu0 %v3798_v3 }
  0xde   : > { %2698 = vmatmul.bf16.gmra.mxu3 %v2622_v7  ;;  %v944_v11 = vpop.f32.mrf.mxu0  ;;  %v1210_v63 = vadd.f32 %v1190_v52, %v1039_v10 }
  0xe0   : > { %v1544_v12 = vadd.f32 %v1524_v0, %v1210_v63  ;;  %v5018_v63 = vld [vmem:[%s4113_s11 + $0x18] sm:$0xf] }
  0xe2   : > { %3031 = vmatmul.bf16.vlgmr.msra.gmra.mxu2 %v3802_v16 }
  0xe3   : > { %v1040_v14 = vpop.f32.mrf.mxu1 }
  0xe4   : > { %v1041_v58 = vadd.f32 %v1040_v14, %v939_v36  ;;  %v5027_v14 = vld [vmem:[%s4113_s11 + $0x30] sm:$0xf] }
  0xe5   : > { %v1200_v46 = vpop.f32.mrf.mxu2 }
  0xe6   : > { %v1857_v19 = vpop.f32.mrf.mxu0  ;;  %v1211_v5 = vadd.f32 %v1192_v43, %v1041_v58  ;;  %v1529_v26 = vpop.f32.mrf.mxu3  ;;  %v5008_v43 = vld [vmem:[%s4113_s11 + $0x8] sm:$0xf]  ;;  %v5030_v58 = vld [vmem:[%s4113_s11 + $0x38] sm:$0xf] }
  0xe7   : > { %v1877_v21 = vadd.f32 %v1857_v19, %v1544_v12  ;;  %v611_v19 = vunpack.c.l.bf16 %v5005_v8 }
  0xe8   : > { %v1545_v23 = vadd.f32 %v1526_v39, %v1211_v5  ;;  %v5024_v39 = vld [vmem:[%s4113_s11 + $0x28] sm:$0xf]  ;;  %v612_v5 = vunpack.c.l.bf16 %v5008_v43 }
  0xeb   : > { %v1043_v29 = vpop.f32.mrf.mxu1 }
  0xec   : > { %v1044_v31 = vadd.f32 %v1043_v29, %v942_v18  ;;  %v615_v29 = vunpack.c.l.bf16 %v5021_v44 }
  0xed   : > { %v1202_v48 = vpop.f32.mrf.mxu2 }
  0xee   : > { %v1859_v1 = vpop.f32.mrf.mxu0  ;;  %v1212_v62 = vadd.f32 %v1195_v22, %v1044_v31  ;;  %v1531_v35 = vpop.f32.mrf.mxu3  ;;  %v616_v31 = vunpack.c.l.bf16 %v5024_v39 }
  0xef   : > { %v1878_v25 = vadd.f32 %v1859_v1, %v1545_v23  ;;  %v652_v1 = vld [vmem:[%s4113_s11 + $0xc] sm:$0x1] }
  0xf0   : > { %v1546_v24 = vadd.f32 %v1529_v26, %v1212_v62  ;;  %v614_v26 = vunpack.c.l.bf16 %v5018_v63  ;;  %v653_v62 = vld [vmem:[%s4113_s11 + $0x14] sm:$0x1] }
  0xf3   : > { %v1045_v38 = vpop.f32.mrf.mxu1 }
  0xf4   : > { %v1046_v61 = vadd.f32 %v1045_v38, %v944_v11  ;;  %v656_v38 = vld [vmem:[%s4113_s11 + $0x2c] sm:$0x1] }
  0xf6   : > { %v1862_v17 = vpop.f32.mrf.mxu0  ;;  %v1213_v49 = vadd.f32 %v1197_v33, %v1046_v61  ;;  %v617_v33 = vunpack.c.l.bf16 %v5027_v14  ;;  %v657_v61 = vld [vmem:[%s4113_s11 + $0x34] sm:$0x1]  ;;  %v3389_v14 = vld [vmem:[%s4113_s11 + $0x18] sm:$0xf] }
  0xf7   : > { %v4992_v51 = vadd.f32 %v1862_v17, %v1546_v24  ;;  %v1534_v37 = vpop.f32.mrf.mxu3  ;;  %v660_v17 = vunpack.c.l.bf16 %v652_v1 }
  0xf8   : > { %v1547_v36 = vadd.f32 %v1531_v35, %v1213_v49  ;;  %v655_v35 = vld [vmem:[%s4113_s11 + $0x24] sm:$0x1]  ;;  %v661_v49 = vunpack.c.l.bf16 %v653_v62 }
  0xfb   : > { %v1048_v41 = vpop.f32.mrf.mxu1 }
  0xfc   : > { %v1049_v9 = vadd.f32 %v1048_v41, %v4894_v59  ;;  %v658_v41 = vld [vmem:[%s4113_s11 + $0x3c] sm:$0x1] }
  0xfe   : > { %v1864_v53 = vpop.f32.mrf.mxu0  ;;  %v1214_v27 = vadd.f32 %v1200_v46, %v1049_v9  ;;  %v618_v46 = vunpack.c.l.bf16 %v5030_v58  ;;  %v663_v9 = vunpack.c.l.bf16 %v655_v35  ;;  %v3390_v58 = vld [vmem:[%s4113_s11 + $0x20] sm:$0xf]  ;;  %v3392_v35 = vld [vmem:[%s4113_s11 + $0x30] sm:$0xf] }
  0xff   : > { %v4995_v50 = vadd.f32 %v1864_v53, %v1547_v36  ;;  %v1536_v57 = vpop.f32.mrf.mxu3  ;;  %v665_v53 = vunpack.c.l.bf16 %v657_v61  ;;  %v3394_v61 = vld [vmem:[%s4113_s11 + $0x40] sm:$0xf] }
 0x100   : > { %v1548_v20 = vadd.f32 %v1534_v37, %v1214_v27  ;;  %v664_v37 = vunpack.c.l.bf16 %v656_v38  ;;  %v666_v27 = vunpack.c.l.bf16 %v658_v41  ;;  %v705_v8 = vrot.slane %v618_v46, 1  ;;  %v3393_v38 = vld [vmem:[%s4113_s11 + $0x38] sm:$0xf] }
 0x102   : > { %v706_v43 = vrot.slane %v666_v27, 1  ;;  %v3460_v27 = vld [vmem:[%s4113_s11 + $0xc] sm:$0x1] }
 0x103   : > { %v1050_v34 = vpop.f32.mrf.mxu1 }
 0x104   : > { %v1051_v47 = vadd.f32 %v1050_v34, %v4930_v32 }
 0x106   : > { %v1215_v55 = vadd.f32 %v1202_v48, %v1051_v47  ;;  %v687_v47 = vrot.slane %v612_v5, 1  ;;  %v688_v48 = vrot.slane %v660_v17, 1 }
 0x108   : > { %v1549_v52 = vadd.f32 %v1536_v57, %v1215_v55  ;;  %v1867_v15 = vpop.f32.mrf.mxu0  ;;  %v691_v57 = vrot.slane %v661_v49, 1 }
 0x109   : > { %v4998_v60 = vadd.f32 %v1867_v15, %v1548_v20  ;;  %v684_v20 = vrot.slane %v611_v19, 1 }
 0x10b   : > { %v1053_v40 = vpop.f32.mrf.mxu1 }
 0x10c   : > { %v1054_v59 = vadd.f32 %v1053_v40, %v4968_v54  ;;  %v693_v40 = vrot.slane %v614_v26, 1 }
 0x110   : > { %v1869_v45 = vpop.f32.mrf.mxu0 }
 0x111   : > { %v5013_v16 = vadd.f32 %v1869_v45, %v1549_v52 }
 0x113   : > { %v1055_v42 = vpop.f32.mrf.mxu1 }
 0x114   : > { %v1056_v2 = vadd.f32 %v1055_v42, %v4982_v13  ;;  %v5011_v13 = vld [vmem:[%s4113_s11 + $0x10] sm:$0xf]  ;;  %v696_v42 = vrot.slane %v615_v29, 1 }
 0x115   : > { %v1205_v0 = vpop.f32.mrf.mxu2  ;;  %v613_v22 = vunpack.c.l.bf16 %v5011_v13  ;;  %v3388_v13 = vld [vmem:[%s4113_s11 + $0x10] sm:$0xf] }
 0x116   : > { %v1216_v18 = vadd.f32 %v1205_v0, %v1054_v59 }
 0x117   : > { %v690_v55 = vrot.slane %v613_v22, 1 }
 0x119   : > { %v692_v45 = vsel %vm683_vm6, %v690_v55, %v691_v57 }
 0x11b   : > { %v2016_v32 = vpop.f32.mrf.mxu1 }
 0x11c   : > { %v1872_v54 = vpop.f32.mrf.mxu0  ;;  %v2036_v30 = vadd.f32 %v2016_v32, %v1877_v21  ;;  %v651_v21 = vld [vmem:[%s4113_s11 + $0x4] sm:$0x1] }
 0x11d   : > { %v1207_v7 = vpop.f32.mrf.mxu2  ;;  %v659_v24 = vunpack.c.l.bf16 %v651_v21  ;;  %v3391_v21 = vld [vmem:[%s4113_s11 + $0x28] sm:$0xf] }
 0x11e   : > { %v5002_v4 = vadd.f32 %v1207_v7, %v1056_v2  ;;  %v697_v2 = vrot.slane %v663_v9, 1  ;;  %v699_v7 = vrot.slane %v616_v31, 1  ;;  %v1068_v9 = vunpack.c.l.bf16 %v3388_v13 }
 0x11f   : > { %v685_v34 = vrot.slane %v659_v24, 1  ;;  %v718_v24 = vadd.f32 %v692_v45, %v613_v22  ;;  %v3461_v22 = vld [vmem:[%s4113_s11 + $0x10] sm:$0xf] }
 0x120   : > { %v1236_v13 = vunpack.c.l.bf16 %v3461_v22 }
 0x121   : > { %v1539_v3 = vpop.f32.mrf.mxu3  ;;  %v686_v15 = vsel %vm683_vm6, %v684_v20, %v685_v34  ;;  %v1073_v34 = vunpack.c.l.bf16 %v3393_v38 }
 0x122   : > { %v1550_v6 = vadd.f32 %v1539_v3, %v1216_v18  ;;  %v689_v18 = vsel %vm683_vm6, %v687_v47, %v688_v48  ;;  %v700_v3 = vrot.slane %v664_v37, 1  ;;  %v716_v44 = vadd.f32 %v686_v15, %v611_v19  ;;  %v3464_v47 = vld [vmem:[%s4113_s11 + $0x1c] sm:$0x1]  ;;  %v3465_v48 = vld [vmem:[%s4113_s11 + $0x20] sm:$0xf] }
 0x123   : > { %v2018_v56 = vpop.f32.mrf.mxu1  ;;  %v717_v39 = vadd.f32 %v689_v18, %v612_v5  ;;  %v1069_v37 = vunpack.c.l.bf16 %v3389_v14  ;;  %v1240_v14 = vunpack.c.l.bf16 %v3465_v48 }
 0x124   : > { %v5015_v28 = vadd.f32 %v1872_v54, %v1550_v6  ;;  %v2037_v11 = vadd.f32 %v2018_v56, %v1878_v25  ;;  %v654_v25 = vld [vmem:[%s4113_s11 + $0x1c] sm:$0x1]  ;;  %v702_v6 = vrot.slane %v617_v33, 1  ;;  %v3387_v54 = vld [vmem:[%s4113_s11 + $0x8] sm:$0xf]  ;;  %v698_v56 = vsel %vm683_vm6, %v696_v42, %v697_v2  ;;  %v5065_v1 = vpop.f32.mrf.mxu0 }
 0x125   : > { %v2350_v10 = vpop.f32.mrf.mxu2  ;;  %v662_v36 = vunpack.c.l.bf16 %v654_v25  ;;  %v701_v63 = vsel %vm683_vm6, %v699_v7, %v700_v3  ;;  %5302 = vst [vmem:[#allocation3_spill] sm:$0xff] %v5065_v1  ;;  %v707_v25 = vsel %vm683_vm6, %v705_v8, %v706_v43  ;;  %v720_v19 = vadd.f32 %v698_v56, %v615_v29  ;;  %v3468_v42 = vld [vmem:[%s4113_s11 + $0x2c] sm:$0x1]  ;;  %v3469_v7 = vld [vmem:[%s4113_s11 + $0x30] sm:$0xf] }
 0x126   : > { %v2370_v12 = vadd.f32 %v2350_v10, %v2036_v30  ;;  %v703_v10 = vrot.slane %v665_v53, 1  ;;  %v721_v5 = vadd.f32 %v701_v63, %v616_v31  ;;  %v723_v49 = vadd.f32 %v707_v25, %v618_v46  ;;  %v3463_v46 = vld [vmem:[%s4113_s11 + $0x18] sm:$0xf]  ;;  %v3470_v3 = vld [vmem:[%s4113_s11 + $0x34] sm:$0x1] }
 0x127   : > { %v694_v59 = vrot.slane %v662_v36, 1  ;;  %v3459_v36 = vld [vmem:[%s4113_s11 + $0x8] sm:$0xf]  ;;  %v1067_v41 = vunpack.c.l.bf16 %v3387_v54  ;;  %v1070_v53 = vunpack.c.l.bf16 %v3390_v58  ;;  %v1071_v29 = vunpack.c.l.bf16 %v3391_v21  ;;  %v3473_v56 = vld [vmem:[%s4113_s11 + $0x40] sm:$0xf] }
 0x128   : > { %v704_v62 = vsel %vm683_vm6, %v702_v6, %v703_v10  ;;  %v1072_v31 = vunpack.c.l.bf16 %v3392_v35  ;;  %v5081_v57 = vadd.f32 %v1068_v9, %v717_v39  ;;  %v3471_v6 = vld [vmem:[%s4113_s11 + $0x38] sm:$0xf]  ;;  %v3474_v10 = vld [vmem:[%s4113_s11 + $0x44] sm:$0x1]  ;;  %v1234_v8 = vunpack.c.l.bf16 %v3459_v36 }
 0x129   : > { %v5036_v23 = vpop.f32.mrf.mxu3  ;;  %v695_v32 = vsel %vm683_vm6, %v693_v40, %v694_v59  ;;  %v722_v17 = vadd.f32 %v704_v62, %v617_v33  ;;  %v1074_v33 = vunpack.c.l.bf16 %v3394_v61  ;;  %v1075_v55 = vadd.f32 %v1067_v41, %v716_v44  ;;  %v3466_v40 = vld [vmem:[%s4113_s11 + $0x24] sm:$0x1]  ;;  %v3467_v59 = vld [vmem:[%s4113_s11 + $0x28] sm:$0xf] }
 0x12a   : > { %v5090_v18 = vadd.f32 %v1071_v29, %v720_v19  ;;  %v5092_v45 = vadd.f32 %v1072_v31, %v721_v5  ;;  %v1235_v43 = vunpack.c.l.bf16 %v3460_v27  ;;  %v1238_v44 = vunpack.c.l.bf16 %v3463_v46 }
 0x12b   : > { %v5094_v2 = vadd.f32 %v1073_v34, %v722_v17  ;;  %v1239_v39 = vunpack.c.l.bf16 %v3464_v47  ;;  %v1241_v58 = vunpack.c.l.bf16 %v3466_v40  ;;  %v1242_v21 = vunpack.c.l.bf16 %v3467_v59 }
 0x12c   : > { %v1243_v62 = vunpack.c.l.bf16 %v3468_v42  ;;  %v1244_v25 = vunpack.c.l.bf16 %v3469_v7  ;;  %v1248_v38 = vunpack.c.l.bf16 %v3473_v56  ;;  %v1249_v61 = vunpack.c.l.bf16 %v3474_v10  ;;  %v1727_v7 = vld [vmem:[%s4210_s22] sm:$0xf]  ;;  %v1728_v10 = vld [vmem:[%s4210_s22 + $0x8] sm:$0xf] }
 0x12d   : > { %v2352_v52 = vpop.f32.mrf.mxu2  ;;  %v1266_v5 = vrot.slane %v1234_v8, 1  ;;  %v1267_v17 = vrot.slane %v1235_v43, 1  ;;  %v1275_v27 = vrot.slane %v1240_v14, 1  ;;  %v1276_v29 = vrot.slane %v1241_v58, 1  ;;  %v1729_v8 = vld [vmem:[%s4210_s22 + $0x10] sm:$0xf] }
 0x12e   : > { %v5051_v0 = vadd.f32 %v2352_v52, %v2037_v11  ;;  %v5083_v52 = vadd.f32 %v1069_v37, %v718_v24  ;;  %v1245_v24 = vunpack.c.l.bf16 %v3470_v3  ;;  %v1272_v37 = vrot.slane %v1238_v44, 1  ;;  %v1731_v14 = vld [vmem:[%s4210_s22 + $0x20] sm:$0xf]  ;;  %v1732_v58 = vld [vmem:[%s4210_s22 + $0x28] sm:$0xf] }
 0x12f   : > { %v1268_v22 = vsel %vm683_vm6, %v1266_v5, %v1267_v17  ;;  %v1278_v31 = vrot.slane %v1242_v21, 1  ;;  %v1281_v46 = vrot.slane %v1244_v25, 1  ;;  %v1277_v48 = vsel %vm683_vm6, %v1275_v27, %v1276_v29  ;;  %v3592_v29 = vld [vmem:[%s4210_s22 + $0x30] sm:$0xf] }
 0x130   : > { %v1282_v40 = vrot.slane %v1245_v24, 1  ;;  %v1298_v56 = vadd.f32 %v1268_v22, %v1075_v55  ;;  %v1733_v24 = vld [vmem:[%s4210_s22 + $0x30] sm:$0xf]  ;;  %v1739_v5 = vunpack.c.l.bf16 %v1731_v14  ;;  %v1740_v17 = vunpack.c.l.bf16 %v1732_v58  ;;  %v3590_v22 = vld [vmem:[%s4210_s22 + $0x20] sm:$0xf] }
 0x131   : > { %v2684_v30 = vpop.f32.mrf.mxu3 }
 0x132   : > { %v5059_v11 = vadd.f32 %v2684_v30, %v2370_v12  ;;  %v719_v12 = vadd.f32 %v695_v32, %v614_v26  ;;  %v3462_v26 = vld [vmem:[%s4113_s11 + $0x14] sm:$0x1]  ;;  %v5096_v32 = vadd.f32 %v1074_v33, %v723_v49  ;;  %v3472_v30 = vld [vmem:[%s4113_s11 + $0x3c] sm:$0x1]  ;;  %v1269_v49 = vrot.slane %v1236_v13, 1  ;;  %s3837_s11 = sshll.u32 %s5305_s10, 5 }
 0x133   : > { %v1237_v63 = vunpack.c.l.bf16 %v3462_v26  ;;  %v1247_v35 = vunpack.c.l.bf16 %v3472_v30  ;;  %v1288_v30 = vrot.slane %v1249_v61, 1  ;;  %v1283_v43 = vsel %vm683_vm6, %v1281_v46, %v1282_v40  ;;  %v3594_v40 = vld [vmem:[%s4210_s22 + $0x40] sm:$0xf]  ;;  %s5246_s25 = scalar_lea.vmem %s5296_s8, %s3837_s11 }
 0x134   : > { %v5085_v15 = vadd.f32 %v1070_v53, %v719_v12  ;;  %v1246_v12 = vunpack.c.l.bf16 %v3471_v6  ;;  %v1273_v53 = vrot.slane %v1239_v39, 1  ;;  %v1287_v6 = vrot.slane %v1248_v38, 1  ;;  %v1730_v39 = vld [vmem:[%s4210_s22 + $0x18] sm:$0xf] }
 0x135   : > { %v5076_v20 = vpop.f32.mrf.mxu2  ;;  %v1270_v36 = vrot.slane %v1237_v63, 1  ;;  %v1285_v42 = vrot.slane %v1247_v35, 1  ;;  %v1303_v25 = vadd.f32 %v1283_v43, %v5092_v45  ;;  %v5138_v35 = vpop.f32.mrf.mxu1  ;;  %v1735_v38 = vunpack.c.l.bf16 %v1727_v7  ;;  %v2220_v43 = vld [vmem:[%s4236_s15] sm:$0xf] }
 0x136   : > { %v1274_v33 = vsel %vm683_vm6, %v1272_v37, %v1273_v53  ;;  %v1284_v59 = vrot.slane %v1246_v12, 1  ;;  %v1289_v21 = vsel %vm683_vm6, %v1287_v6, %v1288_v30  ;;  %v1734_v12 = vld [vmem:[%s4210_s22 + $0x38] sm:$0xf]  ;;  %v1736_v61 = vunpack.c.l.bf16 %v1728_v10 }
 0x137   : > { %v1271_v26 = vsel %vm683_vm6, %v1269_v49, %v1270_v36  ;;  %v1300_v44 = vadd.f32 %v1274_v33, %v5083_v52  ;;  %v1305_v52 = vadd.f32 %v1289_v21, %v5096_v32  ;;  %v1738_v45 = vunpack.c.l.bf16 %v1730_v39  ;;  %v3587_v49 = vld [vmem:[%s4210_s22 + $0x8] sm:$0xf]  ;;  %v3588_v36 = vld [vmem:[%s4210_s22 + $0x10] sm:$0xf]  ;;  %v2223_v21 = vld [vmem:[%s4236_s15 + $0x18] sm:$0xf] }
 0x138   : > { %v1286_v13 = vsel %vm683_vm6, %v1284_v59, %v1285_v42  ;;  %v1299_v63 = vadd.f32 %v1271_v26, %v5081_v57  ;;  %v1741_v37 = vunpack.c.l.bf16 %v1733_v24  ;;  %v1742_v32 = vunpack.c.l.bf16 %v1734_v12  ;;  %v3591_v26 = vld [vmem:[%s4210_s22 + $0x28] sm:$0xf] }
 0x139   : > { %v5101_v54 = vpop.f32.mrf.mxu3  ;;  %v1304_v57 = vadd.f32 %v1286_v13, %v5094_v2  ;;  %v3589_v2 = vld [vmem:[%s4210_s22 + $0x18] sm:$0xf]  ;;  %v1743_v53 = vadd.f32 %v1735_v38, %v1298_v56  ;;  %v1748_v46 = vadd.f32 %v1740_v17, %v1303_v25  ;;  %v1894_v7 = vunpack.c.l.bf16 %v3587_v49  ;;  %v2221_v13 = vld [vmem:[%s4236_s15 + $0x8] sm:$0xf]  ;;  %v2378_v49 = vld [vmem:[%s4236_s15] sm:$0xf] }
 0x13a   : > { %v3017_v19 = vpop.f32.mrf.mxu0  ;;  %v1744_v27 = vadd.f32 %v1736_v61, %v1299_v63  ;;  %v1750_v42 = vadd.f32 %v1742_v32, %v1305_v52  ;;  %v1896_v30 = vunpack.c.l.bf16 %v3589_v2  ;;  %v1897_v56 = vunpack.c.l.bf16 %v3590_v22  ;;  %v2222_v63 = vld [vmem:[%s4236_s15 + $0x10] sm:$0xf]  ;;  %v2227_v38 = vld [vmem:[%s4236_s15 + $0x38] sm:$0xf]  ;;  %v2380_v22 = vld [vmem:[%s4236_s15 + $0x8] sm:$0xf] }
 0x13b   : > { %v5109_v9 = vadd.f32 %v3017_v19, %v5059_v11  ;;  %v1279_v11 = vrot.slane %v1243_v62, 1  ;;  %v1301_v62 = vadd.f32 %v1277_v48, %v5085_v15  ;;  %v1737_v19 = vunpack.c.l.bf16 %v1729_v8  ;;  %v3593_v48 = vld [vmem:[%s4210_s22 + $0x38] sm:$0xf]  ;;  %v2226_v52 = vld [vmem:[%s4236_s15 + $0x30] sm:$0xf] }
 0x13c   : > { %v1749_v59 = vadd.f32 %v1741_v37, %v1304_v57  ;;  %v1898_v10 = vunpack.c.l.bf16 %v3591_v26  ;;  %v1899_v8 = vunpack.c.l.bf16 %v3592_v29  ;;  %v1901_v39 = vunpack.c.l.bf16 %v3594_v40  ;;  %v2381_v26 = vld [vmem:[%s4236_s15 + $0xc] sm:$0x1]  ;;  %v2382_v29 = vld [vmem:[%s4236_s15 + $0x10] sm:$0xf]  ;;  %v2383_v40 = vld [vmem:[%s4236_s15 + $0x14] sm:$0x1] }
 0x13d   : > { %v5106_v41 = vpop.f32.mrf.mxu2  ;;  %v5115_v34 = vmul.f32 %v5109_v9, %v5109_v9  ;;  %v1280_v3 = vsel %vm683_vm6, %v1278_v31, %v1279_v11  ;;  %v1745_v31 = vadd.f32 %v1737_v19, %v1300_v44  ;;  %v1746_v33 = vadd.f32 %v1738_v45, %v1301_v62  ;;  %v2224_v62 = vld [vmem:[%s4236_s15 + $0x20] sm:$0xf]  ;;  %v5164_v61 = vpop.f32.mrf.mxu1 }
 0x13e   : > { %v1302_v55 = vadd.f32 %v1280_v3, %v5090_v18  ;;  %v1895_v3 = vunpack.c.l.bf16 %v3588_v36  ;;  %v1900_v44 = vunpack.c.l.bf16 %v3593_v48  ;;  %v1902_v14 = vadd.f32 %v1894_v7, %v1743_v53  ;;  %v2379_v36 = vld [vmem:[%s4236_s15 + $0x4] sm:$0x1] }
 0x13f   : > { %v1904_v25 = vadd.f32 %v1896_v30, %v1745_v31  ;;  %v1905_v24 = vadd.f32 %v1897_v56, %v1746_v33  ;;  %v1907_v57 = vadd.f32 %v1899_v8, %v1748_v46  ;;  %v1909_v45 = vadd.f32 %v1901_v39, %v1750_v42  ;;  %v2385_v42 = vld [vmem:[%s4236_s15 + $0x1c] sm:$0x1]  ;;  %v2387_v8 = vld [vmem:[%s4236_s15 + $0x24] sm:$0x1]  ;;  %v2390_v39 = vld [vmem:[%s4236_s15 + $0x30] sm:$0xf] }
 0x140   : > { %v1747_v11 = vadd.f32 %v1739_v5, %v1302_v55  ;;  %v1903_v58 = vadd.f32 %v1895_v3, %v1744_v27  ;;  %v2225_v55 = vld [vmem:[%s4236_s15 + $0x28] sm:$0xf]  ;;  %v1908_v19 = vadd.f32 %v1900_v44, %v1749_v59  ;;  %v2228_v5 = vunpack.c.l.bf16 %v2220_v43  ;;  %v2384_v59 = vld [vmem:[%s4236_s15 + $0x18] sm:$0xf]  ;;  %v2389_v44 = vld [vmem:[%s4236_s15 + $0x2c] sm:$0x1] }
 0x141   : > { %v5118_v47 = vpop.f32.mrf.mxu3  ;;  %v2229_v17 = vunpack.c.l.bf16 %v2221_v13  ;;  %v2230_v37 = vunpack.c.l.bf16 %v2222_v63  ;;  %v2231_v32 = vunpack.c.l.bf16 %v2223_v21  ;;  %v2232_v53 = vunpack.c.l.bf16 %v2224_v62  ;;  %v2388_v43 = vld [vmem:[%s4236_s15 + $0x28] sm:$0xf]  ;;  %v2392_v62 = vld [vmem:[%s4236_s15 + $0x38] sm:$0xf] }
 0x142   : > { %v5142_v15 = vpop.f32.mrf.mxu0  ;;  %v1906_v12 = vadd.f32 %v1898_v10, %v1747_v11  ;;  %v2233_v27 = vunpack.c.l.bf16 %v2225_v55  ;;  %v2234_v33 = vunpack.c.l.bf16 %v2226_v52  ;;  %v2235_v11 = vunpack.c.l.bf16 %v2227_v38  ;;  %v2386_v10 = vld [vmem:[%s4236_s15 + $0x20] sm:$0xf]  ;;  %v2393_v55 = vld [vmem:[%s4236_s15 + $0x3c] sm:$0x1] }
 0x143   : > { %v2236_v46 = vadd.f32 %v2228_v5, %v1902_v14  ;;  %v5175_v48 = vadd.f32 %v2229_v17, %v1903_v58  ;;  %v2238_v7 = vadd.f32 %v2230_v37, %v1904_v25  ;;  %v5180_v3 = vadd.f32 %v2231_v32, %v1905_v24  ;;  %v2391_v14 = vld [vmem:[%s4236_s15 + $0x34] sm:$0x1] }
 0x144   : > { %v5182_v30 = vadd.f32 %v2232_v53, %v1906_v12  ;;  %v5184_v56 = vadd.f32 %v2233_v27, %v1907_v57  ;;  %v5189_v13 = vadd.f32 %v2234_v33, %v1908_v19  ;;  %v5191_v63 = vadd.f32 %v2235_v11, %v1909_v45 }
 0x145   : > { %v5144_v18 = vpop.f32.mrf.mxu2  ;;  %v2394_v58 = vunpack.c.l.bf16 %v2378_v49  ;;  %v2395_v21 = vunpack.c.l.bf16 %v2379_v36  ;;  %v2396_v25 = vunpack.c.l.bf16 %v2380_v22  ;;  %v2397_v24 = vunpack.c.l.bf16 %v2381_v26  ;;  %v5200_v27 = vpop.f32.mrf.mxu1 }
 0x146   : > { %v2398_v12 = vunpack.c.l.bf16 %v2382_v29  ;;  %v2399_v52 = vunpack.c.l.bf16 %v2383_v40  ;;  %v2400_v38 = vunpack.c.l.bf16 %v2384_v59  ;;  %v2401_v5 = vunpack.c.l.bf16 %v2385_v42 }
 0x147   : > { %v2402_v17 = vunpack.c.l.bf16 %v2386_v10  ;;  %v2403_v19 = vunpack.c.l.bf16 %v2387_v8  ;;  %v2404_v37 = vunpack.c.l.bf16 %v2388_v43  ;;  %v2405_v45 = vunpack.c.l.bf16 %v2389_v44 }
 0x148   : > { %v2406_v32 = vunpack.c.l.bf16 %v2390_v39  ;;  %v2407_v53 = vunpack.c.l.bf16 %v2391_v14  ;;  %v2408_v49 = vunpack.c.l.bf16 %v2392_v62  ;;  %v2409_v36 = vunpack.c.l.bf16 %v2393_v55 }
 0x149   : > { %v5154_v6 = vpop.f32.mrf.mxu3  ;;  %v2426_v33 = vrot.slane %v2394_v58, 1  ;;  %v2427_v11 = vrot.slane %v2395_v21, 1  ;;  %v2429_v26 = vrot.slane %v2396_v25, 1  ;;  %v2430_v29 = vrot.slane %v2397_v24, 1 }
 0x14a   : > { %v5168_v2 = vpop.f32.mrf.mxu0  ;;  %v2432_v40 = vrot.slane %v2398_v12, 1  ;;  %v2433_v1 = vrot.slane %v2399_v52, 1  ;;  %v2435_v10 = vrot.slane %v2400_v38, 1  ;;  %v2436_v8 = vrot.slane %v2401_v5, 1  ;;  %v2887_v5 = vld [vmem:[%s4692_s29] sm:$0xf] }
 0x14b   : > { %v2428_v42 = vsel %vm683_vm6, %v2426_v33, %v2427_v11  ;;  %v2438_v43 = vrot.slane %v2402_v17, 1  ;;  %v2431_v44 = vsel %vm683_vm6, %v2429_v26, %v2430_v29  ;;  %v2439_v14 = vrot.slane %v2403_v19, 1  ;;  %v2892_v26 = vld [vmem:[%s4692_s29 + $0x28] sm:$0xf]  ;;  %v2893_v29 = vld [vmem:[%s4692_s29 + $0x30] sm:$0xf] }
 0x14c   : > { %v2434_v39 = vsel %vm683_vm6, %v2432_v40, %v2433_v1  ;;  %v2441_v58 = vrot.slane %v2404_v37, 1  ;;  %v2437_v21 = vsel %vm683_vm6, %v2435_v10, %v2436_v8  ;;  %v2442_v62 = vrot.slane %v2405_v45, 1  ;;  %v2888_v1 = vld [vmem:[%s4692_s29 + $0x8] sm:$0xf]  ;;  %v2889_v45 = vld [vmem:[%s4692_s29 + $0x10] sm:$0xf] }
 0x14d   : > { %v5173_v31 = vpop.f32.mrf.mxu2  ;;  %v2444_v55 = vrot.slane %v2406_v32, 1  ;;  %v2445_v25 = vrot.slane %v2407_v53, 1  ;;  %v2440_v24 = vsel %vm683_vm6, %v2438_v43, %v2439_v14  ;;  %v2447_v12 = vrot.slane %v2408_v49, 1  ;;  %v2890_v32 = vld [vmem:[%s4692_s29 + $0x18] sm:$0xf]  ;;  %v2028_v10 = vpop.f32.mrf.mxu1 }
 0x14e   : > { %v2448_v52 = vrot.slane %v2409_v36, 1  ;;  %v2458_v38 = vadd.f32 %v2428_v42, %v2236_v46  ;;  %v2443_v17 = vsel %vm683_vm6, %v2441_v58, %v2442_v62  ;;  %v2459_v37 = vadd.f32 %v2431_v44, %v5175_v48  ;;  %v2891_v53 = vld [vmem:[%s4692_s29 + $0x20] sm:$0xf]  ;;  %v2894_v40 = vld [vmem:[%s4692_s29 + $0x38] sm:$0xf]  ;;  %s5239_s29 = scalar_lea.vmem %s5295_s7, %s3837_s11 }
 0x14f   : > { %v2446_v19 = vsel %vm683_vm6, %v2444_v55, %v2445_v25  ;;  %v2460_v33 = vadd.f32 %v2434_v39, %v2238_v7  ;;  %v2461_v49 = vadd.f32 %v2437_v21, %v5180_v3  ;;  %v2462_v36 = vadd.f32 %v2440_v24, %v5182_v30 }
 0x150   : > { %v2449_v11 = vsel %vm683_vm6, %v2447_v12, %v2448_v52  ;;  %v2463_v46 = vadd.f32 %v2443_v17, %v5184_v56  ;;  %v2464_v48 = vadd.f32 %v2446_v19, %v5189_v13  ;;  %v2705_v8 = vadd.f32 %v5101_v54, %v5051_v0 }
 0x151   : > { %v5198_v57 = vpop.f32.mrf.mxu3  ;;  %v2465_v7 = vadd.f32 %v2449_v11, %v5191_v63  ;;  %v2895_v43 = vunpack.c.l.bf16 %v2887_v5  ;;  %v2896_v3 = vunpack.c.l.bf16 %v2888_v1  ;;  %v2897_v44 = vunpack.c.l.bf16 %v2889_v45 }
 0x152   : > { %v5202_v22 = vpop.f32.mrf.mxu0  ;;  %v2898_v30 = vunpack.c.l.bf16 %v2890_v32  ;;  %v2899_v39 = vunpack.c.l.bf16 %v2891_v53  ;;  %v2900_v56 = vunpack.c.l.bf16 %v2892_v26  ;;  %v2901_v58 = vunpack.c.l.bf16 %v2893_v29 }
 0x153   : > { %v2902_v21 = vunpack.c.l.bf16 %v2894_v40  ;;  %v2903_v62 = vadd.f32 %v2895_v43, %v2458_v38  ;;  %v2904_v25 = vadd.f32 %v2896_v3, %v2459_v37  ;;  %v2905_v13 = vadd.f32 %v2897_v44, %v2460_v33 }
 0x154   : > { %v2906_v24 = vadd.f32 %v2898_v30, %v2461_v49  ;;  %v2907_v63 = vadd.f32 %v2899_v39, %v2462_v36  ;;  %v2908_v12 = vadd.f32 %v2900_v56, %v2463_v46  ;;  %v2909_v52 = vadd.f32 %v2901_v58, %v2464_v48 }
 0x155   : > { %v5204_v59 = vpop.f32.mrf.mxu2  ;;  %v2910_v0 = vadd.f32 %v2902_v21, %v2465_v7  ;;  %v3038_v54 = vadd.f32 %v5142_v15, %v2705_v8  ;;  %v3061_v5 = vmul.f32 0.11111111, %v2903_v62  ;;  %v3062_v1 = vmul.f32 0.11111111, %v2904_v25  ;;  %v2031_v49 = vpop.f32.mrf.mxu1 }
 0x156   : > { %v3063_v17 = vmul.f32 0.11111111, %v2905_v13  ;;  %v2038_v38 = vadd.f32 %v5138_v35, %v4992_v51  ;;  %v3064_v19 = vmul.f32 0.11111111, %v2906_v24  ;;  %v3065_v37 = vmul.f32 0.11111111, %v2907_v63 }
 0x157   : > { %v3938_v15 = vpack.c.bf16 %v3038_v54, %v5109_v9  ;;  %v3066_v33 = vmul.f32 0.11111111, %v2908_v12  ;;  %v3067_v45 = vmul.f32 0.11111111, %v2909_v52  ;;  %v3068_v32 = vmul.f32 0.11111111, %v2910_v0 }
 0x158   : > { %v3958_v53 = vpack.c.bf16 %v3062_v1, %v3061_v5  ;;  %v3085_v11 = vadd.f32 %v3038_v54, %v5109_v9  ;;  %v3963_v51 = vpack.c.bf16 %v3064_v19, %v3063_v17  ;;  %v3099_v36 = vmul.f32 %v3038_v54, %v3038_v54 }
 0x159   : > { %v5226_v42 = vpop.f32.mrf.mxu3  ;;  %3939 = vst [vmem:[%s5239_s29] sm:$0xff] %v3938_v15   ;;  %v3968_v35 = vpack.c.bf16 %v3066_v33, %v3065_v37  ;;  %v2372_v46 = vadd.f32 %v5076_v20, %v2038_v38  ;;  %v3973_v26 = vpack.c.bf16 %v3068_v32, %v3067_v45  ;;  %v2039_v29 = vadd.f32 %v5164_v61, %v4995_v50 }
 0x15a   : > { %v3027_v55 = vpop.f32.mrf.mxu0  ;;  %3959 = vst [vmem:[%s5246_s25] sm:$0xff] %v3958_v53   ;;  %v2040_v40 = vadd.f32 %v5200_v27, %v4998_v60  ;;  %v2041_v48 = vadd.f32 %v2028_v10, %v5013_v16  ;;  %v1551_v7 = vadd.f32 %v5036_v23, %v5002_v4  ;;  %v3106_v8 = vadd.f32 %v3099_v36, %v5115_v34 }
 0x15b   : > { %3978 = vst [vmem:[%s5246_s25 + $0x8] sm:$0xff] %v3963_v51   ;;  %v2706_v20 = vadd.f32 %v5118_v47, %v2372_v46  ;;  %v2042_v43 = vadd.f32 %v2031_v49, %v5015_v28  ;;  %v2373_v3 = vadd.f32 %v5106_v41, %v2039_v29  ;;  %v5303_v47 = vld [vmem:[#allocation3_spill] sm:$0xff] }
 0x15c   : > { %3979 = vst [vmem:[%s5246_s25 + $0x10] sm:$0xff] %v3968_v35   ;;  %v2374_v50 = vadd.f32 %v5144_v18, %v2040_v40  ;;  %v2375_v60 = vadd.f32 %v5173_v31, %v2041_v48  ;;  %v1884_v10 = vadd.f32 %v5303_v47, %v1551_v7 }
 0x15d   : > { %v5232_v14 = vpop.f32.mrf.mxu2  ;;  %3980 = vst [vmem:[%s5246_s25 + $0x18] sm:$0xff] %v3973_v26   ;;  %v3039_v16 = vadd.f32 %v5168_v2, %v2706_v20  ;;  %v2376_v4 = vadd.f32 %v5204_v59, %v2042_v43  ;;  %v2707_v23 = vadd.f32 %v5154_v6, %v2373_v3  ;;  %v2033_v2 = vpop.f32.mrf.mxu1 }
 0x15e   : > { %v2708_v34 = vadd.f32 %v5198_v57, %v2374_v50  ;;  %v2709_v28 = vadd.f32 %v5226_v42, %v2375_v60  ;;  %v2043_v58 = vadd.f32 %v2033_v2, %v1884_v10 }
 0x15f   : > { %v3086_v41 = vadd.f32 %v3085_v11, %v3039_v16  ;;  %v3100_v18 = vmul.f32 %v3039_v16, %v3039_v16  ;;  %v3040_v31 = vadd.f32 %v5202_v22, %v2707_v23 }
 0x160   : > { %v3041_v30 = vadd.f32 %v3027_v55, %v2708_v34  ;;  %v2377_v25 = vadd.f32 %v5232_v14, %v2043_v58 }
 0x161   : > { %v2699_v9 = vpop.f32.mrf.mxu3  ;;  %v3107_v56 = vadd.f32 %v3106_v8, %v3100_v18  ;;  %v3943_v6 = vpack.c.bf16 %v3040_v31, %v3039_v16  ;;  %v3087_v21 = vadd.f32 %v3086_v41, %v3040_v31  ;;  %v3101_v57 = vmul.f32 %v3040_v31, %v3040_v31 }
 0x162   : > { %v3029_v27 = vpop.f32.mrf.mxu0  ;;  %v2710_v44 = vadd.f32 %v2699_v9, %v2376_v4  ;;  %v3102_v62 = vmul.f32 %v3041_v30, %v3041_v30 }
 0x163   : > { %v3042_v39 = vadd.f32 %v3029_v27, %v2709_v28  ;;  %3975 = vst [vmem:[%s5239_s29 + $0x8] sm:$0xff] %v3943_v6   ;;  %v3108_v13 = vadd.f32 %v3107_v56, %v3101_v57  ;;  %v3088_v24 = vadd.f32 %v3087_v21, %v3041_v30 }
 0x165   : > { %v3032_v61 = vpop.f32.mrf.mxu2  ;;  %v3948_v42 = vpack.c.bf16 %v3042_v39, %v3041_v30  ;;  %v3103_v63 = vmul.f32 %v3042_v39, %v3042_v39  ;;  %v3109_v12 = vadd.f32 %v3108_v13, %v3102_v62  ;;  %v3089_v52 = vadd.f32 %v3088_v24, %v3042_v39 }
 0x166   : > { %v3043_v59 = vadd.f32 %v3032_v61, %v2710_v44 }
 0x167   : > { %3976 = vst [vmem:[%s5239_s29 + $0x10] sm:$0xff] %v3948_v42   ;;  %v3110_v1 = vadd.f32 %v3109_v12, %v3103_v63 }
 0x168   : > { %v3104_v0 = vmul.f32 %v3043_v59, %v3043_v59  ;;  %v3090_v17 = vadd.f32 %v3089_v52, %v3043_v59 }
 0x169   : > { %v2701_v22 = vpop.f32.mrf.mxu3 }
 0x16a   : > { %v2711_v55 = vadd.f32 %v2701_v22, %v2377_v25  ;;  %v3111_v19 = vadd.f32 %v3110_v1, %v3104_v0 }
 0x16d   : > { %v3034_v54 = vpop.f32.mrf.mxu2 }
 0x16e   : > { %v3044_v5 = vadd.f32 %v3034_v54, %v2711_v55 }
 0x170   : > { %v3953_v38 = vpack.c.bf16 %v3044_v5, %v3043_v59  ;;  %v3105_v15 = vmul.f32 %v3044_v5, %v3044_v5  ;;  %v3091_v14 = vadd.f32 %v3090_v17, %v3044_v5 }
 0x172   : > { %3977 = vst [vmem:[%s5239_s29 + $0x18] sm:$0xff] %v3953_v38   ;;  %v3092_v37 = vrot.slane %v3091_v14, 4  ;;  %v3112_v33 = vadd.f32 %v3111_v19, %v3105_v15 }
 0x174   : > { %v3093_v45 = vadd.f32 %v3092_v37, %v3091_v14  ;;  %v3113_v32 = vrot.slane %v3112_v33, 4 }
 0x176   : > { %v3094_v53 = vrot.slane %v3093_v45, 2  ;;  %v3114_v11 = vadd.f32 %v3113_v32, %v3112_v33 }
 0x178   : > { %v3095_v49 = vadd.f32 %v3094_v53, %v3093_v45  ;;  %v3115_v51 = vrot.slane %v3114_v11, 2 }
 0x17a   : > { %v3096_v35 = vrot.slane %v3095_v49, 1  ;;  %v3116_v36 = vadd.f32 %v3115_v51, %v3114_v11 }
 0x17c   : > { %v3117_v46 = vrot.slane %v3116_v36, 1  ;;  %v3097_v26 = vadd.f32 %v3096_v35, %v3095_v49 }
 0x17e   : > { %v3118_v29 = vadd.f32 %v3117_v46, %v3116_v36 }
 0x180   : > { %v3120_v40 = vsel %vm534_vm0, %v3097_v26, %v3118_v29 }
 0x181   : > { %3121 = vst [vmem:[%s415_s12] sm:$0x3] %v3120_v40 }
 0x182 PF: > { %s20_s30 = sadd.s32 1, %s4019_s30  }
 0x183   : > { %p17_p4 = scmp.ge.s32.totalorder %s20_s30, 4  }
 0x185   :  { %19 = sbr.rel (!%p17_p4) target bundleno = 1 (0x1), region = 123 }

</bundles_post_ra>
